<compile_context>
chip_gen: v7x
topology: tpu7x:2x2x1
jax: 0.10.0
libtpu: 0.0.40
codegen_flags: <defaults>
</compile_context>

<pallas_src>
import math
import functools

import jax
import jax.numpy as jnp
from jax.experimental import pallas as pl
from jax.experimental.pallas import tpu as pltpu

_VMEM = functools.partial(pl.BlockSpec, memory_space=pltpu.MemorySpace.VMEM)

GCN_CNT = 4  # len(filters) - 2 for filters = [feature_channels, 16, 16, 16, 32, 32]


# ---------------------------------------------------------------------------
# In-kernel helpers (traced inside the single fused kernel)
# ---------------------------------------------------------------------------
def _mm(a, b):
    """MXU matmul: bf16 inputs, f32 accumulation."""
    return jnp.dot(a.astype(jnp.bfloat16), b.astype(jnp.bfloat16),
                   preferred_element_type=jnp.float32)


def _cheb_layer(s_ref, h, w_ref, b_ref):
    """One ChebConv (with any adjacent pooling already folded into the stacked operator).

    s_ref : (K*Vp_out, Vp_in) row-stacked [T_0(L); ...; T_{K-1}(L)] (optionally @ pool), bf16.
    h     : (Vp_in, B*Cin) lane-folded activations, f32.
    w_ref : (K, B*Cin, B*Cout) per-k kron(I_B, W_k) projection weights, bf16.
    b_ref : (1, B*Cout) bias tiled over the batch lane groups, f32.

    basis = S @ h is ONE matmul for all K Chebyshev terms; the K projections are independent
    (they pipeline on the MXU) and are accumulated in f32.
    """
    K = w_ref.shape[0]
    vp = s_ref.shape[0] // K
    basis = _mm(s_ref[...], h)                       # (K*Vp_out, B*Cin)
    acc = _mm(basis[0:vp, :], w_ref[0])
    for k in range(1, K):
        acc = acc + _mm(basis[k * vp:(k + 1) * vp, :], w_ref[k])
    return acc + b_ref[...]


def _bn_elu_lf(h):
    """BatchNorm1d(V) (train-mode batch stats, affine weight=1 / bias=0) + ELU in (V, B*C) layout.
    Per-vertex statistics over (batch, channel) == the whole lane axis.  Zero (padded) rows stay 0."""
    n = float(h.shape[1])
    mean = jnp.sum(h, axis=1, keepdims=True) / n
    d = h - mean
    var = jnp.sum(d * d, axis=1, keepdims=True) / n        # biased variance (PyTorch normalization)
    y = d * jax.lax.rsqrt(var + 1e-5)
    return jnp.where(y > 0, y, jnp.exp(jnp.minimum(y, 0.0)) - 1.0)   # ELU(alpha=1)


# ---------------------------------------------------------------------------
# The single fused VAE forward kernel
# ---------------------------------------------------------------------------
def _vae_kernel(*refs):
    out_ref = refs[-1]
    it = iter(refs[:-1])
    x_ref, eps_ref = next(it), next(it)
    enc_S = [next(it) for _ in range(GCN_CNT)]
    enc_w = [next(it) for _ in range(GCN_CNT)]
    enc_b = [next(it) for _ in range(GCN_CNT)]
    down_last_ref = next(it)
    wlat_ref, blat_ref = next(it), next(it)
    wdec_ref, bdec_ref = next(it), next(it)
    dec_S = [next(it) for _ in range(GCN_CNT)]
    dec_w = [next(it) for _ in range(GCN_CNT)]
    dec_b = [next(it) for _ in range(GCN_CNT)]
    rec_S_ref, rec_w_ref, rec_b_ref = next(it), next(it), next(it)

    # ---- Encoder: [pool-fused] ChebConv -> BatchNorm1d(V) -> ELU, x4 ----
    h = x_ref[...]                                           # (Vp0, B*C0) f32
    for i in range(GCN_CNT):
        h = _cheb_layer(enc_S[i], h, enc_w[i], enc_b[i])
        h = _bn_elu_lf(h)
    h = _mm(down_last_ref[...], h)                           # last pool: (V4, B*C_last)

    # ---- Latent: fused (encoder_fc -> mean/log_var heads), reparameterize, decoder_fc ----
    V4 = wlat_ref.shape[0]
    ml = _mm(h[0:1, :], wlat_ref[0])                         # per-vertex folded fc+heads
    for v in range(1, V4):
        ml = ml + _mm(h[v:v + 1, :], wlat_ref[v])
    ml = ml + blat_ref[...]                                  # (1, 2*B*latent): [means | log_vars]
    bl = ml.shape[1] // 2
    mean_lf, logv_lf = ml[:, :bl], ml[:, bl:]
    z = mean_lf + eps_ref[...] * jnp.exp(0.5 * logv_lf)      # reparameterize, (1, B*latent)
    d = jnp.concatenate([_mm(z, wdec_ref[v]) for v in range(V4)], axis=0)
    d = d + bdec_ref[...]                                    # decoder fc -> (V4, B*C_last) lane-folded

    # ---- Decoder: (pool fused) ChebConv -> BatchNorm1d(V) -> ELU, x4; recon ChebConv ----
    for i in range(GCN_CNT):
        d = _cheb_layer(dec_S[i], d, dec_w[i], dec_b[i])
        d = _bn_elu_lf(d)
    out_ref[...] = _cheb_layer(rec_S_ref, d, rec_w_ref, rec_b_ref)   # (V0, B*C0)


def vae_forward(x, eps, flat_weights):
    """x: (B, V0, C0) -> pred: (B, V0, C0).  One fused pallas_call; the (B,V,C) <-> (V, B*C)
    input/output permutes are wrapper-side layout plumbing handled by XLA."""
    B, V0, C0 = x.shape
    x_lf = jnp.transpose(x, (1, 0, 2)).reshape(V0, B * C0)
    eps_lf = eps.reshape(1, -1)
    n_in = 2 + len(flat_weights)
    out_lf = pl.pallas_call(
        _vae_kernel,
        out_shape=jax.ShapeDtypeStruct((V0, B * C0), jnp.float32),
        in_specs=[_VMEM() for _ in range(n_in)],
        out_specs=_VMEM(),
    )(x_lf, eps_lf, *flat_weights)
    return jnp.transpose(out_lf.reshape(V0, B, C0), (1, 0, 2))


# ---------------------------------------------------------------------------
# Parameter / graph construction and operator packing (glue, deterministic)
# ---------------------------------------------------------------------------
def _pad8(n):
    return ((n + 7) // 8) * 8


def pad_to(m, rows, cols):
    return jnp.zeros((rows, cols), jnp.float32).at[:m.shape[0], :m.shape[1]].set(m)


def xavier_uniform(key, fan_out, fan_in, shape):
    a = math.sqrt(6.0 / (fan_in + fan_out))
    return jax.random.uniform(key, shape, jnp.float32, minval=-a, maxval=a)


def make_cheb_params(key, cin, cout, K):
    # PyG ChebConv stores K Linear(cin, cout, bias=False) weights + one bias; bias init to 0.
    keys = jax.random.split(key, K)
    w = jnp.stack([xavier_uniform(keys[k], cout, cin, (cin, cout)) for k in range(K)])
    b = jnp.zeros((1, cout), jnp.float32)
    return w, b


def make_linear_params(key, fin, fout):
    # torch weight is (fout, fin); we generate the (fin, fout) transpose directly (same fans, bias=0).
    w = xavier_uniform(key, fout, fin, (fin, fout))
    b = jnp.zeros((1, fout), jnp.float32)
    return w, b


def ring_adj(v):
    """Deterministic symmetric adjacency (ring + skip connections), no self loops."""
    idx = jnp.arange(v)
    A = jnp.zeros((v, v), jnp.float32)
    A = A.at[idx, (idx + 1) % v].set(1.0)
    A = A.at[idx, (idx + 2) % v].set(1.0)
    return jnp.maximum(A, A.T)


def cheb_lhat(adj, lambda_max):
    """Scaled Laplacian used by ChebConv('sym'): (2/lambda_max)(I - D^-1/2 A D^-1/2) - I."""
    v = adj.shape[0]
    deg = jnp.sum(adj, axis=1)
    dinv = jnp.where(deg > 0, 1.0 / jnp.sqrt(deg), 0.0)
    lap = jnp.eye(v, dtype=jnp.float32) - dinv[:, None] * adj * dinv[None, :]
    return (2.0 / lambda_max) * lap - jnp.eye(v, dtype=jnp.float32)


def make_transform(key, vout, vin):
    # Dense stand-in for the sparse down/up transforms; pool() with a sparse matrix is the same matmul.
    return jax.random.uniform(key, (vout, vin), jnp.float32) * (2.0 / vin)


def cheb_polys(lhat, K):
    """T_0..T_{K-1} Chebyshev polynomials of the scaled Laplacian (true, unpadded size)."""
    Ts = [jnp.eye(lhat.shape[0], dtype=jnp.float32)]
    if K > 1:
        Ts.append(lhat)
        for _ in range(2, K):
            Ts.append(2.0 * lhat @ Ts[-1] - Ts[-2])
    return Ts[:K]


def stack_cheb_op(lhat, K, right=None):
    """Row-stacked [T_0(L); ...; T_{K-1}(L)] (optionally right-multiplied by a pooling transform),
    with each K-block zero-padded to a multiple-of-8 row count so in-kernel slices are aligned."""
    Ts = cheb_polys(lhat, K)
    if right is not None:
        Ts = [t @ right for t in Ts]
    r, c = Ts[0].shape
    rp, cp = _pad8(r), _pad8(c)
    return jnp.concatenate([pad_to(t, rp, cp) for t in Ts], axis=0)   # (K*rp, cp)


def pack_cheb_w3(w, batch):
    """(K, Cin, Cout) ChebConv weights -> (K, B*Cin, B*Cout) kron(I_B, W_k) for the lane-folded layout."""
    eye_b = jnp.eye(batch, dtype=jnp.float32)
    return jnp.stack([jnp.kron(eye_b, w[k]) for k in range(w.shape[0])])


def tile_bias(b, batch):
    return jnp.tile(b, (1, batch))                                    # (1, B*Cout)


def pack_latent_enc(enc_w, enc_b, mean_w, mean_b, logvar_w, logvar_b, V, C, B, L):
    """Fuse encoder_fc -> [mean_fc | log_var_fc] (no nonlinearity between) into one weight, then fold
    it per-vertex into the lane-folded layout: wlat[v] maps row v of the (V, B*C) activations to a
    (1, 2*B*L) row [means (b,f) | log_vars (b,f)]."""
    head_w = jnp.concatenate([mean_w, logvar_w], axis=1)              # (2L, 2L)
    head_b = jnp.concatenate([mean_b, logvar_b], axis=1)              # (1, 2L)
    w_lat = enc_w @ head_w                                            # (V*C, 2L)
    b_lat = enc_b @ head_w + head_b                                   # (1, 2L)
    eye_b = jnp.eye(B, dtype=jnp.float32)
    per_v = []
    for v in range(V):
        blk = w_lat[v * C:(v + 1) * C, :]                             # (C, 2L)
        per_v.append(jnp.concatenate([jnp.kron(eye_b, blk[:, :L]),
                                      jnp.kron(eye_b, blk[:, L:])], axis=1))   # (B*C, 2*B*L)
    wlat = jnp.stack(per_v)                                           # (V, B*C, 2*B*L)
    blat = jnp.concatenate([jnp.tile(b_lat[:, :L], (1, B)),
                            jnp.tile(b_lat[:, L:], (1, B))], axis=1)  # (1, 2*B*L)
    return wlat, blat


def pack_latent_dec(dec_w, dec_b, V, C, B, L):
    """Fold decoder_fc into per-vertex lane-folded weights: z (1, B*L) @ wdec[v] -> row v of (V, B*C)."""
    eye_b = jnp.eye(B, dtype=jnp.float32)
    wdec = jnp.stack([jnp.kron(eye_b, dec_w[:, v * C:(v + 1) * C]) for v in range(V)])   # (V, B*L, B*C)
    bdec = jnp.concatenate([jnp.tile(dec_b[:, v * C:(v + 1) * C], (1, B)) for v in range(V)],
                           axis=0)                                                        # (V, B*C)
    return wdec, bdec


# ---------------------------------------------------------------------------
# Forward pass of VariationalAutoEncoder (is_loss=False -> returns pred only)
# ---------------------------------------------------------------------------
if __name__ == "__main__":
    key = jax.random.PRNGKey(0)
    keys = iter(jax.random.split(key, 64))

    B = 2
    feature_channels = 3
    latent = 8
    enc_k = dec_k = 6
    lambda_max = 2.3
    filters = [feature_channels, 16, 16, 16, 32, 32]
    V = [32, 24, 16, 12, 8]          # vertex counts per mesh level (level 0 = input mesh)
    assert GCN_CNT == len(filters) - 2

    # graph structure / transforms
    adj = [ring_adj(V[j]) for j in range(GCN_CNT)]
    lhat = [cheb_lhat(adj[j], lambda_max) for j in range(GCN_CNT)]   # convs called with lambda_max=2.3
    lhat_recon = cheb_lhat(adj[0], 2.0)                              # recon_conv uses PyG default lambda_max=2.0
    down_T = [make_transform(next(keys), V[j + 1], V[j]) for j in range(GCN_CNT)]
    up_T = [make_transform(next(keys), V[j], V[j + 1]) for j in range(GCN_CNT)]

    # ---- Precomputed stacked Chebyshev operators (pooling folded in where adjacent) ----
    enc_S = [stack_cheb_op(lhat[0], enc_k)]
    for i in range(1, GCN_CNT):
        enc_S.append(stack_cheb_op(lhat[i], enc_k, right=down_T[i - 1]))   # T_k(L_i) @ D_{i-1}
    down_last = pad_to(down_T[GCN_CNT - 1], _pad8(V[GCN_CNT]), _pad8(V[GCN_CNT - 1]))
    dec_S = [stack_cheb_op(lhat[GCN_CNT - 1 - i], dec_k, right=up_T[GCN_CNT - 1 - i])
             for i in range(GCN_CNT)]                                      # T_k(L_l) @ U_l
    rec_S = stack_cheb_op(lhat_recon, dec_k)

    # ---- Conv / FC parameters ----
    enc_conv = [make_cheb_params(next(keys), filters[i], filters[i + 1], enc_k) for i in range(GCN_CNT)]
    enc_fc = make_linear_params(next(keys), V[-1] * filters[-1], latent * 2)
    mean_fc = make_linear_params(next(keys), latent * 2, latent)
    logvar_fc = make_linear_params(next(keys), latent * 2, latent)
    dec_fc = make_linear_params(next(keys), latent, V[-1] * filters[-1])
    dec_conv = [make_cheb_params(next(keys), filters[-i - 1], filters[-i - 2], dec_k) for i in range(GCN_CNT)]
    recon_conv = make_cheb_params(next(keys), filters[1], filters[0], dec_k)

    wlat, blat = pack_latent_enc(enc_fc[0], enc_fc[1], mean_fc[0], mean_fc[1],
                                 logvar_fc[0], logvar_fc[1], V[-1], filters[-1], B, latent)
    wdec, bdec = pack_latent_dec(dec_fc[0], dec_fc[1], V[-1], filters[-1], B, latent)

    # ---- Flat kernel-ready weight list (order must match _vae_kernel unpacking) ----
    bf16 = jnp.bfloat16
    flat_w = []
    flat_w += [s.astype(bf16) for s in enc_S]
    flat_w += [pack_cheb_w3(w, B).astype(bf16) for w, _ in enc_conv]
    flat_w += [tile_bias(b, B) for _, b in enc_conv]
    flat_w += [down_last.astype(bf16)]
    flat_w += [wlat.astype(bf16), blat]
    flat_w += [wdec.astype(bf16), bdec]
    flat_w += [s.astype(bf16) for s in dec_S]
    flat_w += [pack_cheb_w3(w, B).astype(bf16) for w, _ in dec_conv]
    flat_w += [tile_bias(b, B) for _, b in dec_conv]
    flat_w += [rec_S.astype(bf16), pack_cheb_w3(recon_conv[0], B).astype(bf16),
               tile_bias(recon_conv[1], B)]

    x = jax.random.normal(next(keys), (B, V[0], feature_channels), jnp.float32)
    eps = jax.random.normal(next(keys), (B, latent), jnp.float32)   # stand-in for torch.randn_like

    # TODO(synk): BatchNorm1d running-statistics update (module state) is not modeled; training-mode
    #             batch statistics are used for normalization, matching a default train-mode forward.
    # TODO(synk): a grid=(B,) "parallel" split for v7x's second TensorCore is not exposed because the
    #             cross-batch BatchNorm statistics would require a cross-core reduction.

    @jax.jit
    def forward(x, eps):
        if x.shape[-1] != filters[0]:
            raise Exception("(batch_size, vertex_cnt, 3) expected")
        return vae_forward(x, eps, flat_w)

    pred = jax.block_until_ready(forward(x, eps))

    assert pred.shape == (B, V[0], feature_channels), pred.shape
    assert bool(jnp.all(jnp.isfinite(pred)))
    print("KERNEL_OK")
</pallas_src>

<mosaic_0001>
module attributes {stable_mosaic.version = 11 : i64} {
  func.func @_vae_kernel(%arg0: memref<32x6xf32, #tpu.memory_space<vmem>>, %arg1: memref<1x16xf32, #tpu.memory_space<vmem>>, %arg2: memref<192x32xbf16, #tpu.memory_space<vmem>>, %arg3: memref<144x32xbf16, #tpu.memory_space<vmem>>, %arg4: memref<96x24xbf16, #tpu.memory_space<vmem>>, %arg5: memref<96x16xbf16, #tpu.memory_space<vmem>>, %arg6: memref<6x6x32xbf16, #tpu.memory_space<vmem>>, %arg7: memref<6x32x32xbf16, #tpu.memory_space<vmem>>, %arg8: memref<6x32x32xbf16, #tpu.memory_space<vmem>>, %arg9: memref<6x32x64xbf16, #tpu.memory_space<vmem>>, %arg10: memref<1x32xf32, #tpu.memory_space<vmem>>, %arg11: memref<1x32xf32, #tpu.memory_space<vmem>>, %arg12: memref<1x32xf32, #tpu.memory_space<vmem>>, %arg13: memref<1x64xf32, #tpu.memory_space<vmem>>, %arg14: memref<8x16xbf16, #tpu.memory_space<vmem>>, %arg15: memref<8x64x32xbf16, #tpu.memory_space<vmem>>, %arg16: memref<1x32xf32, #tpu.memory_space<vmem>>, %arg17: memref<8x16x64xbf16, #tpu.memory_space<vmem>>, %arg18: memref<8x64xf32, #tpu.memory_space<vmem>>, %arg19: memref<96x8xbf16, #tpu.memory_space<vmem>>, %arg20: memref<96x16xbf16, #tpu.memory_space<vmem>>, %arg21: memref<144x16xbf16, #tpu.memory_space<vmem>>, %arg22: memref<192x24xbf16, #tpu.memory_space<vmem>>, %arg23: memref<6x64x64xbf16, #tpu.memory_space<vmem>>, %arg24: memref<6x64x32xbf16, #tpu.memory_space<vmem>>, %arg25: memref<6x32x32xbf16, #tpu.memory_space<vmem>>, %arg26: memref<6x32x32xbf16, #tpu.memory_space<vmem>>, %arg27: memref<1x64xf32, #tpu.memory_space<vmem>>, %arg28: memref<1x32xf32, #tpu.memory_space<vmem>>, %arg29: memref<1x32xf32, #tpu.memory_space<vmem>>, %arg30: memref<1x32xf32, #tpu.memory_space<vmem>>, %arg31: memref<192x32xbf16, #tpu.memory_space<vmem>>, %arg32: memref<6x32x6xbf16, #tpu.memory_space<vmem>>, %arg33: memref<1x6xf32, #tpu.memory_space<vmem>>, %arg34: memref<32x6xf32, #tpu.memory_space<vmem>>) attributes {dimension_semantics = [], scalar_prefetch = 0 : i64, scratch_operands = 0 : i64, tpu.core_type = #tpu.core_type<tc>} {
    %c0 = arith.constant 0 : index
    %c0_0 = arith.constant 0 : index
    %0 = vector.load %arg0[%c0, %c0_0] : memref<32x6xf32, #tpu.memory_space<vmem>>, vector<32x6xf32>
    %c0_1 = arith.constant 0 : index
    %c0_2 = arith.constant 0 : index
    %1 = vector.load %arg2[%c0_1, %c0_2] : memref<192x32xbf16, #tpu.memory_space<vmem>>, vector<192x32xbf16>
    %2 = arith.truncf %0 : vector<32x6xf32> to vector<32x6xbf16>
    %cst = arith.constant dense<0.000000e+00> : vector<192x6xf32>
    %3 = tpu.matmul %1, %2, %cst {dimension_numbers = #tpu.dot_dimension_numbers<[1], [0], [0], [1], [0, 0, 1, 1], [], []>} : vector<192x32xbf16>, vector<32x6xbf16>, vector<192x6xf32> -> vector<192x6xf32>
    %4 = vector.extract_strided_slice %3 {offsets = [0, 0], sizes = [32, 6], strides = [1, 1]} : vector<192x6xf32> to vector<32x6xf32>
    %c0_3 = arith.constant 0 : index
    %c0_4 = arith.constant 0 : index
    %c0_5 = arith.constant 0 : index
    %5 = vector.load %arg6[%c0_3, %c0_4, %c0_5] : memref<6x6x32xbf16, #tpu.memory_space<vmem>>, vector<1x6x32xbf16>
    %6 = vector.shape_cast %5 : vector<1x6x32xbf16> to vector<6x32xbf16>
    %7 = arith.truncf %4 : vector<32x6xf32> to vector<32x6xbf16>
    %cst_6 = arith.constant dense<0.000000e+00> : vector<32x32xf32>
    %8 = tpu.matmul %7, %6, %cst_6 {dimension_numbers = #tpu.dot_dimension_numbers<[1], [0], [0], [1], [0, 0, 1, 1], [], []>} : vector<32x6xbf16>, vector<6x32xbf16>, vector<32x32xf32> -> vector<32x32xf32>
    %9 = vector.extract_strided_slice %3 {offsets = [32, 0], sizes = [32, 6], strides = [1, 1]} : vector<192x6xf32> to vector<32x6xf32>
    %c1 = arith.constant 1 : index
    %c0_7 = arith.constant 0 : index
    %c0_8 = arith.constant 0 : index
    %10 = vector.load %arg6[%c1, %c0_7, %c0_8] : memref<6x6x32xbf16, #tpu.memory_space<vmem>>, vector<1x6x32xbf16>
    %11 = vector.shape_cast %10 : vector<1x6x32xbf16> to vector<6x32xbf16>
    %12 = arith.truncf %9 : vector<32x6xf32> to vector<32x6xbf16>
    %cst_9 = arith.constant dense<0.000000e+00> : vector<32x32xf32>
    %13 = tpu.matmul %12, %11, %cst_9 {dimension_numbers = #tpu.dot_dimension_numbers<[1], [0], [0], [1], [0, 0, 1, 1], [], []>} : vector<32x6xbf16>, vector<6x32xbf16>, vector<32x32xf32> -> vector<32x32xf32>
    %14 = arith.addf %8, %13 : vector<32x32xf32>
    %15 = vector.extract_strided_slice %3 {offsets = [64, 0], sizes = [32, 6], strides = [1, 1]} : vector<192x6xf32> to vector<32x6xf32>
    %c2 = arith.constant 2 : index
    %c0_10 = arith.constant 0 : index
    %c0_11 = arith.constant 0 : index
    %16 = vector.load %arg6[%c2, %c0_10, %c0_11] : memref<6x6x32xbf16, #tpu.memory_space<vmem>>, vector<1x6x32xbf16>
    %17 = vector.shape_cast %16 : vector<1x6x32xbf16> to vector<6x32xbf16>
    %18 = arith.truncf %15 : vector<32x6xf32> to vector<32x6xbf16>
    %cst_12 = arith.constant dense<0.000000e+00> : vector<32x32xf32>
    %19 = tpu.matmul %18, %17, %cst_12 {dimension_numbers = #tpu.dot_dimension_numbers<[1], [0], [0], [1], [0, 0, 1, 1], [], []>} : vector<32x6xbf16>, vector<6x32xbf16>, vector<32x32xf32> -> vector<32x32xf32>
    %20 = arith.addf %14, %19 : vector<32x32xf32>
    %21 = vector.extract_strided_slice %3 {offsets = [96, 0], sizes = [32, 6], strides = [1, 1]} : vector<192x6xf32> to vector<32x6xf32>
    %c3 = arith.constant 3 : index
    %c0_13 = arith.constant 0 : index
    %c0_14 = arith.constant 0 : index
    %22 = vector.load %arg6[%c3, %c0_13, %c0_14] : memref<6x6x32xbf16, #tpu.memory_space<vmem>>, vector<1x6x32xbf16>
    %23 = vector.shape_cast %22 : vector<1x6x32xbf16> to vector<6x32xbf16>
    %24 = arith.truncf %21 : vector<32x6xf32> to vector<32x6xbf16>
    %cst_15 = arith.constant dense<0.000000e+00> : vector<32x32xf32>
    %25 = tpu.matmul %24, %23, %cst_15 {dimension_numbers = #tpu.dot_dimension_numbers<[1], [0], [0], [1], [0, 0, 1, 1], [], []>} : vector<32x6xbf16>, vector<6x32xbf16>, vector<32x32xf32> -> vector<32x32xf32>
    %26 = arith.addf %20, %25 : vector<32x32xf32>
    %27 = vector.extract_strided_slice %3 {offsets = [128, 0], sizes = [32, 6], strides = [1, 1]} : vector<192x6xf32> to vector<32x6xf32>
    %c4 = arith.constant 4 : index
    %c0_16 = arith.constant 0 : index
    %c0_17 = arith.constant 0 : index
    %28 = vector.load %arg6[%c4, %c0_16, %c0_17] : memref<6x6x32xbf16, #tpu.memory_space<vmem>>, vector<1x6x32xbf16>
    %29 = vector.shape_cast %28 : vector<1x6x32xbf16> to vector<6x32xbf16>
    %30 = arith.truncf %27 : vector<32x6xf32> to vector<32x6xbf16>
    %cst_18 = arith.constant dense<0.000000e+00> : vector<32x32xf32>
    %31 = tpu.matmul %30, %29, %cst_18 {dimension_numbers = #tpu.dot_dimension_numbers<[1], [0], [0], [1], [0, 0, 1, 1], [], []>} : vector<32x6xbf16>, vector<6x32xbf16>, vector<32x32xf32> -> vector<32x32xf32>
    %32 = arith.addf %26, %31 : vector<32x32xf32>
    %33 = vector.extract_strided_slice %3 {offsets = [160, 0], sizes = [32, 6], strides = [1, 1]} : vector<192x6xf32> to vector<32x6xf32>
    %c5 = arith.constant 5 : index
    %c0_19 = arith.constant 0 : index
    %c0_20 = arith.constant 0 : index
    %34 = vector.load %arg6[%c5, %c0_19, %c0_20] : memref<6x6x32xbf16, #tpu.memory_space<vmem>>, vector<1x6x32xbf16>
    %35 = vector.shape_cast %34 : vector<1x6x32xbf16> to vector<6x32xbf16>
    %36 = arith.truncf %33 : vector<32x6xf32> to vector<32x6xbf16>
    %cst_21 = arith.constant dense<0.000000e+00> : vector<32x32xf32>
    %37 = tpu.matmul %36, %35, %cst_21 {dimension_numbers = #tpu.dot_dimension_numbers<[1], [0], [0], [1], [0, 0, 1, 1], [], []>} : vector<32x6xbf16>, vector<6x32xbf16>, vector<32x32xf32> -> vector<32x32xf32>
    %38 = arith.addf %32, %37 : vector<32x32xf32>
    %c0_22 = arith.constant 0 : index
    %c0_23 = arith.constant 0 : index
    %39 = vector.load %arg10[%c0_22, %c0_23] : memref<1x32xf32, #tpu.memory_space<vmem>>, vector<1x32xf32>
    %40 = vector.broadcast %39 : vector<1x32xf32> to vector<32x32xf32>
    %41 = arith.addf %38, %40 : vector<32x32xf32>
    %cst_24 = arith.constant dense<0.000000e+00> : vector<32xf32>
    %42 = vector.multi_reduction <add>, %41, %cst_24 [1] : vector<32x32xf32> to vector<32xf32>
    %43 = vector.shape_cast %42 : vector<32xf32> to vector<32x1xf32>
    %cst_25 = arith.constant 3.200000e+01 : f32
    %44 = vector.broadcast %cst_25 : f32 to vector<32x1xf32>
    %45 = arith.divf %43, %44 : vector<32x1xf32>
    %46 = vector.broadcast %45 : vector<32x1xf32> to vector<32x32xf32>
    %47 = arith.subf %41, %46 : vector<32x32xf32>
    %48 = arith.mulf %47, %47 : vector<32x32xf32>
    %cst_26 = arith.constant dense<0.000000e+00> : vector<32xf32>
    %49 = vector.multi_reduction <add>, %48, %cst_26 [1] : vector<32x32xf32> to vector<32xf32>
    %50 = vector.shape_cast %49 : vector<32xf32> to vector<32x1xf32>
    %cst_27 = arith.constant 3.200000e+01 : f32
    %51 = vector.broadcast %cst_27 : f32 to vector<32x1xf32>
    %52 = arith.divf %50, %51 : vector<32x1xf32>
    %cst_28 = arith.constant 9.99999974E-6 : f32
    %53 = vector.broadcast %cst_28 : f32 to vector<32x1xf32>
    %54 = arith.addf %52, %53 : vector<32x1xf32>
    %55 = math.rsqrt %54 : vector<32x1xf32>
    %56 = vector.broadcast %55 : vector<32x1xf32> to vector<32x32xf32>
    %57 = arith.mulf %47, %56 : vector<32x32xf32>
    %cst_29 = arith.constant 0.000000e+00 : f32
    %58 = vector.broadcast %cst_29 : f32 to vector<32x32xf32>
    %59 = arith.cmpf ogt, %57, %58 : vector<32x32xf32>
    %cst_30 = arith.constant 0.000000e+00 : f32
    %60 = vector.broadcast %cst_30 : f32 to vector<32x32xf32>
    %61 = arith.minimumf %57, %60 : vector<32x32xf32>
    %62 = math.exp %61 : vector<32x32xf32>
    %cst_31 = arith.constant 1.000000e+00 : f32
    %63 = vector.broadcast %cst_31 : f32 to vector<32x32xf32>
    %64 = arith.subf %62, %63 : vector<32x32xf32>
    %65 = arith.select %59, %57, %64 : vector<32x32xi1>, vector<32x32xf32>
    %c0_32 = arith.constant 0 : index
    %c0_33 = arith.constant 0 : index
    %66 = vector.load %arg3[%c0_32, %c0_33] : memref<144x32xbf16, #tpu.memory_space<vmem>>, vector<144x32xbf16>
    %67 = arith.truncf %65 : vector<32x32xf32> to vector<32x32xbf16>
    %cst_34 = arith.constant dense<0.000000e+00> : vector<144x32xf32>
    %68 = tpu.matmul %66, %67, %cst_34 {dimension_numbers = #tpu.dot_dimension_numbers<[1], [0], [0], [1], [0, 0, 1, 1], [], []>} : vector<144x32xbf16>, vector<32x32xbf16>, vector<144x32xf32> -> vector<144x32xf32>
    %69 = vector.extract_strided_slice %68 {offsets = [0, 0], sizes = [24, 32], strides = [1, 1]} : vector<144x32xf32> to vector<24x32xf32>
    %c0_35 = arith.constant 0 : index
    %c0_36 = arith.constant 0 : index
    %c0_37 = arith.constant 0 : index
    %70 = vector.load %arg7[%c0_35, %c0_36, %c0_37] : memref<6x32x32xbf16, #tpu.memory_space<vmem>>, vector<1x32x32xbf16>
    %71 = vector.shape_cast %70 : vector<1x32x32xbf16> to vector<32x32xbf16>
    %72 = arith.truncf %69 : vector<24x32xf32> to vector<24x32xbf16>
    %cst_38 = arith.constant dense<0.000000e+00> : vector<24x32xf32>
    %73 = tpu.matmul %72, %71, %cst_38 {dimension_numbers = #tpu.dot_dimension_numbers<[1], [0], [0], [1], [0, 0, 1, 1], [], []>} : vector<24x32xbf16>, vector<32x32xbf16>, vector<24x32xf32> -> vector<24x32xf32>
    %74 = vector.extract_strided_slice %68 {offsets = [24, 0], sizes = [24, 32], strides = [1, 1]} : vector<144x32xf32> to vector<24x32xf32>
    %c1_39 = arith.constant 1 : index
    %c0_40 = arith.constant 0 : index
    %c0_41 = arith.constant 0 : index
    %75 = vector.load %arg7[%c1_39, %c0_40, %c0_41] : memref<6x32x32xbf16, #tpu.memory_space<vmem>>, vector<1x32x32xbf16>
    %76 = vector.shape_cast %75 : vector<1x32x32xbf16> to vector<32x32xbf16>
    %77 = arith.truncf %74 : vector<24x32xf32> to vector<24x32xbf16>
    %cst_42 = arith.constant dense<0.000000e+00> : vector<24x32xf32>
    %78 = tpu.matmul %77, %76, %cst_42 {dimension_numbers = #tpu.dot_dimension_numbers<[1], [0], [0], [1], [0, 0, 1, 1], [], []>} : vector<24x32xbf16>, vector<32x32xbf16>, vector<24x32xf32> -> vector<24x32xf32>
    %79 = arith.addf %73, %78 : vector<24x32xf32>
    %80 = vector.extract_strided_slice %68 {offsets = [48, 0], sizes = [24, 32], strides = [1, 1]} : vector<144x32xf32> to vector<24x32xf32>
    %c2_43 = arith.constant 2 : index
    %c0_44 = arith.constant 0 : index
    %c0_45 = arith.constant 0 : index
    %81 = vector.load %arg7[%c2_43, %c0_44, %c0_45] : memref<6x32x32xbf16, #tpu.memory_space<vmem>>, vector<1x32x32xbf16>
    %82 = vector.shape_cast %81 : vector<1x32x32xbf16> to vector<32x32xbf16>
    %83 = arith.truncf %80 : vector<24x32xf32> to vector<24x32xbf16>
    %cst_46 = arith.constant dense<0.000000e+00> : vector<24x32xf32>
    %84 = tpu.matmul %83, %82, %cst_46 {dimension_numbers = #tpu.dot_dimension_numbers<[1], [0], [0], [1], [0, 0, 1, 1], [], []>} : vector<24x32xbf16>, vector<32x32xbf16>, vector<24x32xf32> -> vector<24x32xf32>
    %85 = arith.addf %79, %84 : vector<24x32xf32>
    %86 = vector.extract_strided_slice %68 {offsets = [72, 0], sizes = [24, 32], strides = [1, 1]} : vector<144x32xf32> to vector<24x32xf32>
    %c3_47 = arith.constant 3 : index
    %c0_48 = arith.constant 0 : index
    %c0_49 = arith.constant 0 : index
    %87 = vector.load %arg7[%c3_47, %c0_48, %c0_49] : memref<6x32x32xbf16, #tpu.memory_space<vmem>>, vector<1x32x32xbf16>
    %88 = vector.shape_cast %87 : vector<1x32x32xbf16> to vector<32x32xbf16>
    %89 = arith.truncf %86 : vector<24x32xf32> to vector<24x32xbf16>
    %cst_50 = arith.constant dense<0.000000e+00> : vector<24x32xf32>
    %90 = tpu.matmul %89, %88, %cst_50 {dimension_numbers = #tpu.dot_dimension_numbers<[1], [0], [0], [1], [0, 0, 1, 1], [], []>} : vector<24x32xbf16>, vector<32x32xbf16>, vector<24x32xf32> -> vector<24x32xf32>
    %91 = arith.addf %85, %90 : vector<24x32xf32>
    %92 = vector.extract_strided_slice %68 {offsets = [96, 0], sizes = [24, 32], strides = [1, 1]} : vector<144x32xf32> to vector<24x32xf32>
    %c4_51 = arith.constant 4 : index
    %c0_52 = arith.constant 0 : index
    %c0_53 = arith.constant 0 : index
    %93 = vector.load %arg7[%c4_51, %c0_52, %c0_53] : memref<6x32x32xbf16, #tpu.memory_space<vmem>>, vector<1x32x32xbf16>
    %94 = vector.shape_cast %93 : vector<1x32x32xbf16> to vector<32x32xbf16>
    %95 = arith.truncf %92 : vector<24x32xf32> to vector<24x32xbf16>
    %cst_54 = arith.constant dense<0.000000e+00> : vector<24x32xf32>
    %96 = tpu.matmul %95, %94, %cst_54 {dimension_numbers = #tpu.dot_dimension_numbers<[1], [0], [0], [1], [0, 0, 1, 1], [], []>} : vector<24x32xbf16>, vector<32x32xbf16>, vector<24x32xf32> -> vector<24x32xf32>
    %97 = arith.addf %91, %96 : vector<24x32xf32>
    %98 = vector.extract_strided_slice %68 {offsets = [120, 0], sizes = [24, 32], strides = [1, 1]} : vector<144x32xf32> to vector<24x32xf32>
    %c5_55 = arith.constant 5 : index
    %c0_56 = arith.constant 0 : index
    %c0_57 = arith.constant 0 : index
    %99 = vector.load %arg7[%c5_55, %c0_56, %c0_57] : memref<6x32x32xbf16, #tpu.memory_space<vmem>>, vector<1x32x32xbf16>
    %100 = vector.shape_cast %99 : vector<1x32x32xbf16> to vector<32x32xbf16>
    %101 = arith.truncf %98 : vector<24x32xf32> to vector<24x32xbf16>
    %cst_58 = arith.constant dense<0.000000e+00> : vector<24x32xf32>
    %102 = tpu.matmul %101, %100, %cst_58 {dimension_numbers = #tpu.dot_dimension_numbers<[1], [0], [0], [1], [0, 0, 1, 1], [], []>} : vector<24x32xbf16>, vector<32x32xbf16>, vector<24x32xf32> -> vector<24x32xf32>
    %103 = arith.addf %97, %102 : vector<24x32xf32>
    %c0_59 = arith.constant 0 : index
    %c0_60 = arith.constant 0 : index
    %104 = vector.load %arg11[%c0_59, %c0_60] : memref<1x32xf32, #tpu.memory_space<vmem>>, vector<1x32xf32>
    %105 = vector.broadcast %104 : vector<1x32xf32> to vector<24x32xf32>
    %106 = arith.addf %103, %105 : vector<24x32xf32>
    %cst_61 = arith.constant dense<0.000000e+00> : vector<24xf32>
    %107 = vector.multi_reduction <add>, %106, %cst_61 [1] : vector<24x32xf32> to vector<24xf32>
    %108 = vector.shape_cast %107 : vector<24xf32> to vector<24x1xf32>
    %cst_62 = arith.constant 3.200000e+01 : f32
    %109 = vector.broadcast %cst_62 : f32 to vector<24x1xf32>
    %110 = arith.divf %108, %109 : vector<24x1xf32>
    %111 = vector.broadcast %110 : vector<24x1xf32> to vector<24x32xf32>
    %112 = arith.subf %106, %111 : vector<24x32xf32>
    %113 = arith.mulf %112, %112 : vector<24x32xf32>
    %cst_63 = arith.constant dense<0.000000e+00> : vector<24xf32>
    %114 = vector.multi_reduction <add>, %113, %cst_63 [1] : vector<24x32xf32> to vector<24xf32>
    %115 = vector.shape_cast %114 : vector<24xf32> to vector<24x1xf32>
    %cst_64 = arith.constant 3.200000e+01 : f32
    %116 = vector.broadcast %cst_64 : f32 to vector<24x1xf32>
    %117 = arith.divf %115, %116 : vector<24x1xf32>
    %cst_65 = arith.constant 9.99999974E-6 : f32
    %118 = vector.broadcast %cst_65 : f32 to vector<24x1xf32>
    %119 = arith.addf %117, %118 : vector<24x1xf32>
    %120 = math.rsqrt %119 : vector<24x1xf32>
    %121 = vector.broadcast %120 : vector<24x1xf32> to vector<24x32xf32>
    %122 = arith.mulf %112, %121 : vector<24x32xf32>
    %cst_66 = arith.constant 0.000000e+00 : f32
    %123 = vector.broadcast %cst_66 : f32 to vector<24x32xf32>
    %124 = arith.cmpf ogt, %122, %123 : vector<24x32xf32>
    %cst_67 = arith.constant 0.000000e+00 : f32
    %125 = vector.broadcast %cst_67 : f32 to vector<24x32xf32>
    %126 = arith.minimumf %122, %125 : vector<24x32xf32>
    %127 = math.exp %126 : vector<24x32xf32>
    %cst_68 = arith.constant 1.000000e+00 : f32
    %128 = vector.broadcast %cst_68 : f32 to vector<24x32xf32>
    %129 = arith.subf %127, %128 : vector<24x32xf32>
    %130 = arith.select %124, %122, %129 : vector<24x32xi1>, vector<24x32xf32>
    %c0_69 = arith.constant 0 : index
    %c0_70 = arith.constant 0 : index
    %131 = vector.load %arg4[%c0_69, %c0_70] : memref<96x24xbf16, #tpu.memory_space<vmem>>, vector<96x24xbf16>
    %132 = arith.truncf %130 : vector<24x32xf32> to vector<24x32xbf16>
    %cst_71 = arith.constant dense<0.000000e+00> : vector<96x32xf32>
    %133 = tpu.matmul %131, %132, %cst_71 {dimension_numbers = #tpu.dot_dimension_numbers<[1], [0], [0], [1], [0, 0, 1, 1], [], []>} : vector<96x24xbf16>, vector<24x32xbf16>, vector<96x32xf32> -> vector<96x32xf32>
    %134 = vector.extract_strided_slice %133 {offsets = [0, 0], sizes = [16, 32], strides = [1, 1]} : vector<96x32xf32> to vector<16x32xf32>
    %c0_72 = arith.constant 0 : index
    %c0_73 = arith.constant 0 : index
    %c0_74 = arith.constant 0 : index
    %135 = vector.load %arg8[%c0_72, %c0_73, %c0_74] : memref<6x32x32xbf16, #tpu.memory_space<vmem>>, vector<1x32x32xbf16>
    %136 = vector.shape_cast %135 : vector<1x32x32xbf16> to vector<32x32xbf16>
    %137 = arith.truncf %134 : vector<16x32xf32> to vector<16x32xbf16>
    %cst_75 = arith.constant dense<0.000000e+00> : vector<16x32xf32>
    %138 = tpu.matmul %137, %136, %cst_75 {dimension_numbers = #tpu.dot_dimension_numbers<[1], [0], [0], [1], [0, 0, 1, 1], [], []>} : vector<16x32xbf16>, vector<32x32xbf16>, vector<16x32xf32> -> vector<16x32xf32>
    %139 = vector.extract_strided_slice %133 {offsets = [16, 0], sizes = [16, 32], strides = [1, 1]} : vector<96x32xf32> to vector<16x32xf32>
    %c1_76 = arith.constant 1 : index
    %c0_77 = arith.constant 0 : index
    %c0_78 = arith.constant 0 : index
    %140 = vector.load %arg8[%c1_76, %c0_77, %c0_78] : memref<6x32x32xbf16, #tpu.memory_space<vmem>>, vector<1x32x32xbf16>
    %141 = vector.shape_cast %140 : vector<1x32x32xbf16> to vector<32x32xbf16>
    %142 = arith.truncf %139 : vector<16x32xf32> to vector<16x32xbf16>
    %cst_79 = arith.constant dense<0.000000e+00> : vector<16x32xf32>
    %143 = tpu.matmul %142, %141, %cst_79 {dimension_numbers = #tpu.dot_dimension_numbers<[1], [0], [0], [1], [0, 0, 1, 1], [], []>} : vector<16x32xbf16>, vector<32x32xbf16>, vector<16x32xf32> -> vector<16x32xf32>
    %144 = arith.addf %138, %143 : vector<16x32xf32>
    %145 = vector.extract_strided_slice %133 {offsets = [32, 0], sizes = [16, 32], strides = [1, 1]} : vector<96x32xf32> to vector<16x32xf32>
    %c2_80 = arith.constant 2 : index
    %c0_81 = arith.constant 0 : index
    %c0_82 = arith.constant 0 : index
    %146 = vector.load %arg8[%c2_80, %c0_81, %c0_82] : memref<6x32x32xbf16, #tpu.memory_space<vmem>>, vector<1x32x32xbf16>
    %147 = vector.shape_cast %146 : vector<1x32x32xbf16> to vector<32x32xbf16>
    %148 = arith.truncf %145 : vector<16x32xf32> to vector<16x32xbf16>
    %cst_83 = arith.constant dense<0.000000e+00> : vector<16x32xf32>
    %149 = tpu.matmul %148, %147, %cst_83 {dimension_numbers = #tpu.dot_dimension_numbers<[1], [0], [0], [1], [0, 0, 1, 1], [], []>} : vector<16x32xbf16>, vector<32x32xbf16>, vector<16x32xf32> -> vector<16x32xf32>
    %150 = arith.addf %144, %149 : vector<16x32xf32>
    %151 = vector.extract_strided_slice %133 {offsets = [48, 0], sizes = [16, 32], strides = [1, 1]} : vector<96x32xf32> to vector<16x32xf32>
    %c3_84 = arith.constant 3 : index
    %c0_85 = arith.constant 0 : index
    %c0_86 = arith.constant 0 : index
    %152 = vector.load %arg8[%c3_84, %c0_85, %c0_86] : memref<6x32x32xbf16, #tpu.memory_space<vmem>>, vector<1x32x32xbf16>
    %153 = vector.shape_cast %152 : vector<1x32x32xbf16> to vector<32x32xbf16>
    %154 = arith.truncf %151 : vector<16x32xf32> to vector<16x32xbf16>
    %cst_87 = arith.constant dense<0.000000e+00> : vector<16x32xf32>
    %155 = tpu.matmul %154, %153, %cst_87 {dimension_numbers = #tpu.dot_dimension_numbers<[1], [0], [0], [1], [0, 0, 1, 1], [], []>} : vector<16x32xbf16>, vector<32x32xbf16>, vector<16x32xf32> -> vector<16x32xf32>
    %156 = arith.addf %150, %155 : vector<16x32xf32>
    %157 = vector.extract_strided_slice %133 {offsets = [64, 0], sizes = [16, 32], strides = [1, 1]} : vector<96x32xf32> to vector<16x32xf32>
    %c4_88 = arith.constant 4 : index
    %c0_89 = arith.constant 0 : index
    %c0_90 = arith.constant 0 : index
    %158 = vector.load %arg8[%c4_88, %c0_89, %c0_90] : memref<6x32x32xbf16, #tpu.memory_space<vmem>>, vector<1x32x32xbf16>
    %159 = vector.shape_cast %158 : vector<1x32x32xbf16> to vector<32x32xbf16>
    %160 = arith.truncf %157 : vector<16x32xf32> to vector<16x32xbf16>
    %cst_91 = arith.constant dense<0.000000e+00> : vector<16x32xf32>
    %161 = tpu.matmul %160, %159, %cst_91 {dimension_numbers = #tpu.dot_dimension_numbers<[1], [0], [0], [1], [0, 0, 1, 1], [], []>} : vector<16x32xbf16>, vector<32x32xbf16>, vector<16x32xf32> -> vector<16x32xf32>
    %162 = arith.addf %156, %161 : vector<16x32xf32>
    %163 = vector.extract_strided_slice %133 {offsets = [80, 0], sizes = [16, 32], strides = [1, 1]} : vector<96x32xf32> to vector<16x32xf32>
    %c5_92 = arith.constant 5 : index
    %c0_93 = arith.constant 0 : index
    %c0_94 = arith.constant 0 : index
    %164 = vector.load %arg8[%c5_92, %c0_93, %c0_94] : memref<6x32x32xbf16, #tpu.memory_space<vmem>>, vector<1x32x32xbf16>
    %165 = vector.shape_cast %164 : vector<1x32x32xbf16> to vector<32x32xbf16>
    %166 = arith.truncf %163 : vector<16x32xf32> to vector<16x32xbf16>
    %cst_95 = arith.constant dense<0.000000e+00> : vector<16x32xf32>
    %167 = tpu.matmul %166, %165, %cst_95 {dimension_numbers = #tpu.dot_dimension_numbers<[1], [0], [0], [1], [0, 0, 1, 1], [], []>} : vector<16x32xbf16>, vector<32x32xbf16>, vector<16x32xf32> -> vector<16x32xf32>
    %168 = arith.addf %162, %167 : vector<16x32xf32>
    %c0_96 = arith.constant 0 : index
    %c0_97 = arith.constant 0 : index
    %169 = vector.load %arg12[%c0_96, %c0_97] : memref<1x32xf32, #tpu.memory_space<vmem>>, vector<1x32xf32>
    %170 = vector.broadcast %169 : vector<1x32xf32> to vector<16x32xf32>
    %171 = arith.addf %168, %170 : vector<16x32xf32>
    %cst_98 = arith.constant dense<0.000000e+00> : vector<16xf32>
    %172 = vector.multi_reduction <add>, %171, %cst_98 [1] : vector<16x32xf32> to vector<16xf32>
    %173 = vector.shape_cast %172 : vector<16xf32> to vector<16x1xf32>
    %cst_99 = arith.constant 3.200000e+01 : f32
    %174 = vector.broadcast %cst_99 : f32 to vector<16x1xf32>
    %175 = arith.divf %173, %174 : vector<16x1xf32>
    %176 = vector.broadcast %175 : vector<16x1xf32> to vector<16x32xf32>
    %177 = arith.subf %171, %176 : vector<16x32xf32>
    %178 = arith.mulf %177, %177 : vector<16x32xf32>
    %cst_100 = arith.constant dense<0.000000e+00> : vector<16xf32>
    %179 = vector.multi_reduction <add>, %178, %cst_100 [1] : vector<16x32xf32> to vector<16xf32>
    %180 = vector.shape_cast %179 : vector<16xf32> to vector<16x1xf32>
    %cst_101 = arith.constant 3.200000e+01 : f32
    %181 = vector.broadcast %cst_101 : f32 to vector<16x1xf32>
    %182 = arith.divf %180, %181 : vector<16x1xf32>
    %cst_102 = arith.constant 9.99999974E-6 : f32
    %183 = vector.broadcast %cst_102 : f32 to vector<16x1xf32>
    %184 = arith.addf %182, %183 : vector<16x1xf32>
    %185 = math.rsqrt %184 : vector<16x1xf32>
    %186 = vector.broadcast %185 : vector<16x1xf32> to vector<16x32xf32>
    %187 = arith.mulf %177, %186 : vector<16x32xf32>
    %cst_103 = arith.constant 0.000000e+00 : f32
    %188 = vector.broadcast %cst_103 : f32 to vector<16x32xf32>
    %189 = arith.cmpf ogt, %187, %188 : vector<16x32xf32>
    %cst_104 = arith.constant 0.000000e+00 : f32
    %190 = vector.broadcast %cst_104 : f32 to vector<16x32xf32>
    %191 = arith.minimumf %187, %190 : vector<16x32xf32>
    %192 = math.exp %191 : vector<16x32xf32>
    %cst_105 = arith.constant 1.000000e+00 : f32
    %193 = vector.broadcast %cst_105 : f32 to vector<16x32xf32>
    %194 = arith.subf %192, %193 : vector<16x32xf32>
    %195 = arith.select %189, %187, %194 : vector<16x32xi1>, vector<16x32xf32>
    %c0_106 = arith.constant 0 : index
    %c0_107 = arith.constant 0 : index
    %196 = vector.load %arg5[%c0_106, %c0_107] : memref<96x16xbf16, #tpu.memory_space<vmem>>, vector<96x16xbf16>
    %197 = arith.truncf %195 : vector<16x32xf32> to vector<16x32xbf16>
    %cst_108 = arith.constant dense<0.000000e+00> : vector<96x32xf32>
    %198 = tpu.matmul %196, %197, %cst_108 {dimension_numbers = #tpu.dot_dimension_numbers<[1], [0], [0], [1], [0, 0, 1, 1], [], []>} : vector<96x16xbf16>, vector<16x32xbf16>, vector<96x32xf32> -> vector<96x32xf32>
    %199 = vector.extract_strided_slice %198 {offsets = [0, 0], sizes = [16, 32], strides = [1, 1]} : vector<96x32xf32> to vector<16x32xf32>
    %c0_109 = arith.constant 0 : index
    %c0_110 = arith.constant 0 : index
    %c0_111 = arith.constant 0 : index
    %200 = vector.load %arg9[%c0_109, %c0_110, %c0_111] : memref<6x32x64xbf16, #tpu.memory_space<vmem>>, vector<1x32x64xbf16>
    %201 = vector.shape_cast %200 : vector<1x32x64xbf16> to vector<32x64xbf16>
    %202 = arith.truncf %199 : vector<16x32xf32> to vector<16x32xbf16>
    %cst_112 = arith.constant dense<0.000000e+00> : vector<16x64xf32>
    %203 = tpu.matmul %202, %201, %cst_112 {dimension_numbers = #tpu.dot_dimension_numbers<[1], [0], [0], [1], [0, 0, 1, 1], [], []>} : vector<16x32xbf16>, vector<32x64xbf16>, vector<16x64xf32> -> vector<16x64xf32>
    %204 = vector.extract_strided_slice %198 {offsets = [16, 0], sizes = [16, 32], strides = [1, 1]} : vector<96x32xf32> to vector<16x32xf32>
    %c1_113 = arith.constant 1 : index
    %c0_114 = arith.constant 0 : index
    %c0_115 = arith.constant 0 : index
    %205 = vector.load %arg9[%c1_113, %c0_114, %c0_115] : memref<6x32x64xbf16, #tpu.memory_space<vmem>>, vector<1x32x64xbf16>
    %206 = vector.shape_cast %205 : vector<1x32x64xbf16> to vector<32x64xbf16>
    %207 = arith.truncf %204 : vector<16x32xf32> to vector<16x32xbf16>
    %cst_116 = arith.constant dense<0.000000e+00> : vector<16x64xf32>
    %208 = tpu.matmul %207, %206, %cst_116 {dimension_numbers = #tpu.dot_dimension_numbers<[1], [0], [0], [1], [0, 0, 1, 1], [], []>} : vector<16x32xbf16>, vector<32x64xbf16>, vector<16x64xf32> -> vector<16x64xf32>
    %209 = arith.addf %203, %208 : vector<16x64xf32>
    %210 = vector.extract_strided_slice %198 {offsets = [32, 0], sizes = [16, 32], strides = [1, 1]} : vector<96x32xf32> to vector<16x32xf32>
    %c2_117 = arith.constant 2 : index
    %c0_118 = arith.constant 0 : index
    %c0_119 = arith.constant 0 : index
    %211 = vector.load %arg9[%c2_117, %c0_118, %c0_119] : memref<6x32x64xbf16, #tpu.memory_space<vmem>>, vector<1x32x64xbf16>
    %212 = vector.shape_cast %211 : vector<1x32x64xbf16> to vector<32x64xbf16>
    %213 = arith.truncf %210 : vector<16x32xf32> to vector<16x32xbf16>
    %cst_120 = arith.constant dense<0.000000e+00> : vector<16x64xf32>
    %214 = tpu.matmul %213, %212, %cst_120 {dimension_numbers = #tpu.dot_dimension_numbers<[1], [0], [0], [1], [0, 0, 1, 1], [], []>} : vector<16x32xbf16>, vector<32x64xbf16>, vector<16x64xf32> -> vector<16x64xf32>
    %215 = arith.addf %209, %214 : vector<16x64xf32>
    %216 = vector.extract_strided_slice %198 {offsets = [48, 0], sizes = [16, 32], strides = [1, 1]} : vector<96x32xf32> to vector<16x32xf32>
    %c3_121 = arith.constant 3 : index
    %c0_122 = arith.constant 0 : index
    %c0_123 = arith.constant 0 : index
    %217 = vector.load %arg9[%c3_121, %c0_122, %c0_123] : memref<6x32x64xbf16, #tpu.memory_space<vmem>>, vector<1x32x64xbf16>
    %218 = vector.shape_cast %217 : vector<1x32x64xbf16> to vector<32x64xbf16>
    %219 = arith.truncf %216 : vector<16x32xf32> to vector<16x32xbf16>
    %cst_124 = arith.constant dense<0.000000e+00> : vector<16x64xf32>
    %220 = tpu.matmul %219, %218, %cst_124 {dimension_numbers = #tpu.dot_dimension_numbers<[1], [0], [0], [1], [0, 0, 1, 1], [], []>} : vector<16x32xbf16>, vector<32x64xbf16>, vector<16x64xf32> -> vector<16x64xf32>
    %221 = arith.addf %215, %220 : vector<16x64xf32>
    %222 = vector.extract_strided_slice %198 {offsets = [64, 0], sizes = [16, 32], strides = [1, 1]} : vector<96x32xf32> to vector<16x32xf32>
    %c4_125 = arith.constant 4 : index
    %c0_126 = arith.constant 0 : index
    %c0_127 = arith.constant 0 : index
    %223 = vector.load %arg9[%c4_125, %c0_126, %c0_127] : memref<6x32x64xbf16, #tpu.memory_space<vmem>>, vector<1x32x64xbf16>
    %224 = vector.shape_cast %223 : vector<1x32x64xbf16> to vector<32x64xbf16>
    %225 = arith.truncf %222 : vector<16x32xf32> to vector<16x32xbf16>
    %cst_128 = arith.constant dense<0.000000e+00> : vector<16x64xf32>
    %226 = tpu.matmul %225, %224, %cst_128 {dimension_numbers = #tpu.dot_dimension_numbers<[1], [0], [0], [1], [0, 0, 1, 1], [], []>} : vector<16x32xbf16>, vector<32x64xbf16>, vector<16x64xf32> -> vector<16x64xf32>
    %227 = arith.addf %221, %226 : vector<16x64xf32>
    %228 = vector.extract_strided_slice %198 {offsets = [80, 0], sizes = [16, 32], strides = [1, 1]} : vector<96x32xf32> to vector<16x32xf32>
    %c5_129 = arith.constant 5 : index
    %c0_130 = arith.constant 0 : index
    %c0_131 = arith.constant 0 : index
    %229 = vector.load %arg9[%c5_129, %c0_130, %c0_131] : memref<6x32x64xbf16, #tpu.memory_space<vmem>>, vector<1x32x64xbf16>
    %230 = vector.shape_cast %229 : vector<1x32x64xbf16> to vector<32x64xbf16>
    %231 = arith.truncf %228 : vector<16x32xf32> to vector<16x32xbf16>
    %cst_132 = arith.constant dense<0.000000e+00> : vector<16x64xf32>
    %232 = tpu.matmul %231, %230, %cst_132 {dimension_numbers = #tpu.dot_dimension_numbers<[1], [0], [0], [1], [0, 0, 1, 1], [], []>} : vector<16x32xbf16>, vector<32x64xbf16>, vector<16x64xf32> -> vector<16x64xf32>
    %233 = arith.addf %227, %232 : vector<16x64xf32>
    %c0_133 = arith.constant 0 : index
    %c0_134 = arith.constant 0 : index
    %234 = vector.load %arg13[%c0_133, %c0_134] : memref<1x64xf32, #tpu.memory_space<vmem>>, vector<1x64xf32>
    %235 = vector.broadcast %234 : vector<1x64xf32> to vector<16x64xf32>
    %236 = arith.addf %233, %235 : vector<16x64xf32>
    %cst_135 = arith.constant dense<0.000000e+00> : vector<16xf32>
    %237 = vector.multi_reduction <add>, %236, %cst_135 [1] : vector<16x64xf32> to vector<16xf32>
    %238 = vector.shape_cast %237 : vector<16xf32> to vector<16x1xf32>
    %cst_136 = arith.constant 6.400000e+01 : f32
    %239 = vector.broadcast %cst_136 : f32 to vector<16x1xf32>
    %240 = arith.divf %238, %239 : vector<16x1xf32>
    %241 = vector.broadcast %240 : vector<16x1xf32> to vector<16x64xf32>
    %242 = arith.subf %236, %241 : vector<16x64xf32>
    %243 = arith.mulf %242, %242 : vector<16x64xf32>
    %cst_137 = arith.constant dense<0.000000e+00> : vector<16xf32>
    %244 = vector.multi_reduction <add>, %243, %cst_137 [1] : vector<16x64xf32> to vector<16xf32>
    %245 = vector.shape_cast %244 : vector<16xf32> to vector<16x1xf32>
    %cst_138 = arith.constant 6.400000e+01 : f32
    %246 = vector.broadcast %cst_138 : f32 to vector<16x1xf32>
    %247 = arith.divf %245, %246 : vector<16x1xf32>
    %cst_139 = arith.constant 9.99999974E-6 : f32
    %248 = vector.broadcast %cst_139 : f32 to vector<16x1xf32>
    %249 = arith.addf %247, %248 : vector<16x1xf32>
    %250 = math.rsqrt %249 : vector<16x1xf32>
    %251 = vector.broadcast %250 : vector<16x1xf32> to vector<16x64xf32>
    %252 = arith.mulf %242, %251 : vector<16x64xf32>
    %cst_140 = arith.constant 0.000000e+00 : f32
    %253 = vector.broadcast %cst_140 : f32 to vector<16x64xf32>
    %254 = arith.cmpf ogt, %252, %253 : vector<16x64xf32>
    %cst_141 = arith.constant 0.000000e+00 : f32
    %255 = vector.broadcast %cst_141 : f32 to vector<16x64xf32>
    %256 = arith.minimumf %252, %255 : vector<16x64xf32>
    %257 = math.exp %256 : vector<16x64xf32>
    %cst_142 = arith.constant 1.000000e+00 : f32
    %258 = vector.broadcast %cst_142 : f32 to vector<16x64xf32>
    %259 = arith.subf %257, %258 : vector<16x64xf32>
    %260 = arith.select %254, %252, %259 : vector<16x64xi1>, vector<16x64xf32>
    %c0_143 = arith.constant 0 : index
    %c0_144 = arith.constant 0 : index
    %261 = vector.load %arg14[%c0_143, %c0_144] : memref<8x16xbf16, #tpu.memory_space<vmem>>, vector<8x16xbf16>
    %262 = arith.truncf %260 : vector<16x64xf32> to vector<16x64xbf16>
    %cst_145 = arith.constant dense<0.000000e+00> : vector<8x64xf32>
    %263 = tpu.matmul %261, %262, %cst_145 {dimension_numbers = #tpu.dot_dimension_numbers<[1], [0], [0], [1], [0, 0, 1, 1], [], []>} : vector<8x16xbf16>, vector<16x64xbf16>, vector<8x64xf32> -> vector<8x64xf32>
    %264 = vector.extract_strided_slice %263 {offsets = [0, 0], sizes = [1, 64], strides = [1, 1]} : vector<8x64xf32> to vector<1x64xf32>
    %c0_146 = arith.constant 0 : index
    %c0_147 = arith.constant 0 : index
    %c0_148 = arith.constant 0 : index
    %265 = vector.load %arg15[%c0_146, %c0_147, %c0_148] : memref<8x64x32xbf16, #tpu.memory_space<vmem>>, vector<1x64x32xbf16>
    %266 = vector.shape_cast %265 : vector<1x64x32xbf16> to vector<64x32xbf16>
    %267 = arith.truncf %264 : vector<1x64xf32> to vector<1x64xbf16>
    %cst_149 = arith.constant dense<0.000000e+00> : vector<1x32xf32>
    %268 = tpu.matmul %267, %266, %cst_149 {dimension_numbers = #tpu.dot_dimension_numbers<[1], [0], [0], [1], [0, 0, 1, 1], [], []>} : vector<1x64xbf16>, vector<64x32xbf16>, vector<1x32xf32> -> vector<1x32xf32>
    %269 = vector.extract_strided_slice %263 {offsets = [1, 0], sizes = [1, 64], strides = [1, 1]} : vector<8x64xf32> to vector<1x64xf32>
    %c1_150 = arith.constant 1 : index
    %c0_151 = arith.constant 0 : index
    %c0_152 = arith.constant 0 : index
    %270 = vector.load %arg15[%c1_150, %c0_151, %c0_152] : memref<8x64x32xbf16, #tpu.memory_space<vmem>>, vector<1x64x32xbf16>
    %271 = vector.shape_cast %270 : vector<1x64x32xbf16> to vector<64x32xbf16>
    %272 = arith.truncf %269 : vector<1x64xf32> to vector<1x64xbf16>
    %cst_153 = arith.constant dense<0.000000e+00> : vector<1x32xf32>
    %273 = tpu.matmul %272, %271, %cst_153 {dimension_numbers = #tpu.dot_dimension_numbers<[1], [0], [0], [1], [0, 0, 1, 1], [], []>} : vector<1x64xbf16>, vector<64x32xbf16>, vector<1x32xf32> -> vector<1x32xf32>
    %274 = arith.addf %268, %273 : vector<1x32xf32>
    %275 = vector.extract_strided_slice %263 {offsets = [2, 0], sizes = [1, 64], strides = [1, 1]} : vector<8x64xf32> to vector<1x64xf32>
    %c2_154 = arith.constant 2 : index
    %c0_155 = arith.constant 0 : index
    %c0_156 = arith.constant 0 : index
    %276 = vector.load %arg15[%c2_154, %c0_155, %c0_156] : memref<8x64x32xbf16, #tpu.memory_space<vmem>>, vector<1x64x32xbf16>
    %277 = vector.shape_cast %276 : vector<1x64x32xbf16> to vector<64x32xbf16>
    %278 = arith.truncf %275 : vector<1x64xf32> to vector<1x64xbf16>
    %cst_157 = arith.constant dense<0.000000e+00> : vector<1x32xf32>
    %279 = tpu.matmul %278, %277, %cst_157 {dimension_numbers = #tpu.dot_dimension_numbers<[1], [0], [0], [1], [0, 0, 1, 1], [], []>} : vector<1x64xbf16>, vector<64x32xbf16>, vector<1x32xf32> -> vector<1x32xf32>
    %280 = arith.addf %274, %279 : vector<1x32xf32>
    %281 = vector.extract_strided_slice %263 {offsets = [3, 0], sizes = [1, 64], strides = [1, 1]} : vector<8x64xf32> to vector<1x64xf32>
    %c3_158 = arith.constant 3 : index
    %c0_159 = arith.constant 0 : index
    %c0_160 = arith.constant 0 : index
    %282 = vector.load %arg15[%c3_158, %c0_159, %c0_160] : memref<8x64x32xbf16, #tpu.memory_space<vmem>>, vector<1x64x32xbf16>
    %283 = vector.shape_cast %282 : vector<1x64x32xbf16> to vector<64x32xbf16>
    %284 = arith.truncf %281 : vector<1x64xf32> to vector<1x64xbf16>
    %cst_161 = arith.constant dense<0.000000e+00> : vector<1x32xf32>
    %285 = tpu.matmul %284, %283, %cst_161 {dimension_numbers = #tpu.dot_dimension_numbers<[1], [0], [0], [1], [0, 0, 1, 1], [], []>} : vector<1x64xbf16>, vector<64x32xbf16>, vector<1x32xf32> -> vector<1x32xf32>
    %286 = arith.addf %280, %285 : vector<1x32xf32>
    %287 = vector.extract_strided_slice %263 {offsets = [4, 0], sizes = [1, 64], strides = [1, 1]} : vector<8x64xf32> to vector<1x64xf32>
    %c4_162 = arith.constant 4 : index
    %c0_163 = arith.constant 0 : index
    %c0_164 = arith.constant 0 : index
    %288 = vector.load %arg15[%c4_162, %c0_163, %c0_164] : memref<8x64x32xbf16, #tpu.memory_space<vmem>>, vector<1x64x32xbf16>
    %289 = vector.shape_cast %288 : vector<1x64x32xbf16> to vector<64x32xbf16>
    %290 = arith.truncf %287 : vector<1x64xf32> to vector<1x64xbf16>
    %cst_165 = arith.constant dense<0.000000e+00> : vector<1x32xf32>
    %291 = tpu.matmul %290, %289, %cst_165 {dimension_numbers = #tpu.dot_dimension_numbers<[1], [0], [0], [1], [0, 0, 1, 1], [], []>} : vector<1x64xbf16>, vector<64x32xbf16>, vector<1x32xf32> -> vector<1x32xf32>
    %292 = arith.addf %286, %291 : vector<1x32xf32>
    %293 = vector.extract_strided_slice %263 {offsets = [5, 0], sizes = [1, 64], strides = [1, 1]} : vector<8x64xf32> to vector<1x64xf32>
    %c5_166 = arith.constant 5 : index
    %c0_167 = arith.constant 0 : index
    %c0_168 = arith.constant 0 : index
    %294 = vector.load %arg15[%c5_166, %c0_167, %c0_168] : memref<8x64x32xbf16, #tpu.memory_space<vmem>>, vector<1x64x32xbf16>
    %295 = vector.shape_cast %294 : vector<1x64x32xbf16> to vector<64x32xbf16>
    %296 = arith.truncf %293 : vector<1x64xf32> to vector<1x64xbf16>
    %cst_169 = arith.constant dense<0.000000e+00> : vector<1x32xf32>
    %297 = tpu.matmul %296, %295, %cst_169 {dimension_numbers = #tpu.dot_dimension_numbers<[1], [0], [0], [1], [0, 0, 1, 1], [], []>} : vector<1x64xbf16>, vector<64x32xbf16>, vector<1x32xf32> -> vector<1x32xf32>
    %298 = arith.addf %292, %297 : vector<1x32xf32>
    %299 = vector.extract_strided_slice %263 {offsets = [6, 0], sizes = [1, 64], strides = [1, 1]} : vector<8x64xf32> to vector<1x64xf32>
    %c6 = arith.constant 6 : index
    %c0_170 = arith.constant 0 : index
    %c0_171 = arith.constant 0 : index
    %300 = vector.load %arg15[%c6, %c0_170, %c0_171] : memref<8x64x32xbf16, #tpu.memory_space<vmem>>, vector<1x64x32xbf16>
    %301 = vector.shape_cast %300 : vector<1x64x32xbf16> to vector<64x32xbf16>
    %302 = arith.truncf %299 : vector<1x64xf32> to vector<1x64xbf16>
    %cst_172 = arith.constant dense<0.000000e+00> : vector<1x32xf32>
    %303 = tpu.matmul %302, %301, %cst_172 {dimension_numbers = #tpu.dot_dimension_numbers<[1], [0], [0], [1], [0, 0, 1, 1], [], []>} : vector<1x64xbf16>, vector<64x32xbf16>, vector<1x32xf32> -> vector<1x32xf32>
    %304 = arith.addf %298, %303 : vector<1x32xf32>
    %305 = vector.extract_strided_slice %263 {offsets = [7, 0], sizes = [1, 64], strides = [1, 1]} : vector<8x64xf32> to vector<1x64xf32>
    %c7 = arith.constant 7 : index
    %c0_173 = arith.constant 0 : index
    %c0_174 = arith.constant 0 : index
    %306 = vector.load %arg15[%c7, %c0_173, %c0_174] : memref<8x64x32xbf16, #tpu.memory_space<vmem>>, vector<1x64x32xbf16>
    %307 = vector.shape_cast %306 : vector<1x64x32xbf16> to vector<64x32xbf16>
    %308 = arith.truncf %305 : vector<1x64xf32> to vector<1x64xbf16>
    %cst_175 = arith.constant dense<0.000000e+00> : vector<1x32xf32>
    %309 = tpu.matmul %308, %307, %cst_175 {dimension_numbers = #tpu.dot_dimension_numbers<[1], [0], [0], [1], [0, 0, 1, 1], [], []>} : vector<1x64xbf16>, vector<64x32xbf16>, vector<1x32xf32> -> vector<1x32xf32>
    %310 = arith.addf %304, %309 : vector<1x32xf32>
    %c0_176 = arith.constant 0 : index
    %c0_177 = arith.constant 0 : index
    %311 = vector.load %arg16[%c0_176, %c0_177] : memref<1x32xf32, #tpu.memory_space<vmem>>, vector<1x32xf32>
    %312 = arith.addf %310, %311 : vector<1x32xf32>
    %313 = vector.extract_strided_slice %312 {offsets = [0, 0], sizes = [1, 16], strides = [1, 1]} : vector<1x32xf32> to vector<1x16xf32>
    %314 = vector.extract_strided_slice %312 {offsets = [0, 16], sizes = [1, 16], strides = [1, 1]} : vector<1x32xf32> to vector<1x16xf32>
    %c0_178 = arith.constant 0 : index
    %c0_179 = arith.constant 0 : index
    %315 = vector.load %arg1[%c0_178, %c0_179] : memref<1x16xf32, #tpu.memory_space<vmem>>, vector<1x16xf32>
    %cst_180 = arith.constant 5.000000e-01 : f32
    %316 = vector.broadcast %cst_180 : f32 to vector<1x16xf32>
    %317 = arith.mulf %316, %314 : vector<1x16xf32>
    %318 = math.exp %317 : vector<1x16xf32>
    %319 = arith.mulf %315, %318 : vector<1x16xf32>
    %320 = arith.addf %313, %319 : vector<1x16xf32>
    %c0_181 = arith.constant 0 : index
    %c0_182 = arith.constant 0 : index
    %c0_183 = arith.constant 0 : index
    %321 = vector.load %arg17[%c0_181, %c0_182, %c0_183] : memref<8x16x64xbf16, #tpu.memory_space<vmem>>, vector<1x16x64xbf16>
    %322 = vector.shape_cast %321 : vector<1x16x64xbf16> to vector<16x64xbf16>
    %323 = arith.truncf %320 : vector<1x16xf32> to vector<1x16xbf16>
    %cst_184 = arith.constant dense<0.000000e+00> : vector<1x64xf32>
    %324 = tpu.matmul %323, %322, %cst_184 {dimension_numbers = #tpu.dot_dimension_numbers<[1], [0], [0], [1], [0, 0, 1, 1], [], []>} : vector<1x16xbf16>, vector<16x64xbf16>, vector<1x64xf32> -> vector<1x64xf32>
    %c1_185 = arith.constant 1 : index
    %c0_186 = arith.constant 0 : index
    %c0_187 = arith.constant 0 : index
    %325 = vector.load %arg17[%c1_185, %c0_186, %c0_187] : memref<8x16x64xbf16, #tpu.memory_space<vmem>>, vector<1x16x64xbf16>
    %326 = vector.shape_cast %325 : vector<1x16x64xbf16> to vector<16x64xbf16>
    %327 = arith.truncf %320 : vector<1x16xf32> to vector<1x16xbf16>
    %cst_188 = arith.constant dense<0.000000e+00> : vector<1x64xf32>
    %328 = tpu.matmul %327, %326, %cst_188 {dimension_numbers = #tpu.dot_dimension_numbers<[1], [0], [0], [1], [0, 0, 1, 1], [], []>} : vector<1x16xbf16>, vector<16x64xbf16>, vector<1x64xf32> -> vector<1x64xf32>
    %c2_189 = arith.constant 2 : index
    %c0_190 = arith.constant 0 : index
    %c0_191 = arith.constant 0 : index
    %329 = vector.load %arg17[%c2_189, %c0_190, %c0_191] : memref<8x16x64xbf16, #tpu.memory_space<vmem>>, vector<1x16x64xbf16>
    %330 = vector.shape_cast %329 : vector<1x16x64xbf16> to vector<16x64xbf16>
    %331 = arith.truncf %320 : vector<1x16xf32> to vector<1x16xbf16>
    %cst_192 = arith.constant dense<0.000000e+00> : vector<1x64xf32>
    %332 = tpu.matmul %331, %330, %cst_192 {dimension_numbers = #tpu.dot_dimension_numbers<[1], [0], [0], [1], [0, 0, 1, 1], [], []>} : vector<1x16xbf16>, vector<16x64xbf16>, vector<1x64xf32> -> vector<1x64xf32>
    %c3_193 = arith.constant 3 : index
    %c0_194 = arith.constant 0 : index
    %c0_195 = arith.constant 0 : index
    %333 = vector.load %arg17[%c3_193, %c0_194, %c0_195] : memref<8x16x64xbf16, #tpu.memory_space<vmem>>, vector<1x16x64xbf16>
    %334 = vector.shape_cast %333 : vector<1x16x64xbf16> to vector<16x64xbf16>
    %335 = arith.truncf %320 : vector<1x16xf32> to vector<1x16xbf16>
    %cst_196 = arith.constant dense<0.000000e+00> : vector<1x64xf32>
    %336 = tpu.matmul %335, %334, %cst_196 {dimension_numbers = #tpu.dot_dimension_numbers<[1], [0], [0], [1], [0, 0, 1, 1], [], []>} : vector<1x16xbf16>, vector<16x64xbf16>, vector<1x64xf32> -> vector<1x64xf32>
    %c4_197 = arith.constant 4 : index
    %c0_198 = arith.constant 0 : index
    %c0_199 = arith.constant 0 : index
    %337 = vector.load %arg17[%c4_197, %c0_198, %c0_199] : memref<8x16x64xbf16, #tpu.memory_space<vmem>>, vector<1x16x64xbf16>
    %338 = vector.shape_cast %337 : vector<1x16x64xbf16> to vector<16x64xbf16>
    %339 = arith.truncf %320 : vector<1x16xf32> to vector<1x16xbf16>
    %cst_200 = arith.constant dense<0.000000e+00> : vector<1x64xf32>
    %340 = tpu.matmul %339, %338, %cst_200 {dimension_numbers = #tpu.dot_dimension_numbers<[1], [0], [0], [1], [0, 0, 1, 1], [], []>} : vector<1x16xbf16>, vector<16x64xbf16>, vector<1x64xf32> -> vector<1x64xf32>
    %c5_201 = arith.constant 5 : index
    %c0_202 = arith.constant 0 : index
    %c0_203 = arith.constant 0 : index
    %341 = vector.load %arg17[%c5_201, %c0_202, %c0_203] : memref<8x16x64xbf16, #tpu.memory_space<vmem>>, vector<1x16x64xbf16>
    %342 = vector.shape_cast %341 : vector<1x16x64xbf16> to vector<16x64xbf16>
    %343 = arith.truncf %320 : vector<1x16xf32> to vector<1x16xbf16>
    %cst_204 = arith.constant dense<0.000000e+00> : vector<1x64xf32>
    %344 = tpu.matmul %343, %342, %cst_204 {dimension_numbers = #tpu.dot_dimension_numbers<[1], [0], [0], [1], [0, 0, 1, 1], [], []>} : vector<1x16xbf16>, vector<16x64xbf16>, vector<1x64xf32> -> vector<1x64xf32>
    %c6_205 = arith.constant 6 : index
    %c0_206 = arith.constant 0 : index
    %c0_207 = arith.constant 0 : index
    %345 = vector.load %arg17[%c6_205, %c0_206, %c0_207] : memref<8x16x64xbf16, #tpu.memory_space<vmem>>, vector<1x16x64xbf16>
    %346 = vector.shape_cast %345 : vector<1x16x64xbf16> to vector<16x64xbf16>
    %347 = arith.truncf %320 : vector<1x16xf32> to vector<1x16xbf16>
    %cst_208 = arith.constant dense<0.000000e+00> : vector<1x64xf32>
    %348 = tpu.matmul %347, %346, %cst_208 {dimension_numbers = #tpu.dot_dimension_numbers<[1], [0], [0], [1], [0, 0, 1, 1], [], []>} : vector<1x16xbf16>, vector<16x64xbf16>, vector<1x64xf32> -> vector<1x64xf32>
    %c7_209 = arith.constant 7 : index
    %c0_210 = arith.constant 0 : index
    %c0_211 = arith.constant 0 : index
    %349 = vector.load %arg17[%c7_209, %c0_210, %c0_211] : memref<8x16x64xbf16, #tpu.memory_space<vmem>>, vector<1x16x64xbf16>
    %350 = vector.shape_cast %349 : vector<1x16x64xbf16> to vector<16x64xbf16>
    %351 = arith.truncf %320 : vector<1x16xf32> to vector<1x16xbf16>
    %cst_212 = arith.constant dense<0.000000e+00> : vector<1x64xf32>
    %352 = tpu.matmul %351, %350, %cst_212 {dimension_numbers = #tpu.dot_dimension_numbers<[1], [0], [0], [1], [0, 0, 1, 1], [], []>} : vector<1x16xbf16>, vector<16x64xbf16>, vector<1x64xf32> -> vector<1x64xf32>
    %353 = tpu.concatenate %324, %328, %332, %336, %340, %344, %348, %352 in 0 : vector<1x64xf32>, vector<1x64xf32>, vector<1x64xf32>, vector<1x64xf32>, vector<1x64xf32>, vector<1x64xf32>, vector<1x64xf32>, vector<1x64xf32> -> vector<8x64xf32>
    %c0_213 = arith.constant 0 : index
    %c0_214 = arith.constant 0 : index
    %354 = vector.load %arg18[%c0_213, %c0_214] : memref<8x64xf32, #tpu.memory_space<vmem>>, vector<8x64xf32>
    %355 = arith.addf %353, %354 : vector<8x64xf32>
    %c0_215 = arith.constant 0 : index
    %c0_216 = arith.constant 0 : index
    %356 = vector.load %arg19[%c0_215, %c0_216] : memref<96x8xbf16, #tpu.memory_space<vmem>>, vector<96x8xbf16>
    %357 = arith.truncf %355 : vector<8x64xf32> to vector<8x64xbf16>
    %cst_217 = arith.constant dense<0.000000e+00> : vector<96x64xf32>
    %358 = tpu.matmul %356, %357, %cst_217 {dimension_numbers = #tpu.dot_dimension_numbers<[1], [0], [0], [1], [0, 0, 1, 1], [], []>} : vector<96x8xbf16>, vector<8x64xbf16>, vector<96x64xf32> -> vector<96x64xf32>
    %359 = vector.extract_strided_slice %358 {offsets = [0, 0], sizes = [16, 64], strides = [1, 1]} : vector<96x64xf32> to vector<16x64xf32>
    %c0_218 = arith.constant 0 : index
    %c0_219 = arith.constant 0 : index
    %c0_220 = arith.constant 0 : index
    %360 = vector.load %arg23[%c0_218, %c0_219, %c0_220] : memref<6x64x64xbf16, #tpu.memory_space<vmem>>, vector<1x64x64xbf16>
    %361 = vector.shape_cast %360 : vector<1x64x64xbf16> to vector<64x64xbf16>
    %362 = arith.truncf %359 : vector<16x64xf32> to vector<16x64xbf16>
    %cst_221 = arith.constant dense<0.000000e+00> : vector<16x64xf32>
    %363 = tpu.matmul %362, %361, %cst_221 {dimension_numbers = #tpu.dot_dimension_numbers<[1], [0], [0], [1], [0, 0, 1, 1], [], []>} : vector<16x64xbf16>, vector<64x64xbf16>, vector<16x64xf32> -> vector<16x64xf32>
    %364 = vector.extract_strided_slice %358 {offsets = [16, 0], sizes = [16, 64], strides = [1, 1]} : vector<96x64xf32> to vector<16x64xf32>
    %c1_222 = arith.constant 1 : index
    %c0_223 = arith.constant 0 : index
    %c0_224 = arith.constant 0 : index
    %365 = vector.load %arg23[%c1_222, %c0_223, %c0_224] : memref<6x64x64xbf16, #tpu.memory_space<vmem>>, vector<1x64x64xbf16>
    %366 = vector.shape_cast %365 : vector<1x64x64xbf16> to vector<64x64xbf16>
    %367 = arith.truncf %364 : vector<16x64xf32> to vector<16x64xbf16>
    %cst_225 = arith.constant dense<0.000000e+00> : vector<16x64xf32>
    %368 = tpu.matmul %367, %366, %cst_225 {dimension_numbers = #tpu.dot_dimension_numbers<[1], [0], [0], [1], [0, 0, 1, 1], [], []>} : vector<16x64xbf16>, vector<64x64xbf16>, vector<16x64xf32> -> vector<16x64xf32>
    %369 = arith.addf %363, %368 : vector<16x64xf32>
    %370 = vector.extract_strided_slice %358 {offsets = [32, 0], sizes = [16, 64], strides = [1, 1]} : vector<96x64xf32> to vector<16x64xf32>
    %c2_226 = arith.constant 2 : index
    %c0_227 = arith.constant 0 : index
    %c0_228 = arith.constant 0 : index
    %371 = vector.load %arg23[%c2_226, %c0_227, %c0_228] : memref<6x64x64xbf16, #tpu.memory_space<vmem>>, vector<1x64x64xbf16>
    %372 = vector.shape_cast %371 : vector<1x64x64xbf16> to vector<64x64xbf16>
    %373 = arith.truncf %370 : vector<16x64xf32> to vector<16x64xbf16>
    %cst_229 = arith.constant dense<0.000000e+00> : vector<16x64xf32>
    %374 = tpu.matmul %373, %372, %cst_229 {dimension_numbers = #tpu.dot_dimension_numbers<[1], [0], [0], [1], [0, 0, 1, 1], [], []>} : vector<16x64xbf16>, vector<64x64xbf16>, vector<16x64xf32> -> vector<16x64xf32>
    %375 = arith.addf %369, %374 : vector<16x64xf32>
    %376 = vector.extract_strided_slice %358 {offsets = [48, 0], sizes = [16, 64], strides = [1, 1]} : vector<96x64xf32> to vector<16x64xf32>
    %c3_230 = arith.constant 3 : index
    %c0_231 = arith.constant 0 : index
    %c0_232 = arith.constant 0 : index
    %377 = vector.load %arg23[%c3_230, %c0_231, %c0_232] : memref<6x64x64xbf16, #tpu.memory_space<vmem>>, vector<1x64x64xbf16>
    %378 = vector.shape_cast %377 : vector<1x64x64xbf16> to vector<64x64xbf16>
    %379 = arith.truncf %376 : vector<16x64xf32> to vector<16x64xbf16>
    %cst_233 = arith.constant dense<0.000000e+00> : vector<16x64xf32>
    %380 = tpu.matmul %379, %378, %cst_233 {dimension_numbers = #tpu.dot_dimension_numbers<[1], [0], [0], [1], [0, 0, 1, 1], [], []>} : vector<16x64xbf16>, vector<64x64xbf16>, vector<16x64xf32> -> vector<16x64xf32>
    %381 = arith.addf %375, %380 : vector<16x64xf32>
    %382 = vector.extract_strided_slice %358 {offsets = [64, 0], sizes = [16, 64], strides = [1, 1]} : vector<96x64xf32> to vector<16x64xf32>
    %c4_234 = arith.constant 4 : index
    %c0_235 = arith.constant 0 : index
    %c0_236 = arith.constant 0 : index
    %383 = vector.load %arg23[%c4_234, %c0_235, %c0_236] : memref<6x64x64xbf16, #tpu.memory_space<vmem>>, vector<1x64x64xbf16>
    %384 = vector.shape_cast %383 : vector<1x64x64xbf16> to vector<64x64xbf16>
    %385 = arith.truncf %382 : vector<16x64xf32> to vector<16x64xbf16>
    %cst_237 = arith.constant dense<0.000000e+00> : vector<16x64xf32>
    %386 = tpu.matmul %385, %384, %cst_237 {dimension_numbers = #tpu.dot_dimension_numbers<[1], [0], [0], [1], [0, 0, 1, 1], [], []>} : vector<16x64xbf16>, vector<64x64xbf16>, vector<16x64xf32> -> vector<16x64xf32>
    %387 = arith.addf %381, %386 : vector<16x64xf32>
    %388 = vector.extract_strided_slice %358 {offsets = [80, 0], sizes = [16, 64], strides = [1, 1]} : vector<96x64xf32> to vector<16x64xf32>
    %c5_238 = arith.constant 5 : index
    %c0_239 = arith.constant 0 : index
    %c0_240 = arith.constant 0 : index
    %389 = vector.load %arg23[%c5_238, %c0_239, %c0_240] : memref<6x64x64xbf16, #tpu.memory_space<vmem>>, vector<1x64x64xbf16>
    %390 = vector.shape_cast %389 : vector<1x64x64xbf16> to vector<64x64xbf16>
    %391 = arith.truncf %388 : vector<16x64xf32> to vector<16x64xbf16>
    %cst_241 = arith.constant dense<0.000000e+00> : vector<16x64xf32>
    %392 = tpu.matmul %391, %390, %cst_241 {dimension_numbers = #tpu.dot_dimension_numbers<[1], [0], [0], [1], [0, 0, 1, 1], [], []>} : vector<16x64xbf16>, vector<64x64xbf16>, vector<16x64xf32> -> vector<16x64xf32>
    %393 = arith.addf %387, %392 : vector<16x64xf32>
    %c0_242 = arith.constant 0 : index
    %c0_243 = arith.constant 0 : index
    %394 = vector.load %arg27[%c0_242, %c0_243] : memref<1x64xf32, #tpu.memory_space<vmem>>, vector<1x64xf32>
    %395 = vector.broadcast %394 : vector<1x64xf32> to vector<16x64xf32>
    %396 = arith.addf %393, %395 : vector<16x64xf32>
    %cst_244 = arith.constant dense<0.000000e+00> : vector<16xf32>
    %397 = vector.multi_reduction <add>, %396, %cst_244 [1] : vector<16x64xf32> to vector<16xf32>
    %398 = vector.shape_cast %397 : vector<16xf32> to vector<16x1xf32>
    %cst_245 = arith.constant 6.400000e+01 : f32
    %399 = vector.broadcast %cst_245 : f32 to vector<16x1xf32>
    %400 = arith.divf %398, %399 : vector<16x1xf32>
    %401 = vector.broadcast %400 : vector<16x1xf32> to vector<16x64xf32>
    %402 = arith.subf %396, %401 : vector<16x64xf32>
    %403 = arith.mulf %402, %402 : vector<16x64xf32>
    %cst_246 = arith.constant dense<0.000000e+00> : vector<16xf32>
    %404 = vector.multi_reduction <add>, %403, %cst_246 [1] : vector<16x64xf32> to vector<16xf32>
    %405 = vector.shape_cast %404 : vector<16xf32> to vector<16x1xf32>
    %cst_247 = arith.constant 6.400000e+01 : f32
    %406 = vector.broadcast %cst_247 : f32 to vector<16x1xf32>
    %407 = arith.divf %405, %406 : vector<16x1xf32>
    %cst_248 = arith.constant 9.99999974E-6 : f32
    %408 = vector.broadcast %cst_248 : f32 to vector<16x1xf32>
    %409 = arith.addf %407, %408 : vector<16x1xf32>
    %410 = math.rsqrt %409 : vector<16x1xf32>
    %411 = vector.broadcast %410 : vector<16x1xf32> to vector<16x64xf32>
    %412 = arith.mulf %402, %411 : vector<16x64xf32>
    %cst_249 = arith.constant 0.000000e+00 : f32
    %413 = vector.broadcast %cst_249 : f32 to vector<16x64xf32>
    %414 = arith.cmpf ogt, %412, %413 : vector<16x64xf32>
    %cst_250 = arith.constant 0.000000e+00 : f32
    %415 = vector.broadcast %cst_250 : f32 to vector<16x64xf32>
    %416 = arith.minimumf %412, %415 : vector<16x64xf32>
    %417 = math.exp %416 : vector<16x64xf32>
    %cst_251 = arith.constant 1.000000e+00 : f32
    %418 = vector.broadcast %cst_251 : f32 to vector<16x64xf32>
    %419 = arith.subf %417, %418 : vector<16x64xf32>
    %420 = arith.select %414, %412, %419 : vector<16x64xi1>, vector<16x64xf32>
    %c0_252 = arith.constant 0 : index
    %c0_253 = arith.constant 0 : index
    %421 = vector.load %arg20[%c0_252, %c0_253] : memref<96x16xbf16, #tpu.memory_space<vmem>>, vector<96x16xbf16>
    %422 = arith.truncf %420 : vector<16x64xf32> to vector<16x64xbf16>
    %cst_254 = arith.constant dense<0.000000e+00> : vector<96x64xf32>
    %423 = tpu.matmul %421, %422, %cst_254 {dimension_numbers = #tpu.dot_dimension_numbers<[1], [0], [0], [1], [0, 0, 1, 1], [], []>} : vector<96x16xbf16>, vector<16x64xbf16>, vector<96x64xf32> -> vector<96x64xf32>
    %424 = vector.extract_strided_slice %423 {offsets = [0, 0], sizes = [16, 64], strides = [1, 1]} : vector<96x64xf32> to vector<16x64xf32>
    %c0_255 = arith.constant 0 : index
    %c0_256 = arith.constant 0 : index
    %c0_257 = arith.constant 0 : index
    %425 = vector.load %arg24[%c0_255, %c0_256, %c0_257] : memref<6x64x32xbf16, #tpu.memory_space<vmem>>, vector<1x64x32xbf16>
    %426 = vector.shape_cast %425 : vector<1x64x32xbf16> to vector<64x32xbf16>
    %427 = arith.truncf %424 : vector<16x64xf32> to vector<16x64xbf16>
    %cst_258 = arith.constant dense<0.000000e+00> : vector<16x32xf32>
    %428 = tpu.matmul %427, %426, %cst_258 {dimension_numbers = #tpu.dot_dimension_numbers<[1], [0], [0], [1], [0, 0, 1, 1], [], []>} : vector<16x64xbf16>, vector<64x32xbf16>, vector<16x32xf32> -> vector<16x32xf32>
    %429 = vector.extract_strided_slice %423 {offsets = [16, 0], sizes = [16, 64], strides = [1, 1]} : vector<96x64xf32> to vector<16x64xf32>
    %c1_259 = arith.constant 1 : index
    %c0_260 = arith.constant 0 : index
    %c0_261 = arith.constant 0 : index
    %430 = vector.load %arg24[%c1_259, %c0_260, %c0_261] : memref<6x64x32xbf16, #tpu.memory_space<vmem>>, vector<1x64x32xbf16>
    %431 = vector.shape_cast %430 : vector<1x64x32xbf16> to vector<64x32xbf16>
    %432 = arith.truncf %429 : vector<16x64xf32> to vector<16x64xbf16>
    %cst_262 = arith.constant dense<0.000000e+00> : vector<16x32xf32>
    %433 = tpu.matmul %432, %431, %cst_262 {dimension_numbers = #tpu.dot_dimension_numbers<[1], [0], [0], [1], [0, 0, 1, 1], [], []>} : vector<16x64xbf16>, vector<64x32xbf16>, vector<16x32xf32> -> vector<16x32xf32>
    %434 = arith.addf %428, %433 : vector<16x32xf32>
    %435 = vector.extract_strided_slice %423 {offsets = [32, 0], sizes = [16, 64], strides = [1, 1]} : vector<96x64xf32> to vector<16x64xf32>
    %c2_263 = arith.constant 2 : index
    %c0_264 = arith.constant 0 : index
    %c0_265 = arith.constant 0 : index
    %436 = vector.load %arg24[%c2_263, %c0_264, %c0_265] : memref<6x64x32xbf16, #tpu.memory_space<vmem>>, vector<1x64x32xbf16>
    %437 = vector.shape_cast %436 : vector<1x64x32xbf16> to vector<64x32xbf16>
    %438 = arith.truncf %435 : vector<16x64xf32> to vector<16x64xbf16>
    %cst_266 = arith.constant dense<0.000000e+00> : vector<16x32xf32>
    %439 = tpu.matmul %438, %437, %cst_266 {dimension_numbers = #tpu.dot_dimension_numbers<[1], [0], [0], [1], [0, 0, 1, 1], [], []>} : vector<16x64xbf16>, vector<64x32xbf16>, vector<16x32xf32> -> vector<16x32xf32>
    %440 = arith.addf %434, %439 : vector<16x32xf32>
    %441 = vector.extract_strided_slice %423 {offsets = [48, 0], sizes = [16, 64], strides = [1, 1]} : vector<96x64xf32> to vector<16x64xf32>
    %c3_267 = arith.constant 3 : index
    %c0_268 = arith.constant 0 : index
    %c0_269 = arith.constant 0 : index
    %442 = vector.load %arg24[%c3_267, %c0_268, %c0_269] : memref<6x64x32xbf16, #tpu.memory_space<vmem>>, vector<1x64x32xbf16>
    %443 = vector.shape_cast %442 : vector<1x64x32xbf16> to vector<64x32xbf16>
    %444 = arith.truncf %441 : vector<16x64xf32> to vector<16x64xbf16>
    %cst_270 = arith.constant dense<0.000000e+00> : vector<16x32xf32>
    %445 = tpu.matmul %444, %443, %cst_270 {dimension_numbers = #tpu.dot_dimension_numbers<[1], [0], [0], [1], [0, 0, 1, 1], [], []>} : vector<16x64xbf16>, vector<64x32xbf16>, vector<16x32xf32> -> vector<16x32xf32>
    %446 = arith.addf %440, %445 : vector<16x32xf32>
    %447 = vector.extract_strided_slice %423 {offsets = [64, 0], sizes = [16, 64], strides = [1, 1]} : vector<96x64xf32> to vector<16x64xf32>
    %c4_271 = arith.constant 4 : index
    %c0_272 = arith.constant 0 : index
    %c0_273 = arith.constant 0 : index
    %448 = vector.load %arg24[%c4_271, %c0_272, %c0_273] : memref<6x64x32xbf16, #tpu.memory_space<vmem>>, vector<1x64x32xbf16>
    %449 = vector.shape_cast %448 : vector<1x64x32xbf16> to vector<64x32xbf16>
    %450 = arith.truncf %447 : vector<16x64xf32> to vector<16x64xbf16>
    %cst_274 = arith.constant dense<0.000000e+00> : vector<16x32xf32>
    %451 = tpu.matmul %450, %449, %cst_274 {dimension_numbers = #tpu.dot_dimension_numbers<[1], [0], [0], [1], [0, 0, 1, 1], [], []>} : vector<16x64xbf16>, vector<64x32xbf16>, vector<16x32xf32> -> vector<16x32xf32>
    %452 = arith.addf %446, %451 : vector<16x32xf32>
    %453 = vector.extract_strided_slice %423 {offsets = [80, 0], sizes = [16, 64], strides = [1, 1]} : vector<96x64xf32> to vector<16x64xf32>
    %c5_275 = arith.constant 5 : index
    %c0_276 = arith.constant 0 : index
    %c0_277 = arith.constant 0 : index
    %454 = vector.load %arg24[%c5_275, %c0_276, %c0_277] : memref<6x64x32xbf16, #tpu.memory_space<vmem>>, vector<1x64x32xbf16>
    %455 = vector.shape_cast %454 : vector<1x64x32xbf16> to vector<64x32xbf16>
    %456 = arith.truncf %453 : vector<16x64xf32> to vector<16x64xbf16>
    %cst_278 = arith.constant dense<0.000000e+00> : vector<16x32xf32>
    %457 = tpu.matmul %456, %455, %cst_278 {dimension_numbers = #tpu.dot_dimension_numbers<[1], [0], [0], [1], [0, 0, 1, 1], [], []>} : vector<16x64xbf16>, vector<64x32xbf16>, vector<16x32xf32> -> vector<16x32xf32>
    %458 = arith.addf %452, %457 : vector<16x32xf32>
    %c0_279 = arith.constant 0 : index
    %c0_280 = arith.constant 0 : index
    %459 = vector.load %arg28[%c0_279, %c0_280] : memref<1x32xf32, #tpu.memory_space<vmem>>, vector<1x32xf32>
    %460 = vector.broadcast %459 : vector<1x32xf32> to vector<16x32xf32>
    %461 = arith.addf %458, %460 : vector<16x32xf32>
    %cst_281 = arith.constant dense<0.000000e+00> : vector<16xf32>
    %462 = vector.multi_reduction <add>, %461, %cst_281 [1] : vector<16x32xf32> to vector<16xf32>
    %463 = vector.shape_cast %462 : vector<16xf32> to vector<16x1xf32>
    %cst_282 = arith.constant 3.200000e+01 : f32
    %464 = vector.broadcast %cst_282 : f32 to vector<16x1xf32>
    %465 = arith.divf %463, %464 : vector<16x1xf32>
    %466 = vector.broadcast %465 : vector<16x1xf32> to vector<16x32xf32>
    %467 = arith.subf %461, %466 : vector<16x32xf32>
    %468 = arith.mulf %467, %467 : vector<16x32xf32>
    %cst_283 = arith.constant dense<0.000000e+00> : vector<16xf32>
    %469 = vector.multi_reduction <add>, %468, %cst_283 [1] : vector<16x32xf32> to vector<16xf32>
    %470 = vector.shape_cast %469 : vector<16xf32> to vector<16x1xf32>
    %cst_284 = arith.constant 3.200000e+01 : f32
    %471 = vector.broadcast %cst_284 : f32 to vector<16x1xf32>
    %472 = arith.divf %470, %471 : vector<16x1xf32>
    %cst_285 = arith.constant 9.99999974E-6 : f32
    %473 = vector.broadcast %cst_285 : f32 to vector<16x1xf32>
    %474 = arith.addf %472, %473 : vector<16x1xf32>
    %475 = math.rsqrt %474 : vector<16x1xf32>
    %476 = vector.broadcast %475 : vector<16x1xf32> to vector<16x32xf32>
    %477 = arith.mulf %467, %476 : vector<16x32xf32>
    %cst_286 = arith.constant 0.000000e+00 : f32
    %478 = vector.broadcast %cst_286 : f32 to vector<16x32xf32>
    %479 = arith.cmpf ogt, %477, %478 : vector<16x32xf32>
    %cst_287 = arith.constant 0.000000e+00 : f32
    %480 = vector.broadcast %cst_287 : f32 to vector<16x32xf32>
    %481 = arith.minimumf %477, %480 : vector<16x32xf32>
    %482 = math.exp %481 : vector<16x32xf32>
    %cst_288 = arith.constant 1.000000e+00 : f32
    %483 = vector.broadcast %cst_288 : f32 to vector<16x32xf32>
    %484 = arith.subf %482, %483 : vector<16x32xf32>
    %485 = arith.select %479, %477, %484 : vector<16x32xi1>, vector<16x32xf32>
    %c0_289 = arith.constant 0 : index
    %c0_290 = arith.constant 0 : index
    %486 = vector.load %arg21[%c0_289, %c0_290] : memref<144x16xbf16, #tpu.memory_space<vmem>>, vector<144x16xbf16>
    %487 = arith.truncf %485 : vector<16x32xf32> to vector<16x32xbf16>
    %cst_291 = arith.constant dense<0.000000e+00> : vector<144x32xf32>
    %488 = tpu.matmul %486, %487, %cst_291 {dimension_numbers = #tpu.dot_dimension_numbers<[1], [0], [0], [1], [0, 0, 1, 1], [], []>} : vector<144x16xbf16>, vector<16x32xbf16>, vector<144x32xf32> -> vector<144x32xf32>
    %489 = vector.extract_strided_slice %488 {offsets = [0, 0], sizes = [24, 32], strides = [1, 1]} : vector<144x32xf32> to vector<24x32xf32>
    %c0_292 = arith.constant 0 : index
    %c0_293 = arith.constant 0 : index
    %c0_294 = arith.constant 0 : index
    %490 = vector.load %arg25[%c0_292, %c0_293, %c0_294] : memref<6x32x32xbf16, #tpu.memory_space<vmem>>, vector<1x32x32xbf16>
    %491 = vector.shape_cast %490 : vector<1x32x32xbf16> to vector<32x32xbf16>
    %492 = arith.truncf %489 : vector<24x32xf32> to vector<24x32xbf16>
    %cst_295 = arith.constant dense<0.000000e+00> : vector<24x32xf32>
    %493 = tpu.matmul %492, %491, %cst_295 {dimension_numbers = #tpu.dot_dimension_numbers<[1], [0], [0], [1], [0, 0, 1, 1], [], []>} : vector<24x32xbf16>, vector<32x32xbf16>, vector<24x32xf32> -> vector<24x32xf32>
    %494 = vector.extract_strided_slice %488 {offsets = [24, 0], sizes = [24, 32], strides = [1, 1]} : vector<144x32xf32> to vector<24x32xf32>
    %c1_296 = arith.constant 1 : index
    %c0_297 = arith.constant 0 : index
    %c0_298 = arith.constant 0 : index
    %495 = vector.load %arg25[%c1_296, %c0_297, %c0_298] : memref<6x32x32xbf16, #tpu.memory_space<vmem>>, vector<1x32x32xbf16>
    %496 = vector.shape_cast %495 : vector<1x32x32xbf16> to vector<32x32xbf16>
    %497 = arith.truncf %494 : vector<24x32xf32> to vector<24x32xbf16>
    %cst_299 = arith.constant dense<0.000000e+00> : vector<24x32xf32>
    %498 = tpu.matmul %497, %496, %cst_299 {dimension_numbers = #tpu.dot_dimension_numbers<[1], [0], [0], [1], [0, 0, 1, 1], [], []>} : vector<24x32xbf16>, vector<32x32xbf16>, vector<24x32xf32> -> vector<24x32xf32>
    %499 = arith.addf %493, %498 : vector<24x32xf32>
    %500 = vector.extract_strided_slice %488 {offsets = [48, 0], sizes = [24, 32], strides = [1, 1]} : vector<144x32xf32> to vector<24x32xf32>
    %c2_300 = arith.constant 2 : index
    %c0_301 = arith.constant 0 : index
    %c0_302 = arith.constant 0 : index
    %501 = vector.load %arg25[%c2_300, %c0_301, %c0_302] : memref<6x32x32xbf16, #tpu.memory_space<vmem>>, vector<1x32x32xbf16>
    %502 = vector.shape_cast %501 : vector<1x32x32xbf16> to vector<32x32xbf16>
    %503 = arith.truncf %500 : vector<24x32xf32> to vector<24x32xbf16>
    %cst_303 = arith.constant dense<0.000000e+00> : vector<24x32xf32>
    %504 = tpu.matmul %503, %502, %cst_303 {dimension_numbers = #tpu.dot_dimension_numbers<[1], [0], [0], [1], [0, 0, 1, 1], [], []>} : vector<24x32xbf16>, vector<32x32xbf16>, vector<24x32xf32> -> vector<24x32xf32>
    %505 = arith.addf %499, %504 : vector<24x32xf32>
    %506 = vector.extract_strided_slice %488 {offsets = [72, 0], sizes = [24, 32], strides = [1, 1]} : vector<144x32xf32> to vector<24x32xf32>
    %c3_304 = arith.constant 3 : index
    %c0_305 = arith.constant 0 : index
    %c0_306 = arith.constant 0 : index
    %507 = vector.load %arg25[%c3_304, %c0_305, %c0_306] : memref<6x32x32xbf16, #tpu.memory_space<vmem>>, vector<1x32x32xbf16>
    %508 = vector.shape_cast %507 : vector<1x32x32xbf16> to vector<32x32xbf16>
    %509 = arith.truncf %506 : vector<24x32xf32> to vector<24x32xbf16>
    %cst_307 = arith.constant dense<0.000000e+00> : vector<24x32xf32>
    %510 = tpu.matmul %509, %508, %cst_307 {dimension_numbers = #tpu.dot_dimension_numbers<[1], [0], [0], [1], [0, 0, 1, 1], [], []>} : vector<24x32xbf16>, vector<32x32xbf16>, vector<24x32xf32> -> vector<24x32xf32>
    %511 = arith.addf %505, %510 : vector<24x32xf32>
    %512 = vector.extract_strided_slice %488 {offsets = [96, 0], sizes = [24, 32], strides = [1, 1]} : vector<144x32xf32> to vector<24x32xf32>
    %c4_308 = arith.constant 4 : index
    %c0_309 = arith.constant 0 : index
    %c0_310 = arith.constant 0 : index
    %513 = vector.load %arg25[%c4_308, %c0_309, %c0_310] : memref<6x32x32xbf16, #tpu.memory_space<vmem>>, vector<1x32x32xbf16>
    %514 = vector.shape_cast %513 : vector<1x32x32xbf16> to vector<32x32xbf16>
    %515 = arith.truncf %512 : vector<24x32xf32> to vector<24x32xbf16>
    %cst_311 = arith.constant dense<0.000000e+00> : vector<24x32xf32>
    %516 = tpu.matmul %515, %514, %cst_311 {dimension_numbers = #tpu.dot_dimension_numbers<[1], [0], [0], [1], [0, 0, 1, 1], [], []>} : vector<24x32xbf16>, vector<32x32xbf16>, vector<24x32xf32> -> vector<24x32xf32>
    %517 = arith.addf %511, %516 : vector<24x32xf32>
    %518 = vector.extract_strided_slice %488 {offsets = [120, 0], sizes = [24, 32], strides = [1, 1]} : vector<144x32xf32> to vector<24x32xf32>
    %c5_312 = arith.constant 5 : index
    %c0_313 = arith.constant 0 : index
    %c0_314 = arith.constant 0 : index
    %519 = vector.load %arg25[%c5_312, %c0_313, %c0_314] : memref<6x32x32xbf16, #tpu.memory_space<vmem>>, vector<1x32x32xbf16>
    %520 = vector.shape_cast %519 : vector<1x32x32xbf16> to vector<32x32xbf16>
    %521 = arith.truncf %518 : vector<24x32xf32> to vector<24x32xbf16>
    %cst_315 = arith.constant dense<0.000000e+00> : vector<24x32xf32>
    %522 = tpu.matmul %521, %520, %cst_315 {dimension_numbers = #tpu.dot_dimension_numbers<[1], [0], [0], [1], [0, 0, 1, 1], [], []>} : vector<24x32xbf16>, vector<32x32xbf16>, vector<24x32xf32> -> vector<24x32xf32>
    %523 = arith.addf %517, %522 : vector<24x32xf32>
    %c0_316 = arith.constant 0 : index
    %c0_317 = arith.constant 0 : index
    %524 = vector.load %arg29[%c0_316, %c0_317] : memref<1x32xf32, #tpu.memory_space<vmem>>, vector<1x32xf32>
    %525 = vector.broadcast %524 : vector<1x32xf32> to vector<24x32xf32>
    %526 = arith.addf %523, %525 : vector<24x32xf32>
    %cst_318 = arith.constant dense<0.000000e+00> : vector<24xf32>
    %527 = vector.multi_reduction <add>, %526, %cst_318 [1] : vector<24x32xf32> to vector<24xf32>
    %528 = vector.shape_cast %527 : vector<24xf32> to vector<24x1xf32>
    %cst_319 = arith.constant 3.200000e+01 : f32
    %529 = vector.broadcast %cst_319 : f32 to vector<24x1xf32>
    %530 = arith.divf %528, %529 : vector<24x1xf32>
    %531 = vector.broadcast %530 : vector<24x1xf32> to vector<24x32xf32>
    %532 = arith.subf %526, %531 : vector<24x32xf32>
    %533 = arith.mulf %532, %532 : vector<24x32xf32>
    %cst_320 = arith.constant dense<0.000000e+00> : vector<24xf32>
    %534 = vector.multi_reduction <add>, %533, %cst_320 [1] : vector<24x32xf32> to vector<24xf32>
    %535 = vector.shape_cast %534 : vector<24xf32> to vector<24x1xf32>
    %cst_321 = arith.constant 3.200000e+01 : f32
    %536 = vector.broadcast %cst_321 : f32 to vector<24x1xf32>
    %537 = arith.divf %535, %536 : vector<24x1xf32>
    %cst_322 = arith.constant 9.99999974E-6 : f32
    %538 = vector.broadcast %cst_322 : f32 to vector<24x1xf32>
    %539 = arith.addf %537, %538 : vector<24x1xf32>
    %540 = math.rsqrt %539 : vector<24x1xf32>
    %541 = vector.broadcast %540 : vector<24x1xf32> to vector<24x32xf32>
    %542 = arith.mulf %532, %541 : vector<24x32xf32>
    %cst_323 = arith.constant 0.000000e+00 : f32
    %543 = vector.broadcast %cst_323 : f32 to vector<24x32xf32>
    %544 = arith.cmpf ogt, %542, %543 : vector<24x32xf32>
    %cst_324 = arith.constant 0.000000e+00 : f32
    %545 = vector.broadcast %cst_324 : f32 to vector<24x32xf32>
    %546 = arith.minimumf %542, %545 : vector<24x32xf32>
    %547 = math.exp %546 : vector<24x32xf32>
    %cst_325 = arith.constant 1.000000e+00 : f32
    %548 = vector.broadcast %cst_325 : f32 to vector<24x32xf32>
    %549 = arith.subf %547, %548 : vector<24x32xf32>
    %550 = arith.select %544, %542, %549 : vector<24x32xi1>, vector<24x32xf32>
    %c0_326 = arith.constant 0 : index
    %c0_327 = arith.constant 0 : index
    %551 = vector.load %arg22[%c0_326, %c0_327] : memref<192x24xbf16, #tpu.memory_space<vmem>>, vector<192x24xbf16>
    %552 = arith.truncf %550 : vector<24x32xf32> to vector<24x32xbf16>
    %cst_328 = arith.constant dense<0.000000e+00> : vector<192x32xf32>
    %553 = tpu.matmul %551, %552, %cst_328 {dimension_numbers = #tpu.dot_dimension_numbers<[1], [0], [0], [1], [0, 0, 1, 1], [], []>} : vector<192x24xbf16>, vector<24x32xbf16>, vector<192x32xf32> -> vector<192x32xf32>
    %554 = vector.extract_strided_slice %553 {offsets = [0, 0], sizes = [32, 32], strides = [1, 1]} : vector<192x32xf32> to vector<32x32xf32>
    %c0_329 = arith.constant 0 : index
    %c0_330 = arith.constant 0 : index
    %c0_331 = arith.constant 0 : index
    %555 = vector.load %arg26[%c0_329, %c0_330, %c0_331] : memref<6x32x32xbf16, #tpu.memory_space<vmem>>, vector<1x32x32xbf16>
    %556 = vector.shape_cast %555 : vector<1x32x32xbf16> to vector<32x32xbf16>
    %557 = arith.truncf %554 : vector<32x32xf32> to vector<32x32xbf16>
    %cst_332 = arith.constant dense<0.000000e+00> : vector<32x32xf32>
    %558 = tpu.matmul %557, %556, %cst_332 {dimension_numbers = #tpu.dot_dimension_numbers<[1], [0], [0], [1], [0, 0, 1, 1], [], []>} : vector<32x32xbf16>, vector<32x32xbf16>, vector<32x32xf32> -> vector<32x32xf32>
    %559 = vector.extract_strided_slice %553 {offsets = [32, 0], sizes = [32, 32], strides = [1, 1]} : vector<192x32xf32> to vector<32x32xf32>
    %c1_333 = arith.constant 1 : index
    %c0_334 = arith.constant 0 : index
    %c0_335 = arith.constant 0 : index
    %560 = vector.load %arg26[%c1_333, %c0_334, %c0_335] : memref<6x32x32xbf16, #tpu.memory_space<vmem>>, vector<1x32x32xbf16>
    %561 = vector.shape_cast %560 : vector<1x32x32xbf16> to vector<32x32xbf16>
    %562 = arith.truncf %559 : vector<32x32xf32> to vector<32x32xbf16>
    %cst_336 = arith.constant dense<0.000000e+00> : vector<32x32xf32>
    %563 = tpu.matmul %562, %561, %cst_336 {dimension_numbers = #tpu.dot_dimension_numbers<[1], [0], [0], [1], [0, 0, 1, 1], [], []>} : vector<32x32xbf16>, vector<32x32xbf16>, vector<32x32xf32> -> vector<32x32xf32>
    %564 = arith.addf %558, %563 : vector<32x32xf32>
    %565 = vector.extract_strided_slice %553 {offsets = [64, 0], sizes = [32, 32], strides = [1, 1]} : vector<192x32xf32> to vector<32x32xf32>
    %c2_337 = arith.constant 2 : index
    %c0_338 = arith.constant 0 : index
    %c0_339 = arith.constant 0 : index
    %566 = vector.load %arg26[%c2_337, %c0_338, %c0_339] : memref<6x32x32xbf16, #tpu.memory_space<vmem>>, vector<1x32x32xbf16>
    %567 = vector.shape_cast %566 : vector<1x32x32xbf16> to vector<32x32xbf16>
    %568 = arith.truncf %565 : vector<32x32xf32> to vector<32x32xbf16>
    %cst_340 = arith.constant dense<0.000000e+00> : vector<32x32xf32>
    %569 = tpu.matmul %568, %567, %cst_340 {dimension_numbers = #tpu.dot_dimension_numbers<[1], [0], [0], [1], [0, 0, 1, 1], [], []>} : vector<32x32xbf16>, vector<32x32xbf16>, vector<32x32xf32> -> vector<32x32xf32>
    %570 = arith.addf %564, %569 : vector<32x32xf32>
    %571 = vector.extract_strided_slice %553 {offsets = [96, 0], sizes = [32, 32], strides = [1, 1]} : vector<192x32xf32> to vector<32x32xf32>
    %c3_341 = arith.constant 3 : index
    %c0_342 = arith.constant 0 : index
    %c0_343 = arith.constant 0 : index
    %572 = vector.load %arg26[%c3_341, %c0_342, %c0_343] : memref<6x32x32xbf16, #tpu.memory_space<vmem>>, vector<1x32x32xbf16>
    %573 = vector.shape_cast %572 : vector<1x32x32xbf16> to vector<32x32xbf16>
    %574 = arith.truncf %571 : vector<32x32xf32> to vector<32x32xbf16>
    %cst_344 = arith.constant dense<0.000000e+00> : vector<32x32xf32>
    %575 = tpu.matmul %574, %573, %cst_344 {dimension_numbers = #tpu.dot_dimension_numbers<[1], [0], [0], [1], [0, 0, 1, 1], [], []>} : vector<32x32xbf16>, vector<32x32xbf16>, vector<32x32xf32> -> vector<32x32xf32>
    %576 = arith.addf %570, %575 : vector<32x32xf32>
    %577 = vector.extract_strided_slice %553 {offsets = [128, 0], sizes = [32, 32], strides = [1, 1]} : vector<192x32xf32> to vector<32x32xf32>
    %c4_345 = arith.constant 4 : index
    %c0_346 = arith.constant 0 : index
    %c0_347 = arith.constant 0 : index
    %578 = vector.load %arg26[%c4_345, %c0_346, %c0_347] : memref<6x32x32xbf16, #tpu.memory_space<vmem>>, vector<1x32x32xbf16>
    %579 = vector.shape_cast %578 : vector<1x32x32xbf16> to vector<32x32xbf16>
    %580 = arith.truncf %577 : vector<32x32xf32> to vector<32x32xbf16>
    %cst_348 = arith.constant dense<0.000000e+00> : vector<32x32xf32>
    %581 = tpu.matmul %580, %579, %cst_348 {dimension_numbers = #tpu.dot_dimension_numbers<[1], [0], [0], [1], [0, 0, 1, 1], [], []>} : vector<32x32xbf16>, vector<32x32xbf16>, vector<32x32xf32> -> vector<32x32xf32>
    %582 = arith.addf %576, %581 : vector<32x32xf32>
    %583 = vector.extract_strided_slice %553 {offsets = [160, 0], sizes = [32, 32], strides = [1, 1]} : vector<192x32xf32> to vector<32x32xf32>
    %c5_349 = arith.constant 5 : index
    %c0_350 = arith.constant 0 : index
    %c0_351 = arith.constant 0 : index
    %584 = vector.load %arg26[%c5_349, %c0_350, %c0_351] : memref<6x32x32xbf16, #tpu.memory_space<vmem>>, vector<1x32x32xbf16>
    %585 = vector.shape_cast %584 : vector<1x32x32xbf16> to vector<32x32xbf16>
    %586 = arith.truncf %583 : vector<32x32xf32> to vector<32x32xbf16>
    %cst_352 = arith.constant dense<0.000000e+00> : vector<32x32xf32>
    %587 = tpu.matmul %586, %585, %cst_352 {dimension_numbers = #tpu.dot_dimension_numbers<[1], [0], [0], [1], [0, 0, 1, 1], [], []>} : vector<32x32xbf16>, vector<32x32xbf16>, vector<32x32xf32> -> vector<32x32xf32>
    %588 = arith.addf %582, %587 : vector<32x32xf32>
    %c0_353 = arith.constant 0 : index
    %c0_354 = arith.constant 0 : index
    %589 = vector.load %arg30[%c0_353, %c0_354] : memref<1x32xf32, #tpu.memory_space<vmem>>, vector<1x32xf32>
    %590 = vector.broadcast %589 : vector<1x32xf32> to vector<32x32xf32>
    %591 = arith.addf %588, %590 : vector<32x32xf32>
    %cst_355 = arith.constant dense<0.000000e+00> : vector<32xf32>
    %592 = vector.multi_reduction <add>, %591, %cst_355 [1] : vector<32x32xf32> to vector<32xf32>
    %593 = vector.shape_cast %592 : vector<32xf32> to vector<32x1xf32>
    %cst_356 = arith.constant 3.200000e+01 : f32
    %594 = vector.broadcast %cst_356 : f32 to vector<32x1xf32>
    %595 = arith.divf %593, %594 : vector<32x1xf32>
    %596 = vector.broadcast %595 : vector<32x1xf32> to vector<32x32xf32>
    %597 = arith.subf %591, %596 : vector<32x32xf32>
    %598 = arith.mulf %597, %597 : vector<32x32xf32>
    %cst_357 = arith.constant dense<0.000000e+00> : vector<32xf32>
    %599 = vector.multi_reduction <add>, %598, %cst_357 [1] : vector<32x32xf32> to vector<32xf32>
    %600 = vector.shape_cast %599 : vector<32xf32> to vector<32x1xf32>
    %cst_358 = arith.constant 3.200000e+01 : f32
    %601 = vector.broadcast %cst_358 : f32 to vector<32x1xf32>
    %602 = arith.divf %600, %601 : vector<32x1xf32>
    %cst_359 = arith.constant 9.99999974E-6 : f32
    %603 = vector.broadcast %cst_359 : f32 to vector<32x1xf32>
    %604 = arith.addf %602, %603 : vector<32x1xf32>
    %605 = math.rsqrt %604 : vector<32x1xf32>
    %606 = vector.broadcast %605 : vector<32x1xf32> to vector<32x32xf32>
    %607 = arith.mulf %597, %606 : vector<32x32xf32>
    %cst_360 = arith.constant 0.000000e+00 : f32
    %608 = vector.broadcast %cst_360 : f32 to vector<32x32xf32>
    %609 = arith.cmpf ogt, %607, %608 : vector<32x32xf32>
    %cst_361 = arith.constant 0.000000e+00 : f32
    %610 = vector.broadcast %cst_361 : f32 to vector<32x32xf32>
    %611 = arith.minimumf %607, %610 : vector<32x32xf32>
    %612 = math.exp %611 : vector<32x32xf32>
    %cst_362 = arith.constant 1.000000e+00 : f32
    %613 = vector.broadcast %cst_362 : f32 to vector<32x32xf32>
    %614 = arith.subf %612, %613 : vector<32x32xf32>
    %615 = arith.select %609, %607, %614 : vector<32x32xi1>, vector<32x32xf32>
    %c0_363 = arith.constant 0 : index
    %c0_364 = arith.constant 0 : index
    %616 = vector.load %arg31[%c0_363, %c0_364] : memref<192x32xbf16, #tpu.memory_space<vmem>>, vector<192x32xbf16>
    %617 = arith.truncf %615 : vector<32x32xf32> to vector<32x32xbf16>
    %cst_365 = arith.constant dense<0.000000e+00> : vector<192x32xf32>
    %618 = tpu.matmul %616, %617, %cst_365 {dimension_numbers = #tpu.dot_dimension_numbers<[1], [0], [0], [1], [0, 0, 1, 1], [], []>} : vector<192x32xbf16>, vector<32x32xbf16>, vector<192x32xf32> -> vector<192x32xf32>
    %619 = vector.extract_strided_slice %618 {offsets = [0, 0], sizes = [32, 32], strides = [1, 1]} : vector<192x32xf32> to vector<32x32xf32>
    %c0_366 = arith.constant 0 : index
    %c0_367 = arith.constant 0 : index
    %c0_368 = arith.constant 0 : index
    %620 = vector.load %arg32[%c0_366, %c0_367, %c0_368] : memref<6x32x6xbf16, #tpu.memory_space<vmem>>, vector<1x32x6xbf16>
    %621 = vector.shape_cast %620 : vector<1x32x6xbf16> to vector<32x6xbf16>
    %622 = arith.truncf %619 : vector<32x32xf32> to vector<32x32xbf16>
    %cst_369 = arith.constant dense<0.000000e+00> : vector<32x6xf32>
    %623 = tpu.matmul %622, %621, %cst_369 {dimension_numbers = #tpu.dot_dimension_numbers<[1], [0], [0], [1], [0, 0, 1, 1], [], []>} : vector<32x32xbf16>, vector<32x6xbf16>, vector<32x6xf32> -> vector<32x6xf32>
    %624 = vector.extract_strided_slice %618 {offsets = [32, 0], sizes = [32, 32], strides = [1, 1]} : vector<192x32xf32> to vector<32x32xf32>
    %c1_370 = arith.constant 1 : index
    %c0_371 = arith.constant 0 : index
    %c0_372 = arith.constant 0 : index
    %625 = vector.load %arg32[%c1_370, %c0_371, %c0_372] : memref<6x32x6xbf16, #tpu.memory_space<vmem>>, vector<1x32x6xbf16>
    %626 = vector.shape_cast %625 : vector<1x32x6xbf16> to vector<32x6xbf16>
    %627 = arith.truncf %624 : vector<32x32xf32> to vector<32x32xbf16>
    %cst_373 = arith.constant dense<0.000000e+00> : vector<32x6xf32>
    %628 = tpu.matmul %627, %626, %cst_373 {dimension_numbers = #tpu.dot_dimension_numbers<[1], [0], [0], [1], [0, 0, 1, 1], [], []>} : vector<32x32xbf16>, vector<32x6xbf16>, vector<32x6xf32> -> vector<32x6xf32>
    %629 = arith.addf %623, %628 : vector<32x6xf32>
    %630 = vector.extract_strided_slice %618 {offsets = [64, 0], sizes = [32, 32], strides = [1, 1]} : vector<192x32xf32> to vector<32x32xf32>
    %c2_374 = arith.constant 2 : index
    %c0_375 = arith.constant 0 : index
    %c0_376 = arith.constant 0 : index
    %631 = vector.load %arg32[%c2_374, %c0_375, %c0_376] : memref<6x32x6xbf16, #tpu.memory_space<vmem>>, vector<1x32x6xbf16>
    %632 = vector.shape_cast %631 : vector<1x32x6xbf16> to vector<32x6xbf16>
    %633 = arith.truncf %630 : vector<32x32xf32> to vector<32x32xbf16>
    %cst_377 = arith.constant dense<0.000000e+00> : vector<32x6xf32>
    %634 = tpu.matmul %633, %632, %cst_377 {dimension_numbers = #tpu.dot_dimension_numbers<[1], [0], [0], [1], [0, 0, 1, 1], [], []>} : vector<32x32xbf16>, vector<32x6xbf16>, vector<32x6xf32> -> vector<32x6xf32>
    %635 = arith.addf %629, %634 : vector<32x6xf32>
    %636 = vector.extract_strided_slice %618 {offsets = [96, 0], sizes = [32, 32], strides = [1, 1]} : vector<192x32xf32> to vector<32x32xf32>
    %c3_378 = arith.constant 3 : index
    %c0_379 = arith.constant 0 : index
    %c0_380 = arith.constant 0 : index
    %637 = vector.load %arg32[%c3_378, %c0_379, %c0_380] : memref<6x32x6xbf16, #tpu.memory_space<vmem>>, vector<1x32x6xbf16>
    %638 = vector.shape_cast %637 : vector<1x32x6xbf16> to vector<32x6xbf16>
    %639 = arith.truncf %636 : vector<32x32xf32> to vector<32x32xbf16>
    %cst_381 = arith.constant dense<0.000000e+00> : vector<32x6xf32>
    %640 = tpu.matmul %639, %638, %cst_381 {dimension_numbers = #tpu.dot_dimension_numbers<[1], [0], [0], [1], [0, 0, 1, 1], [], []>} : vector<32x32xbf16>, vector<32x6xbf16>, vector<32x6xf32> -> vector<32x6xf32>
    %641 = arith.addf %635, %640 : vector<32x6xf32>
    %642 = vector.extract_strided_slice %618 {offsets = [128, 0], sizes = [32, 32], strides = [1, 1]} : vector<192x32xf32> to vector<32x32xf32>
    %c4_382 = arith.constant 4 : index
    %c0_383 = arith.constant 0 : index
    %c0_384 = arith.constant 0 : index
    %643 = vector.load %arg32[%c4_382, %c0_383, %c0_384] : memref<6x32x6xbf16, #tpu.memory_space<vmem>>, vector<1x32x6xbf16>
    %644 = vector.shape_cast %643 : vector<1x32x6xbf16> to vector<32x6xbf16>
    %645 = arith.truncf %642 : vector<32x32xf32> to vector<32x32xbf16>
    %cst_385 = arith.constant dense<0.000000e+00> : vector<32x6xf32>
    %646 = tpu.matmul %645, %644, %cst_385 {dimension_numbers = #tpu.dot_dimension_numbers<[1], [0], [0], [1], [0, 0, 1, 1], [], []>} : vector<32x32xbf16>, vector<32x6xbf16>, vector<32x6xf32> -> vector<32x6xf32>
    %647 = arith.addf %641, %646 : vector<32x6xf32>
    %648 = vector.extract_strided_slice %618 {offsets = [160, 0], sizes = [32, 32], strides = [1, 1]} : vector<192x32xf32> to vector<32x32xf32>
    %c5_386 = arith.constant 5 : index
    %c0_387 = arith.constant 0 : index
    %c0_388 = arith.constant 0 : index
    %649 = vector.load %arg32[%c5_386, %c0_387, %c0_388] : memref<6x32x6xbf16, #tpu.memory_space<vmem>>, vector<1x32x6xbf16>
    %650 = vector.shape_cast %649 : vector<1x32x6xbf16> to vector<32x6xbf16>
    %651 = arith.truncf %648 : vector<32x32xf32> to vector<32x32xbf16>
    %cst_389 = arith.constant dense<0.000000e+00> : vector<32x6xf32>
    %652 = tpu.matmul %651, %650, %cst_389 {dimension_numbers = #tpu.dot_dimension_numbers<[1], [0], [0], [1], [0, 0, 1, 1], [], []>} : vector<32x32xbf16>, vector<32x6xbf16>, vector<32x6xf32> -> vector<32x6xf32>
    %653 = arith.addf %647, %652 : vector<32x6xf32>
    %c0_390 = arith.constant 0 : index
    %c0_391 = arith.constant 0 : index
    %654 = vector.load %arg33[%c0_390, %c0_391] : memref<1x6xf32, #tpu.memory_space<vmem>>, vector<1x6xf32>
    %655 = vector.broadcast %654 : vector<1x6xf32> to vector<32x6xf32>
    %656 = arith.addf %653, %655 : vector<32x6xf32>
    %c0_392 = arith.constant 0 : index
    %c0_393 = arith.constant 0 : index
    %657 = vector.load %arg34[%c0_392, %c0_393] : memref<32x6xf32, #tpu.memory_space<vmem>>, vector<32x6xf32>
    tpu.vector_store %arg34[%c0_392, %c0_393], %656 {strides = array<i32>} : memref<32x6xf32, #tpu.memory_space<vmem>>, vector<32x6xf32>,
    return
  }
}

</mosaic_0001>

<bundles_post_ra>
// kernel: forward.1
= control target key start
LH: loop header
LB: loop body
LE: loop exit
PB: predicated region body
PF: predicated region fallthrough
CT: control target
= control target key end

     0   :  { %s10310_s6 = smov 1   ;;  %s10311_s10 = smov 2   ;;  %s11279_s0 = inlined_call_operand.smem [shape: u32[35], index: -1, kind: input, shape index: {}] }
   0x1   :  { %s10377_s5 = sld [smem:[%s11279_s0]]   ;;  %s10312_s14 = smov 3  }
   0x2   :  { %s10382_s9 = sld [smem:[%s11279_s0 + %s10310_s6]]   ;;  %s10313_s18 = smov 4  }
   0x3   :  { %s10387_s13 = sld [smem:[%s11279_s0 + %s10311_s10]]   ;;  %s10314_s22 = smov 5  }
   0x4   :  { %s10392_s17 = sld [smem:[%s11279_s0 + %s10312_s14]]   ;;  %s10315_s26 = smov 6  }
   0x5   :  { %s10397_s21 = sld [smem:[%s11279_s0 + %s10313_s18]]   ;;  %s10316_s30 = smov 7  }
   0x6   :  { %s10402_s25 = sld [smem:[%s11279_s0 + %s10314_s22]]   ;;  %s10317_s4 = smov 8  }
   0x7   :  { %11286 = sst [smem:[#allocation41_spill]] %s10377_s5  ;;  %s10318_s10 = smov 9  }
   0x8   :  { %11287 = sst [smem:[#allocation42_spill]] %s10382_s9  ;;  %s10319_s15 = smov 10  }
   0x9   :  { %s10407_s29 = sld [smem:[%s11279_s0 + %s10315_s26]]   ;;  %s10320_s20 = smov 11  }
   0xa   :  { %s10412_s3 = sld [smem:[%s11279_s0 + %s10316_s30]]   ;;  %s10321_s26 = smov 12  }
   0xb   :  { %s10417_s8 = sld [smem:[%s11279_s0 + %s10317_s4]]   ;;  %s10322_s1 = smov 13  }
   0xc   :  { %s10422_s14 = sld [smem:[%s11279_s0 + %s10318_s10]]   ;;  %s10323_s7 = smov 14  }
   0xd   :  { %s10427_s19 = sld [smem:[%s11279_s0 + %s10319_s15]]   ;;  %s10324_s15 = smov 15  }
   0xe   :  { %s10432_s24 = sld [smem:[%s11279_s0 + %s10320_s20]]   ;;  %s10325_s22 = smov 16  }
   0xf   :  { %s10437_s30 = sld [smem:[%s11279_s0 + %s10321_s26]]   ;;  %s10326_s28 = smov 17  }
  0x10   :  { %s10442_s6 = sld [smem:[%s11279_s0 + %s10322_s1]]  }
  0x11   :  { %s10447_s12 = sld [smem:[%s11279_s0 + %s10323_s7]]   ;;  %s10327_s7 = smov 18  }
  0x12   :  { %s10452_s20 = sld [smem:[%s11279_s0 + %s10324_s15]]   ;;  %s10328_s15 = smov 19  }
  0x13   :  { %11288 = sst [smem:[#allocation43_spill]] %s10427_s19 }
  0x14   :  { %11289 = sst [smem:[#allocation44_spill]] %s10432_s24 }
  0x15   :  { %11290 = sst [smem:[#allocation45_spill]] %s10437_s30 }
  0x16   :  { %11291 = sst [smem:[#allocation46_spill]] %s10442_s6 }
  0x17   :  { %s10457_s27 = sld [smem:[%s11279_s0 + %s10325_s22]]   ;;  %s10329_s22 = smov 20  }
  0x18   :  { %s10462_s4 = sld [smem:[%s11279_s0 + %s10326_s28]]   ;;  %s10330_s28 = smov 21  }
  0x19   :  { %s10467_s9 = sld [smem:[%s11279_s0 + %s10327_s7]]   ;;  %s10331_s7 = smov 22  }
  0x1a   :  { %s10472_s6 = sld [smem:[%s11279_s0 + %s10328_s15]]   ;;  %s10332_s15 = smov 23  }
  0x1b   :  { %s10482_s30 = sld [smem:[%s11279_s0 + %s10330_s28]]   ;;  %s10334_s28 = smov 25  }
  0x1c   :  { %s10492_s24 = sld [smem:[%s11279_s0 + %s10332_s15]]   ;;  %s10336_s15 = smov 27  }
  0x1d   :  { %11292 = sst [smem:[#allocation47_spill]] %s10457_s27 }
  0x1e   :  { %s10477_s27 = sld [smem:[%s11279_s0 + %s10329_s22]]   ;;  %s10333_s22 = smov 24  }
  0x1f   :  { %11293 = sst [smem:[#allocation48_spill]] %s10467_s9 }
  0x20   :  { %s10487_s9 = sld [smem:[%s11279_s0 + %s10331_s7]]   ;;  %s10335_s7 = smov 26  }
  0x21   :  { %11295 = sst [smem:[#allocation50_spill]] %s10482_s30 }
  0x22   :  { %11296 = sst [smem:[#allocation51_spill]] %s10492_s24 }
  0x23   :  { %s10502_s19 = sld [smem:[%s11279_s0 + %s10334_s28]]   ;;  %s10338_s28 = smov 29  }
  0x24   :  { %11294 = sst [smem:[#allocation49_spill]] %s10477_s27 }
  0x25   :  { %s10497_s27 = sld [smem:[%s11279_s0 + %s10333_s22]]   ;;  %s10337_s22 = smov 28  }
  0x26   :  { %s10507_s5 = sld [smem:[%s11279_s0 + %s10335_s7]]   ;;  %s10339_s7 = smov 30  }
  0x27   :  { %s10512_s24 = sld [smem:[%s11279_s0 + %s10336_s15]]   ;;  %s10340_s15 = smov 31  }
  0x28   :  { %s10522_s30 = sld [smem:[%s11279_s0 + %s10338_s28]]   ;;  %s10342_s28 = smov 33  }
  0x2b   :  { %11297 = sst [smem:[#allocation52_spill]] %s10497_s27 }
  0x2c   :  { %11298 = sst [smem:[#allocation53_spill]] %s10507_s5 }
  0x2d   :  { %11299 = sst [smem:[#allocation54_spill]] %s10512_s24 }
  0x2e   :  { %s10517_s27 = sld [smem:[%s11279_s0 + %s10337_s22]]   ;;  %s10341_s22 = smov 32  }
  0x2f   :  { %11301 = sst [smem:[#allocation56_spill]] %s10522_s30 }
  0x30   :  { %s10527_s5 = sld [smem:[%s11279_s0 + %s10339_s7]]   ;;  %s10343_s7 = smov 34  }
  0x31   :  { %s10532_s24 = sld [smem:[%s11279_s0 + %s10340_s15]]  }
  0x32   :  { %s10542_s30 = sld [smem:[%s11279_s0 + %s10342_s28]]  }
  0x34   :  { %11300 = sst [smem:[#allocation55_spill]] %s10517_s27 }
  0x35   :  { %s10537_s27 = sld [smem:[%s11279_s0 + %s10341_s22]]  }
  0x36   :  { %11302 = sst [smem:[#allocation57_spill]] %s10527_s5 }
  0x37   :  { %s10547_s5 = sld [smem:[%s11279_s0 + %s10343_s7]]  }
  0x38   :  { %74 = vsyncpa [#allocation3], 0 }
  0x39   :  { %75 = vsyncpa [#allocation5], 0 }
  0x3a   :  { %76 = vsyncpa [#allocation8], 0 }
  0x3b   :  { %77 = vsyncpa [#allocation11], 0 }
  0x3c   :  { %78 = vsyncpa [#allocation14], 0 }
  0x3d   :  { %79 = vsyncpa [#allocation17], 0 }
  0x3e   :  { %80 = vsyncpa [#allocation20], 0 }
  0x3f   :  { %81 = vsyncpa [#allocation23], 0 }
  0x40   :  { %82 = vsyncpa [#allocation26], 0 }
  0x41   :  { %83 = vsyncpa [#allocation29], 0  ;;  %s10344_s15 = smov [#allocation4]   ;;  %s10345_s18 = smov [#allocation7]  }
  0x42   :  { %s105_s16 = sshll.u32 %s10344_s15, 4  ;;  %s129_s22 = sshll.u32 %s10345_s18, 4  ;;  %s106_s16 = int_to_ptr.vmem [resolvable:$true] %s105_s16  ;;  %s10549_s22 = int_to_ptr.vmem [resolvable:$true] %s129_s22 }
  0x43   :  { %s9872_s0 = scalar_lea.hbm %s10392_s17, 1152 }
  0x44   :  { %p9873_p0 = scmp.ne.s32.totalorder %s10392_s17, %s9872_s0  ;;  %p9876_p1 = scmp.lt.u32.totalorder %s9872_s0, %s10392_s17 }
  0x46   :  { %p9878_p2 = pnand %p9876_p1, %p9873_p0 }
  0x48   :  { %9881 = shalt.err (!%p9878_p2)
}
  0x49   :  { %s9882_s23 = scalar_lea.vmem %s106_s16, 1152  ;;  %p9887_p4 = scmp.lt.s32.totalorder %s106_s16, %s106_s16 }
  0x4a   :  { %p9883_p3 = scmp.ne.s32.totalorder %s106_s16, %s9882_s23  ;;  %p9888_p5 = scmp.lt.s32.totalorder %s9882_s23, %s9882_s23 }
  0x4c   :  { %p9889_p6 = por %p9888_p5, %p9887_p4 }
  0x4e   :  { %p9890_p7 = pnand %p9889_p6, %p9883_p3 }
  0x50   :  { %9893 = shalt.err (!%p9890_p7)
}
  0x51   :  { %s10346_s26 = smov 64   ;;  %s10347_s28 = smov 4  }
  0x52   :  { %111 = dma.hbm_to_vmem [thread:$0]  %s10392_s17, 1152, %s106_s16, [#allocation5], %s10346_s26, %s10346_s26, %s10347_s28  }
  0x53   :  { %s9894_s1 = scalar_lea.hbm %s10402_s25, 768 }
  0x54   :  { %p9895_p8 = scmp.ne.s32.totalorder %s10402_s25, %s9894_s1  ;;  %p9898_p9 = scmp.lt.u32.totalorder %s9894_s1, %s10402_s25 }
  0x56   :  { %p9900_p10 = pnand %p9898_p9, %p9895_p8 }
  0x58   :  { %9903 = shalt.err (!%p9900_p10)
}
  0x59   :  { %s9904_s2 = scalar_lea.vmem %s10549_s22, 768  ;;  %p9909_p12 = scmp.lt.s32.totalorder %s10549_s22, %s10549_s22 }
  0x5a   :  { %p9905_p11 = scmp.ne.s32.totalorder %s10549_s22, %s9904_s2  ;;  %p9910_p13 = scmp.lt.s32.totalorder %s9904_s2, %s9904_s2 }
  0x5c   :  { %p9911_p0 = por %p9910_p13, %p9909_p12 }
  0x5e   :  { %p9912_p1 = pnand %p9911_p0, %p9905_p11 }
  0x60   :  { %9915 = shalt.err (!%p9912_p1)
}
  0x61   :  { %135 = dma.hbm_to_vmem [thread:$0]  %s10402_s25, 768, %s10549_s22, [#allocation8], %s10346_s26, %s10346_s26, %s10347_s28  }
  0x62   :  { %s10348_s17 = smov [#allocation10]   ;;  %s10349_s10 = smov [#allocation13]  }
  0x63   :  { %s153_s7 = sshll.u32 %s10348_s17, 4  ;;  %s177_s11 = sshll.u32 %s10349_s10, 4  ;;  %s154_s7 = int_to_ptr.vmem [resolvable:$true] %s153_s7  ;;  %s10570_s11 = int_to_ptr.vmem [resolvable:$true] %s177_s11 }
  0x64   :  { %s9916_s15 = scalar_lea.hbm %s10412_s3, 1536 }
  0x65   :  { %p9917_p2 = scmp.ne.s32.totalorder %s10412_s3, %s9916_s15  ;;  %p9920_p3 = scmp.lt.u32.totalorder %s9916_s15, %s10412_s3 }
  0x67   :  { %p9922_p4 = pnand %p9920_p3, %p9917_p2 }
  0x69   :  { %9925 = shalt.err (!%p9922_p4)
}
  0x6a   :  { %s9926_s16 = scalar_lea.vmem %s154_s7, 1536  ;;  %p9931_p6 = scmp.lt.s32.totalorder %s154_s7, %s154_s7 }
  0x6b   :  { %p9927_p5 = scmp.ne.s32.totalorder %s154_s7, %s9926_s16  ;;  %p9932_p7 = scmp.lt.s32.totalorder %s9926_s16, %s9926_s16 }
  0x6d   :  { %p9933_p8 = por %p9932_p7, %p9931_p6 }
  0x6f   :  { %p9934_p9 = pnand %p9933_p8, %p9927_p5 }
  0x71   :  { %9937 = shalt.err (!%p9934_p9)
}
  0x72   :  { %159 = dma.hbm_to_vmem [thread:$0]  %s10412_s3, 1536, %s154_s7, [#allocation11], %s10346_s26, %s10346_s26, %s10347_s28  }
  0x73   :  { %s9938_s25 = scalar_lea.hbm %s10422_s14, 1536 }
  0x74   :  { %p9939_p10 = scmp.ne.s32.totalorder %s10422_s14, %s9938_s25  ;;  %p9942_p11 = scmp.lt.u32.totalorder %s9938_s25, %s10422_s14 }
  0x76   :  { %p9944_p12 = pnand %p9942_p11, %p9939_p10 }
  0x78   :  { %9947 = shalt.err (!%p9944_p12)
}
  0x79   :  { %s9948_s18 = scalar_lea.vmem %s10570_s11, 1536  ;;  %p9953_p0 = scmp.lt.s32.totalorder %s10570_s11, %s10570_s11 }
  0x7a   :  { %p9949_p13 = scmp.ne.s32.totalorder %s10570_s11, %s9948_s18  ;;  %p9954_p1 = scmp.lt.s32.totalorder %s9948_s18, %s9948_s18 }
  0x7c   :  { %p9955_p2 = por %p9954_p1, %p9953_p0 }
  0x7e   :  { %p9956_p3 = pnand %p9955_p2, %p9949_p13 }
  0x80   :  { %9959 = shalt.err (!%p9956_p3)
}
  0x81   :  { %183 = dma.hbm_to_vmem [thread:$0]  %s10422_s14, 1536, %s10570_s11, [#allocation14], %s10346_s26, %s10346_s26, %s10347_s28  }
  0x82   :  { %s10350_s3 = smov [#allocation16]   ;;  %s10351_s0 = smov [#allocation19]  }
  0x83   :  { %s207_s22 = sshll.u32 %s10350_s3, 4  ;;  %s235_s23 = sshll.u32 %s10351_s0, 4  ;;  %s208_s22 = int_to_ptr.vmem [resolvable:$true] %s207_s22  ;;  %s10591_s23 = int_to_ptr.vmem [resolvable:$true] %s235_s23 }
  0x84   :  { %s9960_s1 = scalar_lea.hbm %s10452_s20, 4096 }
  0x85   :  { %p9961_p4 = scmp.ne.s32.totalorder %s10452_s20, %s9960_s1  ;;  %p9964_p5 = scmp.lt.u32.totalorder %s9960_s1, %s10452_s20 }
  0x87   :  { %p9966_p6 = pnand %p9964_p5, %p9961_p4 }
  0x89   :  { %9969 = shalt.err (!%p9966_p6)
}
  0x8a   :  { %s9970_s2 = scalar_lea.vmem %s208_s22, 4096  ;;  %p9975_p8 = scmp.lt.s32.totalorder %s208_s22, %s208_s22 }
  0x8b   :  { %p9971_p7 = scmp.ne.s32.totalorder %s208_s22, %s9970_s2  ;;  %p9976_p9 = scmp.lt.s32.totalorder %s9970_s2, %s9970_s2 }
  0x8d   :  { %p9977_p10 = por %p9976_p9, %p9975_p8 }
  0x8f   :  { %p9978_p11 = pnand %p9977_p10, %p9971_p7 }
  0x91   :  { %9981 = shalt.err (!%p9978_p11)
}
  0x92   :  { %213 = dma.hbm_to_vmem [thread:$0]  %s10452_s20, 4096, %s208_s22, [#allocation17], %s10346_s26, %s10346_s26, %s10347_s28  }
  0x93   :  { %s9982_s14 = scalar_lea.hbm %s10472_s6, 768 }
  0x94   :  { %p9983_p12 = scmp.ne.s32.totalorder %s10472_s6, %s9982_s14  ;;  %p9986_p13 = scmp.lt.u32.totalorder %s9982_s14, %s10472_s6 }
  0x96   :  { %p9988_p0 = pnand %p9986_p13, %p9983_p12 }
  0x98   :  { %9991 = shalt.err (!%p9988_p0)
}
  0x99   :  { %s9992_s17 = scalar_lea.vmem %s10591_s23, 768  ;;  %p9997_p2 = scmp.lt.s32.totalorder %s10591_s23, %s10591_s23 }
  0x9a   :  { %p9993_p1 = scmp.ne.s32.totalorder %s10591_s23, %s9992_s17  ;;  %p9998_p3 = scmp.lt.s32.totalorder %s9992_s17, %s9992_s17 }
  0x9c   :  { %p9999_p4 = por %p9998_p3, %p9997_p2 }
  0x9e   :  { %p10000_p5 = pnand %p9999_p4, %p9993_p1 }
  0xa0   :  { %10003 = shalt.err (!%p10000_p5)
}
  0xa1   :  { %241 = dma.hbm_to_vmem [thread:$0]  %s10472_s6, 768, %s10591_s23, [#allocation20], %s10346_s26, %s10346_s26, %s10347_s28  }
  0xa2   :  { %s10352_s20 = smov [#allocation22]   ;;  %s10353_s10 = smov [#allocation25]  }
  0xa3   :  { %s261_s7 = sshll.u32 %s10352_s20, 4  ;;  %s287_s11 = sshll.u32 %s10353_s10, 4  ;;  %s262_s7 = int_to_ptr.vmem [resolvable:$true] %s261_s7  ;;  %s10612_s11 = int_to_ptr.vmem [resolvable:$true] %s287_s11 }
  0xa4   :  { %s10004_s15 = scalar_lea.hbm %s10487_s9, 1536 }
  0xa5   :  { %p10005_p6 = scmp.ne.s32.totalorder %s10487_s9, %s10004_s15  ;;  %p10008_p7 = scmp.lt.u32.totalorder %s10004_s15, %s10487_s9 }
  0xa7   :  { %p10010_p8 = pnand %p10008_p7, %p10005_p6 }
  0xa9   :  { %10013 = shalt.err (!%p10010_p8)
}
  0xaa   :  { %s10014_s16 = scalar_lea.vmem %s262_s7, 1536  ;;  %p10019_p10 = scmp.lt.s32.totalorder %s262_s7, %s262_s7 }
  0xab   :  { %p10015_p9 = scmp.ne.s32.totalorder %s262_s7, %s10014_s16  ;;  %p10020_p11 = scmp.lt.s32.totalorder %s10014_s16, %s10014_s16 }
  0xad   :  { %p10021_p12 = por %p10020_p11, %p10019_p10 }
  0xaf   :  { %p10022_p13 = pnand %p10021_p12, %p10015_p9 }
  0xb1   :  { %10025 = shalt.err (!%p10022_p13)
}
  0xb2   :  { %267 = dma.hbm_to_vmem [thread:$0]  %s10487_s9, 1536, %s262_s7, [#allocation23], %s10346_s26, %s10346_s26, %s10347_s28  }
  0xb3   :  { %s10026_s6 = scalar_lea.hbm %s10502_s19, 1536 }
  0xb4   :  { %p10027_p0 = scmp.ne.s32.totalorder %s10502_s19, %s10026_s6  ;;  %p10030_p1 = scmp.lt.u32.totalorder %s10026_s6, %s10502_s19 }
  0xb6   :  { %p10032_p2 = pnand %p10030_p1, %p10027_p0 }
  0xb8   :  { %10035 = shalt.err (!%p10032_p2)
}
  0xb9   :  { %s10036_s25 = scalar_lea.vmem %s10612_s11, 1536  ;;  %p10041_p4 = scmp.lt.s32.totalorder %s10612_s11, %s10612_s11 }
  0xba   :  { %p10037_p3 = scmp.ne.s32.totalorder %s10612_s11, %s10036_s25  ;;  %p10042_p5 = scmp.lt.s32.totalorder %s10036_s25, %s10036_s25 }
  0xbc   :  { %p10043_p6 = por %p10042_p5, %p10041_p4 }
  0xbe   :  { %p10044_p7 = pnand %p10043_p6, %p10037_p3 }
  0xc0   :  { %10047 = shalt.err (!%p10044_p7)
}
  0xc1   :  { %293 = dma.hbm_to_vmem [thread:$0]  %s10502_s19, 1536, %s10612_s11, [#allocation26], %s10346_s26, %s10346_s26, %s10347_s28  }
  0xc2   :  { %s10354_s9 = smov [#allocation28]   ;;  %s10355_s3 = smov [#allocation2]  }
  0xc3   :  { %s319_s18 = sshll.u32 %s10354_s9, 4  ;;  %s93_s22 = sshll.u32 %s10355_s3, 4  ;;  %s320_s18 = int_to_ptr.vmem [resolvable:$true] %s319_s18  ;;  %s10633_s22 = int_to_ptr.vmem [resolvable:$true] %s93_s22 }
  0xc4   :  { %s10048_s0 = scalar_lea.hbm %s10532_s24, 1536 }
  0xc5   :  { %p10049_p8 = scmp.ne.s32.totalorder %s10532_s24, %s10048_s0  ;;  %p10052_p9 = scmp.lt.u32.totalorder %s10048_s0, %s10532_s24 }
  0xc7   :  { %p10054_p10 = pnand %p10052_p9, %p10049_p8 }
  0xc9   :  { %10057 = shalt.err (!%p10054_p10)
}
  0xca   :  { %s10058_s23 = scalar_lea.vmem %s320_s18, 1536  ;;  %p10063_p12 = scmp.lt.s32.totalorder %s320_s18, %s320_s18 }
  0xcb   :  { %p10059_p11 = scmp.ne.s32.totalorder %s320_s18, %s10058_s23  ;;  %p10064_p13 = scmp.lt.s32.totalorder %s10058_s23, %s10058_s23 }
  0xcd   :  { %p10065_p0 = por %p10064_p13, %p10063_p12 }
  0xcf   :  { %p10066_p1 = pnand %p10065_p0, %p10059_p11 }
  0xd1   :  { %10069 = shalt.err (!%p10066_p1)
}
  0xd2   :  { %325 = dma.hbm_to_vmem [thread:$0]  %s10532_s24, 1536, %s320_s18, [#allocation29], %s10346_s26, %s10346_s26, %s10347_s28  }
  0xd3   :  { %s10070_s19 = scalar_lea.hbm %s10387_s13, 1536 }
  0xd4   :  { %p10071_p2 = scmp.ne.s32.totalorder %s10387_s13, %s10070_s19  ;;  %p10074_p3 = scmp.lt.u32.totalorder %s10070_s19, %s10387_s13 }
  0xd6   :  { %p10076_p4 = pnand %p10074_p3, %p10071_p2 }
  0xd8   :  { %10079 = shalt.err (!%p10076_p4)
}
  0xd9   :  { %s10080_s1 = scalar_lea.vmem %s10633_s22, 1536  ;;  %p10085_p6 = scmp.lt.s32.totalorder %s10633_s22, %s10633_s22 }
  0xda   :  { %p10081_p5 = scmp.ne.s32.totalorder %s10633_s22, %s10080_s1  ;;  %p10086_p7 = scmp.lt.s32.totalorder %s10080_s1, %s10080_s1 }
  0xdc   :  { %p10087_p8 = por %p10086_p7, %p10085_p6 }
  0xde   :  { %p10088_p9 = pnand %p10087_p8, %p10081_p5 }
  0xe0   :  { %10091 = shalt.err (!%p10088_p9)
}
  0xe1   :  { %99 = dma.hbm_to_vmem [thread:$0]  %s10387_s13, 1536, %s10633_s22, [#allocation3], %s10346_s26, %s10346_s26, %s10347_s28  }
  0xe2   :  { %s10356_s24 = smov [#allocation6]   ;;  %s10357_s14 = smov [#allocation9]  }
  0xe3   :  { %s117_s2 = sshll.u32 %s10356_s24, 4  ;;  %s141_s17 = sshll.u32 %s10357_s14, 4  ;;  %s118_s2 = int_to_ptr.vmem [resolvable:$true] %s117_s2  ;;  %s10654_s17 = int_to_ptr.vmem [resolvable:$true] %s141_s17 }
  0xe4   :  { %s10092_s20 = scalar_lea.hbm %s10397_s21, 768 }
  0xe5   :  { %p10093_p10 = scmp.ne.s32.totalorder %s10397_s21, %s10092_s20  ;;  %p10096_p11 = scmp.lt.u32.totalorder %s10092_s20, %s10397_s21 }
  0xe7   :  { %p10098_p12 = pnand %p10096_p11, %p10093_p10 }
  0xe9   :  { %10101 = shalt.err (!%p10098_p12)
}
  0xea   :  { %s10102_s7 = scalar_lea.vmem %s118_s2, 768  ;;  %p10107_p0 = scmp.lt.s32.totalorder %s118_s2, %s118_s2 }
  0xeb   :  { %p10103_p13 = scmp.ne.s32.totalorder %s118_s2, %s10102_s7  ;;  %p10108_p1 = scmp.lt.s32.totalorder %s10102_s7, %s10102_s7 }
  0xed   :  { %p10109_p2 = por %p10108_p1, %p10107_p0 }
  0xef   :  { %p10110_p3 = pnand %p10109_p2, %p10103_p13 }
  0xf1   :  { %10113 = shalt.err (!%p10110_p3)
}
  0xf2   :  { %123 = dma.hbm_to_vmem [thread:$0]  %s10397_s21, 768, %s118_s2, [#allocation5], %s10346_s26, %s10346_s26, %s10347_s28  }
  0xf3   :  { %s10114_s13 = scalar_lea.hbm %s10407_s29, 384 }
  0xf4   :  { %p10115_p4 = scmp.ne.s32.totalorder %s10407_s29, %s10114_s13  ;;  %p10118_p5 = scmp.lt.u32.totalorder %s10114_s13, %s10407_s29 }
  0xf6   :  { %p10120_p6 = pnand %p10118_p5, %p10115_p4 }
  0xf8   :  { %10123 = shalt.err (!%p10120_p6)
}
  0xf9   :  { %s10124_s10 = scalar_lea.vmem %s10654_s17, 384  ;;  %p10129_p8 = scmp.lt.s32.totalorder %s10654_s17, %s10654_s17 }
  0xfa   :  { %p10125_p7 = scmp.ne.s32.totalorder %s10654_s17, %s10124_s10  ;;  %p10130_p9 = scmp.lt.s32.totalorder %s10124_s10, %s10124_s10 }
  0xfc   :  { %p10131_p10 = por %p10130_p9, %p10129_p8 }
  0xfe   :  { %p10132_p11 = pnand %p10131_p10, %p10125_p7 }
 0x100   :  { %10135 = shalt.err (!%p10132_p11)
}
 0x101   :  { %147 = dma.hbm_to_vmem [thread:$0]  %s10407_s29, 384, %s10654_s17, [#allocation8], %s10346_s26, %s10346_s26, %s10347_s28  }
 0x102   :  { %s10358_s21 = smov [#allocation12]   ;;  %s10359_s15 = smov [#allocation15]  }
 0x103   :  { %s165_s11 = sshll.u32 %s10358_s21, 4  ;;  %s198_s16 = sshll.u32 %s10359_s15, 4  ;;  %s166_s11 = int_to_ptr.vmem [resolvable:$true] %s165_s11  ;;  %s199_s16 = int_to_ptr.vmem [resolvable:$true] %s198_s16 }
 0x104   :  { %s10136_s6 = scalar_lea.hbm %s10417_s8, 1536 }
 0x105   :  { %p10137_p12 = scmp.ne.s32.totalorder %s10417_s8, %s10136_s6  ;;  %p10140_p13 = scmp.lt.u32.totalorder %s10136_s6, %s10417_s8 }
 0x107   :  { %p10142_p0 = pnand %p10140_p13, %p10137_p12 }
 0x109   :  { %10145 = shalt.err (!%p10142_p0)
}
 0x10a   :  { %s10146_s25 = scalar_lea.vmem %s166_s11, 1536  ;;  %p10151_p2 = scmp.lt.s32.totalorder %s166_s11, %s166_s11 }
 0x10b   :  { %p10147_p1 = scmp.ne.s32.totalorder %s166_s11, %s10146_s25  ;;  %p10152_p3 = scmp.lt.s32.totalorder %s10146_s25, %s10146_s25 }
 0x10d   :  { %p10153_p4 = por %p10152_p3, %p10151_p2 }
 0x10f   :  { %p10154_p5 = pnand %p10153_p4, %p10147_p1 }
 0x111   :  { %10157 = shalt.err (!%p10154_p5)
}
 0x112   :  { %171 = dma.hbm_to_vmem [thread:$0]  %s10417_s8, 1536, %s166_s11, [#allocation11], %s10346_s26, %s10346_s26, %s10347_s28  }
 0x113   :  { %s10158_s29 = scalar_lea.hbm %s10447_s12, 64 }
 0x114   :  { %p10159_p6 = scmp.ne.s32.totalorder %s10447_s12, %s10158_s29  ;;  %p10162_p7 = scmp.lt.u32.totalorder %s10158_s29, %s10447_s12 }
 0x116   :  { %p10164_p8 = pnand %p10162_p7, %p10159_p6 }
 0x118   :  { %10167 = shalt.err (!%p10164_p8)
}
 0x119   :  { %s10168_s9 = scalar_lea.vmem %s199_s16, 64  ;;  %p10173_p10 = scmp.lt.s32.totalorder %s199_s16, %s199_s16 }
 0x11a   :  { %p10169_p9 = scmp.ne.s32.totalorder %s199_s16, %s10168_s9  ;;  %p10174_p11 = scmp.lt.s32.totalorder %s10168_s9, %s10168_s9 }
 0x11c   :  { %p10175_p12 = por %p10174_p11, %p10173_p10 }
 0x11e   :  { %p10176_p13 = pnand %p10175_p12, %p10169_p9 }
 0x120   :  { %10179 = shalt.err (!%p10176_p13)
}
 0x121   :  { %201 = dma.hbm_to_vmem [thread:$0]  %s10447_s12, 64, %s199_s16, [#allocation14]  }
 0x122   :  { %s10360_s18 = smov [#allocation18]   ;;  %s10361_s8 = smov [#allocation21]  }
 0x123   :  { %s221_s3 = sshll.u32 %s10360_s18, 4  ;;  %s249_s22 = sshll.u32 %s10361_s8, 4  ;;  %s222_s3 = int_to_ptr.vmem [resolvable:$true] %s221_s3  ;;  %s10686_s22 = int_to_ptr.vmem [resolvable:$true] %s249_s22 }
 0x124   :  { %s10180_s0 = scalar_lea.hbm %s10462_s4, 1024 }
 0x125   :  { %p10181_p0 = scmp.ne.s32.totalorder %s10462_s4, %s10180_s0  ;;  %p10184_p1 = scmp.lt.u32.totalorder %s10180_s0, %s10462_s4 }
 0x127   :  { %p10186_p2 = pnand %p10184_p1, %p10181_p0 }
 0x129   :  { %10189 = shalt.err (!%p10186_p2)
}
 0x12a   :  { %s10190_s23 = scalar_lea.vmem %s222_s3, 1024  ;;  %p10195_p4 = scmp.lt.s32.totalorder %s222_s3, %s222_s3 }
 0x12b   :  { %p10191_p3 = scmp.ne.s32.totalorder %s222_s3, %s10190_s23  ;;  %p10196_p5 = scmp.lt.s32.totalorder %s10190_s23, %s10190_s23 }
 0x12d   :  { %p10197_p6 = por %p10196_p5, %p10195_p4 }
 0x12f   :  { %p10198_p7 = pnand %p10197_p6, %p10191_p3 }
 0x131   :  { %10201 = shalt.err (!%p10198_p7)
}
 0x132   :  { %s11303_s12 = sld [smem:[#allocation50_spill]] }
 0x133   :  { %227 = dma.hbm_to_vmem [thread:$0]  %s10462_s4, 1024, %s222_s3, [#allocation17], %s10346_s26, %s10346_s26, %s10347_s28  }
 0x138   :  { %s10202_s19 = scalar_lea.hbm %s11303_s12, 1152 }
 0x139   :  { %p10203_p8 = scmp.ne.s32.totalorder %s11303_s12, %s10202_s19  ;;  %p10206_p9 = scmp.lt.u32.totalorder %s10202_s19, %s11303_s12 }
 0x13b   :  { %p10208_p10 = pnand %p10206_p9, %p10203_p8 }
 0x13d   :  { %10211 = shalt.err (!%p10208_p10)
}
 0x13e   :  { %s10212_s1 = scalar_lea.vmem %s10686_s22, 1152  ;;  %p10217_p12 = scmp.lt.s32.totalorder %s10686_s22, %s10686_s22 }
 0x13f   :  { %p10213_p11 = scmp.ne.s32.totalorder %s10686_s22, %s10212_s1  ;;  %p10218_p13 = scmp.lt.s32.totalorder %s10212_s1, %s10212_s1 }
 0x141   :  { %p10219_p0 = por %p10218_p13, %p10217_p12 }
 0x143   :  { %p10220_p1 = pnand %p10219_p0, %p10213_p11 }
 0x145   :  { %10223 = shalt.err (!%p10220_p1)
}
 0x146   :  { %s11304_s4 = sld [smem:[#allocation51_spill]]  ;;  %s10362_s24 = smov [#allocation24]  }
 0x147   :  { %255 = dma.hbm_to_vmem [thread:$0]  %s11303_s12, 1152, %s10686_s22, [#allocation20], %s10346_s26, %s10346_s26, %s10347_s28  }
 0x148   :  { %s273_s2 = sshll.u32 %s10362_s24, 4  ;;  %s10363_s14 = smov [#allocation27]   ;;  %s274_s2 = int_to_ptr.vmem [resolvable:$true] %s273_s2 }
 0x149   :  { %s299_s17 = sshll.u32 %s10363_s14, 4  ;;  %s10707_s17 = int_to_ptr.vmem [resolvable:$true] %s299_s17 }
 0x14c   :  { %s10224_s20 = scalar_lea.hbm %s11304_s4, 3072 }
 0x14d   :  { %p10225_p2 = scmp.ne.s32.totalorder %s11304_s4, %s10224_s20  ;;  %p10228_p3 = scmp.lt.u32.totalorder %s10224_s20, %s11304_s4 }
 0x14f   :  { %p10230_p4 = pnand %p10228_p3, %p10225_p2 }
 0x151   :  { %10233 = shalt.err (!%p10230_p4)
}
 0x152   :  { %s10234_s7 = scalar_lea.vmem %s274_s2, 3072  ;;  %p10239_p6 = scmp.lt.s32.totalorder %s274_s2, %s274_s2 }
 0x153   :  { %p10235_p5 = scmp.ne.s32.totalorder %s274_s2, %s10234_s7  ;;  %p10240_p7 = scmp.lt.s32.totalorder %s10234_s7, %s10234_s7 }
 0x155   :  { %p10241_p8 = por %p10240_p7, %p10239_p6 }
 0x157   :  { %p10242_p9 = pnand %p10241_p8, %p10235_p5 }
 0x159   :  { %10245 = shalt.err (!%p10242_p9)
}
 0x15a   :  { %s11305_s13 = sld [smem:[#allocation53_spill]] }
 0x15b   :  { %279 = dma.hbm_to_vmem [thread:$0]  %s11304_s4, 3072, %s274_s2, [#allocation23], %s10346_s26, %s10346_s26, %s10347_s28  }
 0x160   :  { %s10246_s10 = scalar_lea.hbm %s11305_s13, 1536 }
 0x161   :  { %p10247_p10 = scmp.ne.s32.totalorder %s11305_s13, %s10246_s10  ;;  %p10250_p11 = scmp.lt.u32.totalorder %s10246_s10, %s11305_s13 }
 0x163   :  { %p10252_p12 = pnand %p10250_p11, %p10247_p10 }
 0x165   :  { %10255 = shalt.err (!%p10252_p12)
}
 0x166   :  { %s10256_s21 = scalar_lea.vmem %s10707_s17, 1536  ;;  %p10261_p0 = scmp.lt.s32.totalorder %s10707_s17, %s10707_s17 }
 0x167   :  { %p10257_p13 = scmp.ne.s32.totalorder %s10707_s17, %s10256_s21  ;;  %p10262_p1 = scmp.lt.s32.totalorder %s10256_s21, %s10256_s21 }
 0x169   :  { %p10263_p2 = por %p10262_p1, %p10261_p0 }
 0x16b   :  { %p10264_p3 = pnand %p10263_p2, %p10257_p13 }
 0x16d   :  { %10267 = shalt.err (!%p10264_p3)
}
 0x16e   :  { %305 = dma.hbm_to_vmem [thread:$0]  %s11305_s13, 1536, %s10707_s17, [#allocation26], %s10346_s26, %s10346_s26, %s10347_s28  }
 0x16f   :  { %s10364_s11 = smov [#allocation30]   ;;  %s10268_s16 = scalar_lea.hbm %s10537_s27, 1536 }
 0x170   :  { %s331_s15 = sshll.u32 %s10364_s11, 4  ;;  %p10269_p4 = scmp.ne.s32.totalorder %s10537_s27, %s10268_s16  ;;  %s332_s15 = int_to_ptr.vmem [resolvable:$true] %s331_s15 }
 0x171   :  { %p10272_p5 = scmp.lt.u32.totalorder %s10268_s16, %s10537_s27 }
 0x173   :  { %p10274_p6 = pnand %p10272_p5, %p10269_p4 }
 0x175   :  { %10277 = shalt.err (!%p10274_p6)
}
 0x176   :  { %s10278_s6 = scalar_lea.vmem %s332_s15, 1536  ;;  %p10283_p8 = scmp.lt.s32.totalorder %s332_s15, %s332_s15 }
 0x177   :  { %p10279_p7 = scmp.ne.s32.totalorder %s332_s15, %s10278_s6  ;;  %p10284_p9 = scmp.lt.s32.totalorder %s10278_s6, %s10278_s6 }
 0x179   :  { %p10285_p10 = por %p10284_p9, %p10283_p8 }
 0x17b   :  { %p10286_p11 = pnand %p10285_p10, %p10279_p7 }
 0x17d   :  { %10289 = shalt.err (!%p10286_p11)
}
 0x17e   :  { %337 = dma.hbm_to_vmem [thread:$0]  %s10537_s27, 1536, %s332_s15, [#allocation29], %s10346_s26, %s10346_s26, %s10347_s28  }
 0x17f   :  { %10290 = dma.done.wait [#allocation3], 1536  }
 0x180   :  { %10291 = vsyncadd [#allocation3], 4294965760 }
 0x181   :  { %10292 = dma.done.wait [#allocation5], 1920  }
 0x182   :  { %10293 = vsyncadd [#allocation5], 4294965376 }
 0x183   :  { %10294 = dma.done.wait [#allocation8], 1152  }
 0x184   :  { %10295 = vsyncadd [#allocation8], 4294966144 }
 0x185   :  { %10296 = dma.done.wait [#allocation11], 3072  }
 0x186   :  { %10297 = vsyncadd [#allocation11], 4294964224 }
 0x187   :  { %10298 = dma.done.wait [#allocation14], 1600  }
 0x188   :  { %10299 = vsyncadd [#allocation14], 4294965696 }
 0x189   :  { %10300 = dma.done.wait [#allocation17], 5120  }
 0x18a   :  { %10301 = vsyncadd [#allocation17], 4294962176 }
 0x18b   :  { %10302 = dma.done.wait [#allocation20], 1920  }
 0x18c   :  { %10303 = vsyncadd [#allocation20], 4294965376 }
 0x18d   :  { %10304 = dma.done.wait [#allocation23], 4608  }
 0x18e   :  { %10305 = vsyncadd [#allocation23], 4294962688 }
 0x18f   :  { %10306 = dma.done.wait [#allocation26], 3072  }
 0x190   :  { %10307 = vsyncadd [#allocation26], 4294964224 }
 0x191   :  { %10308 = dma.done.wait [#allocation29], 3072  }
 0x192   :  { %10309 = vsyncadd [#allocation29], 4294964224  ;;  %s11306_s27 = sld [smem:[#allocation41_spill]]  ;;  %vm488_vm0 = vcmask 261120   ;;  %v9544_v6 = vld [vmem:[#allocation2] sm:$0xff]   ;;  %v9545_v7 = vld [vmem:[#allocation2 + $0x8] sm:$0xff]  }
 0x193   :  { %8582 = vmatprep.mubr.msk.bf16.mxu0 %vm488_vm0, %v9544_v6  ;;  %v9546_v8 = vld [vmem:[#allocation2 + $0x10] sm:$0xff]   ;;  %v9547_v9 = vld [vmem:[#allocation2 + $0x18] sm:$0xff]   ;;  %v9548_v10 = vld [vmem:[#allocation2 + $0x20] sm:$0xff]   ;;  %vm668_vm1 = vcmask 1042432   ;;  %vm661_vm2 = vcmask 48128   ;;  %s11307_s26 = sld [smem:[#allocation43_spill]] }
 0x194   :  { %v9549_v11 = vld [vmem:[#allocation2 + $0x28] sm:$0xff]   ;;  %v9550_v12 = vld [vmem:[#allocation2 + $0x30] sm:$0xff]   ;;  %v9551_v13 = vld [vmem:[#allocation2 + $0x38] sm:$0xff]   ;;  %vm10366_vm3 = vmmov 0   ;;  %s11308_s28 = sld [smem:[#allocation44_spill]]  ;;  %vm1888_vm8 = vcmask 195584  }
 0x195   :  { %v9552_v14 = vld [vmem:[#allocation2 + $0x40] sm:$0xff]   ;;  %v9553_v15 = vld [vmem:[#allocation2 + $0x48] sm:$0xff]   ;;  %v9554_v16 = vld [vmem:[#allocation2 + $0x50] sm:$0xff]   ;;  %vm1907_vm12 = vcmask 1043456   ;;  %s11309_s25 = sld [smem:[#allocation45_spill]]  ;;  %vm2461_vm13 = vcmask 130048  }
 0x196   :  { %v9555_v17 = vld [vmem:[#allocation2 + $0x58] sm:$0xff]   ;;  %v654_v18 = vld [vmem:[#allocation9] sm:$0x7]  ;;  %v658_v20 = vld [vmem:[#allocation9 + $0x4] sm:$0x7]  ;;  %s11310_s29 = sld [smem:[#allocation46_spill]] }
 0x197   :  { %9477 = vmatprep.subr.msk.bf16.mxu1 %vm668_vm1, %v654_v18  ;;  %v728_v19 = vsel %vm668_vm1, %v654_v18, 0  ;;  %v670_v21 = vsel %vm668_vm1, %v658_v20, 0  ;;  %v780_v22 = vld [vmem:[#allocation9 + $0x8] sm:$0x7]  ;;  %v846_v30 = vld [vmem:[#allocation9 + $0xc] sm:$0x7] }
 0x198   :  { %v398_v0 = vld [vmem:[%s11306_s27] sm:$0xff]  ;;  %v399_v1 = vld [vmem:[%s11306_s27 + $0x8] sm:$0xff]  ;;  %v400_v2 = vld [vmem:[%s11306_s27 + $0x10] sm:$0xff]  ;;  %8613 = vmatpush3.bf16.msra.mxu1 %v728_v19  ;;  %v790_v29 = vsel %vm668_vm1, %v780_v22, 0  ;;  %v856_v43 = vsel %vm668_vm1, %v846_v30, 0  ;;  %s11311_s9 = sld [smem:[#allocation47_spill]] }
 0x199   :  { %v426_v3 = vpack.c.bf16 %v399_v1, %v398_v0  ;;  %v401_v4 = vld [vmem:[%s11306_s27 + $0x18] sm:$0xff]  ;;  %9478 = vmatprep.subr.msk.bf16.mxu1 %vm668_vm1, %v780_v22  ;;  %s11312_s18 = sld [smem:[#allocation42_spill]]  ;;  %s10368_s3 = smov 112  }
 0x19a   :  { %v427_v5 = vpack.c.bf16 %v401_v4, %v400_v2  ;;  %v912_v44 = vld [vmem:[#allocation9 + $0x10] sm:$0x7]  ;;  %v978_v55 = vld [vmem:[#allocation9 + $0x14] sm:$0x7]  ;;  %s11313_s8 = sld [smem:[#allocation48_spill]]  ;;  %s11314_s22 = sld [smem:[#allocation54_spill]] }
 0x19b   :  { %8578 = vmatprep.subr.bf16.mxu0 %v426_v3  ;;  %v922_v53 = vsel %vm668_vm1, %v912_v44, 0  ;;  %v988_v1 = vsel %vm668_vm1, %v978_v55, 0  ;;  %s11315_s0 = sld [smem:[#allocation49_spill]]  ;;  %s11316_s23 = sld [smem:[#allocation52_spill]] }
 0x19c   :  { %8579 = vmatpush3.bf16.msra.mxu0 %v426_v3  ;;  %s11317_s12 = sld [smem:[#allocation55_spill]]  ;;  %s11318_s19 = sld [smem:[#allocation56_spill]] }
 0x19d   :  { %8580 = vmatprep.subr.bf16.mxu0 %v427_v5  ;;  %s11319_s1 = sld [smem:[#allocation57_spill]] }
 0x1a0   :  { %8581 = vmatpush3.bf16.msra.mxu0 %v427_v5 }
 0x1a1   :  { %9476 = vmatprep.subr.msk.bf16.mxu0 %vm668_vm1, %v658_v20 }
 0x1a3   :  { %8583 = vmatmul.mubr.msk.bf16.vlgmr.msra.gmra.mrb[0].mxu0 %vm488_vm0, %v9545_v7  ;;  %v7766_v7 = vld [vmem:[%s11307_s26] ss:$0 sm:$0xff] }
 0x1a4   :  { %8586 = vmatprep.mubr.msk.bf16.mxu0 %vm488_vm0, %v9546_v8  ;;  %8607 = vmatpush3.bf16.msra.mxu0 %v670_v21 }
 0x1ab   :  { %8587 = vmatmul.mubr.msk.bf16.gmra.mrb[4].mxu0 %vm488_vm0, %v9547_v9 }
 0x1ac   :  { %8590 = vmatprep.mubr.msk.bf16.mxu0 %vm488_vm0, %v9548_v10 }
 0x1b3   :  { %8591 = vmatmul.mubr.msk.bf16.gmra.mrb[8].mxu0 %vm488_vm0, %v9549_v11 }
 0x1b4   :  { %8594 = vmatprep.mubr.msk.bf16.mxu0 %vm488_vm0, %v9550_v12 }
 0x1bb   :  { %8595 = vmatmul.mubr.msk.bf16.gmra.mrb[12].mxu0 %vm488_vm0, %v9551_v13 }
 0x1bc   :  { %8598 = vmatprep.mubr.msk.bf16.mxu0 %vm488_vm0, %v9552_v14 }
 0x1c3   :  { %8599 = vmatmul.mubr.msk.bf16.gmra.mrb[16].mxu0 %vm488_vm0, %v9553_v15 }
 0x1c4   :  { %8602 = vmatprep.mubr.msk.bf16.mxu0 %vm488_vm0, %v9554_v16 }
 0x1cb   :  { %8603 = vmatmul.mubr.msk.bf16.gmra.mrb[20].mxu0 %vm488_vm0, %v9555_v17 }
 0x276   :  { %v8584_v23 = vpop.f32.mrb[0].mxu0 }
 0x277   :  { %v559_v24 = vpop.f32.mrb[1].mxu0 }
 0x278   :  { %v8585_v25 = vpop.f32.mrb[2].mxu0 }
 0x279   :  { %v656_v26 = vpack.c.bf16 %v8585_v25, %v8584_v23  ;;  %v562_v27 = vpop.f32.mrb[3].mxu0 }
 0x27a   :  { %v655_v28 = vpack.c.bf16 %v562_v27, %v559_v24 }
 0x27c   :  { %8614 = vmatprep.mubr.msk.bf16.mxu1 %vm661_vm2, %v655_v28 }
 0x27d   :  { %8615 = vmatmul.mubr.msk.bf16.vlgmr.msra.gmra.mrb[0].mxu1 %vm661_vm2, %v656_v26 }
 0x27e   :  { %v8588_v31 = vpop.f32.mrb[4].mxu0  ;;  %8619 = vmatpush3.bf16.msra.mxu1 %v790_v29 }
 0x27f   :  { %v575_v32 = vpop.f32.mrb[5].mxu0  ;;  %9479 = vmatprep.subr.msk.bf16.mxu1 %vm668_vm1, %v846_v30 }
 0x280   :  { %v8589_v33 = vpop.f32.mrb[6].mxu0 }
 0x281   :  { %v660_v34 = vpack.c.bf16 %v8589_v33, %v8588_v31  ;;  %v578_v35 = vpop.f32.mrb[7].mxu0 }
 0x282   :  { %v659_v36 = vpack.c.bf16 %v578_v35, %v575_v32 }
 0x284   :  { %8608 = vmatprep.mubr.msk.bf16.mxu0 %vm661_vm2, %v659_v36 }
 0x285   :  { %8609 = vmatmul.mubr.msk.bf16.vlgmr.msra.gmra.mrb[24].mxu0 %vm661_vm2, %v660_v34 }
 0x286   :  { %v8592_v37 = vpop.f32.mrb[8].mxu0 }
 0x287   :  { %v591_v38 = vpop.f32.mrb[9].mxu0 }
 0x288   :  { %v8593_v39 = vpop.f32.mrb[10].mxu0 }
 0x289   :  { %v782_v40 = vpack.c.bf16 %v8593_v39, %v8592_v37  ;;  %v594_v41 = vpop.f32.mrb[11].mxu0 }
 0x28a   :  { %v781_v42 = vpack.c.bf16 %v594_v41, %v591_v38 }
 0x28c   :  { %8620 = vmatprep.mubr.msk.bf16.mxu1 %vm661_vm2, %v781_v42 }
 0x28d   :  { %8621 = vmatmul.mubr.msk.bf16.vlgmr.msra.gmra.mrb[0].mxu1 %vm661_vm2, %v782_v40 }
 0x28e   :  { %v8596_v45 = vpop.f32.mrb[12].mxu0  ;;  %8625 = vmatpush3.bf16.msra.mxu1 %v856_v43  ;;  %v10365_v43 = vmov 0.0  }
 0x28f   :  { %v607_v46 = vpop.f32.mrb[13].mxu0  ;;  %9480 = vmatprep.subr.msk.bf16.mxu1 %vm668_vm1, %v912_v44 }
 0x290   :  { %v8597_v47 = vpop.f32.mrb[14].mxu0 }
 0x291   :  { %v848_v48 = vpack.c.bf16 %v8597_v47, %v8596_v45  ;;  %v610_v49 = vpop.f32.mrb[15].mxu0 }
 0x292   :  { %v847_v50 = vpack.c.bf16 %v610_v49, %v607_v46 }
 0x294   :  { %8626 = vmatprep.mubr.msk.bf16.mxu1 %vm661_vm2, %v847_v50 }
 0x296   :  { %v8600_v51 = vpop.f32.mrb[16].mxu0 }
 0x297   :  { %v623_v52 = vpop.f32.mrb[17].mxu0 }
 0x298   :  { %v8601_v54 = vpop.f32.mrb[18].mxu0 }
 0x299   :  { %8627 = vmatmul.mubr.msk.bf16.vlgmr.msra.gmra.mrb[0].mxu1 %vm661_vm2, %v848_v48  ;;  %v914_v56 = vpack.c.bf16 %v8601_v54, %v8600_v51  ;;  %v626_v57 = vpop.f32.mrb[19].mxu0 }
 0x29a   :  { %v913_v58 = vpack.c.bf16 %v626_v57, %v623_v52  ;;  %8631 = vmatpush3.bf16.msra.mxu1 %v922_v53 }
 0x29b   :  { %9481 = vmatprep.subr.msk.bf16.mxu1 %vm668_vm1, %v978_v55 }
 0x29c   :  { %8632 = vmatprep.mubr.msk.bf16.mxu1 %vm661_vm2, %v913_v58 }
 0x29e   :  { %v8604_v59 = vpop.f32.mrb[20].mxu0 }
 0x29f   :  { %v639_v60 = vpop.f32.mrb[21].mxu0 }
 0x2a0   :  { %v8605_v61 = vpop.f32.mrb[22].mxu0 }
 0x2a1   :  { %v980_v62 = vpack.c.bf16 %v8605_v61, %v8604_v59  ;;  %v642_v63 = vpop.f32.mrb[23].mxu0 }
 0x2a2   :  { %v979_v0 = vpack.c.bf16 %v642_v63, %v639_v60 }
 0x2a5   :  { %8633 = vmatmul.mubr.msk.bf16.vlgmr.msra.gmra.mrb[0].mxu1 %vm661_vm2, %v914_v56 }
 0x2a6   :  { %8638 = vmatprep.mubr.msk.bf16.mxu1 %vm661_vm2, %v979_v0  ;;  %8637 = vmatpush3.bf16.msra.mxu1 %v988_v1 }
 0x2a7   :  { %8642 = vmatprep.subr.bf16.mxu1 %v10365_v43 }
 0x2b1   :  { %8639 = vmatmul.mubr.msk.bf16.vlgmr.msra.gmra.mrb[0].mxu1 %vm661_vm2, %v980_v62 }
 0x2b2   :  { %8646 = vmatprep.mubr.msk.bf16.mxu1 %vm10366_vm3, %v10365_v43 }
 0x358   :  { %v8610_v2 = vpop.f32.mrb[24].mxu0 }
 0x359   :  { %v706_v3 = vpop.f32.mrb[25].mxu0 }
 0x35a   :  { %v8611_v4 = vpop.f32.mrb[26].mxu0 }
 0x35b   :  { %v709_v5 = vpop.f32.mrb[27].mxu0 }
 0x384   :  { %v8640_v6 = vpop.f32.mrb[0].mxu1 }
 0x385   :  { %v9416_v8 = vadd.f32 %v8640_v6, %v8610_v2  ;;  %v1024_v9 = vpop.f32.mrb[1].mxu1 }
 0x386   :  { %v9417_v10 = vadd.f32 %v1024_v9, %v706_v3  ;;  %v8641_v11 = vpop.f32.mrb[2].mxu1 }
 0x387   :  { %v9418_v12 = vadd.f32 %v8641_v11, %v8611_v4  ;;  %v1027_v13 = vpop.f32.mrb[3].mxu1  ;;  %v1052_v14 = vadd.f32 %v9416_v8, %v7766_v7 }
 0x388   :  { %v9419_v15 = vadd.f32 %v1027_v13, %v709_v5  ;;  %v1050_v16 = vadd.f32 %v9417_v10, %v7766_v7 }
 0x389   :  { %v1060_v17 = vsel %vm488_vm0, %v1052_v14, 0.0  ;;  %v1053_v18 = vadd.f32 %v9418_v12, %v7766_v7 }
 0x38a   :  { %1061 = vadd.xlane.f32.xlu1 %v1060_v17  ;;  %v1054_v19 = vsel %vm488_vm0, %v1050_v16, 0.0  ;;  %v1051_v20 = vadd.f32 %v9419_v15, %v7766_v7 }
 0x38b   :  { %1055 = vadd.xlane.f32.xlu0 %v1054_v19  ;;  %v1063_v21 = vsel %vm488_vm0, %v1053_v18, 0.0 }
 0x38c   :  { %v1057_v22 = vsel %vm488_vm0, %v1051_v20, 0.0 }
 0x38e   :  { %1064 = vadd.xlane.f32.xlu1 %v1063_v21 }
 0x38f   :  { %1058 = vadd.xlane.f32.xlu0 %v1057_v22  ;;  %v9556_v22 = vld [vmem:[#allocation4] sm:$0xff]  }
 0x417   :  { %v1062_v23 = vpop.xlane.xlu1 %1061 }
 0x418   :  { %v1069_v24 = vmul.f32 0.03125, %v1062_v23  ;;  %v1056_v25 = vpop.xlane.xlu0 %1055  ;;  %v9557_v23 = vld [vmem:[#allocation4 + $0x8] sm:$0xff]  }
 0x419   :  { %v1067_v26 = vmul.f32 0.03125, %v1056_v25  ;;  %v9559_v25 = vld [vmem:[#allocation4 + $0x18] sm:$0xff]  }
 0x41a   :  { %v1073_v27 = vsub.f32 %v1052_v14, %v1069_v24  ;;  %v9558_v24 = vld [vmem:[#allocation4 + $0x10] sm:$0xff]  }
 0x41b   :  { %v1071_v28 = vsub.f32 %v1050_v16, %v1067_v26  ;;  %v1065_v29 = vpop.xlane.xlu1 %1064  ;;  %v9560_v26 = vld [vmem:[#allocation4 + $0x20] sm:$0xff]  }
 0x41c   :  { %v1070_v30 = vmul.f32 0.03125, %v1065_v29  ;;  %v1059_v31 = vpop.xlane.xlu0 %1058  ;;  %v1077_v37 = vmul.f32 %v1073_v27, %v1073_v27  ;;  %v9563_v29 = vld [vmem:[#allocation4 + $0x38] sm:$0xff]  }
 0x41d   :  { %v1068_v32 = vmul.f32 0.03125, %v1059_v31  ;;  %v1075_v33 = vmul.f32 %v1071_v28, %v1071_v28  ;;  %v9565_v31 = vld [vmem:[#allocation10 + $0x10] sm:$0xff]  }
 0x41e   :  { %v1074_v34 = vsub.f32 %v1053_v18, %v1070_v30  ;;  %v1085_v39 = vsel %vm488_vm0, %v1077_v37, 0.0  ;;  %v9564_v30 = vld [vmem:[#allocation4 + $0x40] sm:$0xff]   ;;  %8682 = vmatprep.subr.bf16.mxu0 %v9565_v31 }
 0x41f   :  { %v1072_v35 = vsub.f32 %v1051_v20, %v1068_v32  ;;  %v1079_v36 = vsel %vm488_vm0, %v1075_v33, 0.0  ;;  %8683 = vmatpush3.bf16.msra.mxu0 %v9565_v31  ;;  %v9566_v32 = vld [vmem:[#allocation10 + $0x18] sm:$0xff]   ;;  %v9567_v33 = vld [vmem:[#allocation10] sm:$0xff]  }
 0x420   :  { %1080 = vadd.xlane.f32.xlu0 %v1079_v36  ;;  %v1078_v41 = vmul.f32 %v1074_v34, %v1074_v34  ;;  %8684 = vmatprep.subr.bf16.mxu0 %v9566_v32 }
 0x421   :  { %v1076_v38 = vmul.f32 %v1072_v35, %v1072_v35 }
 0x422   :  { %v1088_v42 = vsel %vm488_vm0, %v1078_v41, 0.0 }
 0x423   :  { %v1082_v40 = vsel %vm488_vm0, %v1076_v38, 0.0  ;;  %8685 = vmatpush3.bf16.msra.mxu0 %v9566_v32 }
 0x424   :  { %1086 = vadd.xlane.f32.xlu0 %v1085_v39  ;;  %1083 = vadd.xlane.f32.xlu1 %v1082_v40 }
 0x425   :  { %8690 = vmatprep.subr.bf16.mxu0 %v9567_v33 }
 0x428   :  { %1089 = vadd.xlane.f32.xlu1 %v1088_v42 }
 0x4ad   :  { %v1081_v44 = vpop.xlane.xlu0 %1080 }
 0x4ae   :  { %v1091_v45 = vmul.f32 0.03125, %v1081_v44 }
 0x4b0   :  { %v1095_v46 = vadd.f32 1e-05, %v1091_v45 }
 0x4b1   :  { %v1084_v47 = vpop.xlane.xlu1 %1083  ;;  %v1087_v48 = vpop.xlane.xlu0 %1086 }
 0x4b2   :  { %9782 = vrsqrt.f32 %v1095_v46  ;;  %v1092_v49 = vmul.f32 0.03125, %v1084_v47  ;;  %v1093_v50 = vmul.f32 0.03125, %v1087_v48 }
 0x4b4   :  { %v1096_v51 = vadd.f32 1e-05, %v1092_v49  ;;  %v1097_v52 = vadd.f32 1e-05, %v1093_v50  ;;  %v9568_v50 = vld [vmem:[#allocation10 + $0x8] sm:$0xff]  }
 0x4b5   :  { %v1090_v53 = vpop.xlane.xlu1 %1089 }
 0x4b6   :  { %9784 = vrsqrt.f32 %v1096_v51  ;;  %v1094_v54 = vmul.f32 0.03125, %v1090_v53  ;;  %v9569_v51 = vld [vmem:[#allocation10 + $0x20] sm:$0xff]  }
 0x4b7   :  { %9786 = vrsqrt.f32 %v1097_v52 }
 0x4b8   :  { %v1098_v55 = vadd.f32 1e-05, %v1094_v54 }
 0x4ba   :  { %9788 = vrsqrt.f32 %v1098_v55 }
 0x4bc   :  { %v9783_v56 = vpop.eup %9782 }
 0x4bd   :  { %v1103_v57 = vmul.f32 %v9783_v56, %v1071_v28  ;;  %v9562_v28 = vld [vmem:[#allocation4 + $0x30] sm:$0xff]  }
 0x4bf   :  { %v1111_v58 = vmin.f32 %v1103_v57, 0.0  ;;  %vm1107_vm4 = vcmp.gt.f32.partialorder %v1103_v57, 0.0 }
 0x4c0   :  { %v9785_v59 = vpop.eup %9784 }
 0x4c1   :  { %v9787_v60 = vpop.eup %9786  ;;  %v1104_v61 = vmul.f32 %v9785_v59, %v1072_v35  ;;  %v1115_v62 = vmul.f32 1.442695, %v1111_v58  ;;  %v9570_v58 = vld [vmem:[#allocation10 + $0x28] sm:$0xff]   ;;  %v9571_v59 = vld [vmem:[#allocation10 + $0x30] sm:$0xff]  }
 0x4c2   :  { %v1105_v63 = vmul.f32 %v9787_v60, %v1073_v27  ;;  %v9561_v27 = vld [vmem:[#allocation4 + $0x28] sm:$0xff]  }
 0x4c3   :  { %v1112_v0 = vmin.f32 %v1104_v61, 0.0  ;;  %9790 = vpow2.f32 %v1115_v62  ;;  %vm1108_vm5 = vcmp.gt.f32.partialorder %v1104_v61, 0.0 }
 0x4c4   :  { %v9789_v1 = vpop.eup %9788  ;;  %v1113_v2 = vmin.f32 %v1105_v63, 0.0  ;;  %vm1109_vm6 = vcmp.gt.f32.partialorder %v1105_v63, 0.0 }
 0x4c5   :  { %v1106_v3 = vmul.f32 %v9789_v1, %v1074_v34  ;;  %v1117_v4 = vmul.f32 1.442695, %v1112_v0  ;;  %v9572_v1 = vld [vmem:[#allocation10 + $0x38] sm:$0xff]  }
 0x4c6   :  { %v1119_v5 = vmul.f32 1.442695, %v1113_v2  ;;  %v9573_v2 = vld [vmem:[#allocation10 + $0x40] sm:$0xff]  }
 0x4c7   :  { %9792 = vpow2.f32 %v1117_v4  ;;  %v1114_v6 = vmin.f32 %v1106_v3, 0.0  ;;  %vm1110_vm7 = vcmp.gt.f32.partialorder %v1106_v3, 0.0 }
 0x4c8   :  { %9794 = vpow2.f32 %v1119_v5 }
 0x4c9   :  { %v1121_v7 = vmul.f32 1.442695, %v1114_v6 }
 0x4cb   :  { %9796 = vpow2.f32 %v1121_v7 }
 0x4cd   :  { %v9791_v8 = vpop.eup %9790 }
 0x4ce   :  { %v7767_v9 = vadd.f32 -1.0, %v9791_v8 }
 0x4d0   :  { %v1127_v13 = vsel %vm1107_vm4, %v1103_v57, %v7767_v9  ;;  %v9574_v9 = vld [vmem:[#allocation10 + $0x48] sm:$0xff]   ;;  %vm2949_vm4 = vcmask 523264  }
 0x4d1   :  { %v9793_v10 = vpop.eup %9792 }
 0x4d2   :  { %v9795_v11 = vpop.eup %9794  ;;  %v7768_v12 = vadd.f32 -1.0, %v9793_v10  ;;  %v9575_v10 = vld [vmem:[#allocation10 + $0x50] sm:$0xff]  }
 0x4d3   :  { %v7769_v15 = vadd.f32 -1.0, %v9795_v11 }
 0x4d4   :  { %v1128_v14 = vsel %vm1108_vm5, %v1104_v61, %v7768_v12 }
 0x4d5   :  { %v9797_v16 = vpop.eup %9796  ;;  %v1149_v17 = vpack.c.bf16 %v1128_v14, %v1127_v13  ;;  %v1129_v19 = vsel %vm1109_vm6, %v1105_v63, %v7769_v15 }
 0x4d6   :  { %v7770_v18 = vadd.f32 -1.0, %v9797_v16 }
 0x4d7   :  { %8643 = vmatpush3.bf16.msra.mxu1 %v1149_v17 }
 0x4d8   :  { %8644 = vmatprep.subr.bf16.mxu1 %v10365_v43  ;;  %v1130_v20 = vsel %vm1110_vm7, %v1106_v3, %v7770_v18  ;;  %vm4156_vm7 = vcmask 64512  }
 0x4d9   :  { %v1150_v21 = vpack.c.bf16 %v1130_v20, %v1129_v19  ;;  %v9576_v19 = vld [vmem:[#allocation10 + $0x58] sm:$0xff]  }
 0x4db   :  { %8645 = vmatpush3.bf16.msra.mxu1 %v1150_v21 }
 0x4dc   :  { %8746 = vmatprep.subr.bf16.mxu1 %v10365_v43 }
 0x4de   :  { %8647 = vmatmul.mubr.msk.bf16.vlgmr.msra.gmra.mrb[4].mxu1 %vm488_vm0, %v9556_v22 }
 0x4df   :  { %8650 = vmatprep.mubr.msk.bf16.mxu1 %vm10366_vm3, %v10365_v43 }
 0x4e6   :  { %8651 = vmatmul.mubr.msk.bf16.gmra.mrb[8].mxu1 %vm488_vm0, %v9557_v23 }
 0x4e7   :  { %8654 = vmatprep.mubr.msk.bf16.mxu1 %vm10366_vm3, %v10365_v43 }
 0x4ee   :  { %8655 = vmatmul.mubr.msk.bf16.gmra.mrb[12].mxu1 %vm488_vm0, %v9558_v24 }
 0x4ef   :  { %8658 = vmatprep.mubr.msk.bf16.mxu1 %vm10366_vm3, %v10365_v43 }
 0x4f6   :  { %8659 = vmatmul.mubr.msk.bf16.gmra.mrb[16].mxu1 %vm488_vm0, %v9559_v25 }
 0x4f7   :  { %8662 = vmatprep.mubr.msk.bf16.mxu1 %vm10366_vm3, %v10365_v43 }
 0x4fe   :  { %8663 = vmatmul.mubr.msk.bf16.gmra.mrb[20].mxu1 %vm488_vm0, %v9560_v26 }
 0x4ff   :  { %8666 = vmatprep.mubr.msk.bf16.mxu1 %vm10366_vm3, %v10365_v43 }
 0x506   :  { %8667 = vmatmul.mubr.msk.bf16.gmra.mrb[24].mxu1 %vm488_vm0, %v9561_v27 }
 0x507   :  { %8670 = vmatprep.mubr.msk.bf16.mxu1 %vm10366_vm3, %v10365_v43 }
 0x50e   :  { %8671 = vmatmul.mubr.msk.bf16.gmra.mrb[28].mxu1 %vm488_vm0, %v9562_v28 }
 0x50f   :  { %8674 = vmatprep.mubr.msk.bf16.mxu1 %vm10366_vm3, %v10365_v43 }
 0x516   :  { %8675 = vmatmul.mubr.msk.bf16.gmra.mrb[32].mxu1 %vm488_vm0, %v9563_v29 }
 0x517   :  { %8678 = vmatprep.mubr.msk.bf16.mxu1 %vm10366_vm3, %v10365_v43 }
 0x51e   :  { %8679 = vmatmul.mubr.msk.bf16.gmra.mrb[36].mxu1 %vm488_vm0, %v9564_v30 }
 0x51f   :  { %8750 = vmatprep.mubr.msk.bf16.mxu1 %vm10366_vm3, %v10365_v43 }
 0x5b1   :  { %v1257_v34 = vpop.f32.mrb[4].mxu1 }
 0x5b2   :  { %v8648_v35 = vpop.f32.mrb[5].mxu1 }
 0x5b3   :  { %v1260_v36 = vpop.f32.mrb[6].mxu1 }
 0x5b4   :  { %v1332_v37 = vpack.c.bf16 %v1260_v36, %v1257_v34  ;;  %v8649_v38 = vpop.f32.mrb[7].mxu1 }
 0x5b9   :  { %v1265_v39 = vpop.f32.mrb[8].mxu1 }
 0x5ba   :  { %v8652_v40 = vpop.f32.mrb[9].mxu1  ;;  %v1333_v55 = vpack.c.bf16 %v1265_v39, %v1265_v39 }
 0x5bb   :  { %v1268_v41 = vpop.f32.mrb[10].mxu1 }
 0x5bc   :  { %v8653_v42 = vpop.f32.mrb[11].mxu1 }
 0x5c1   :  { %v1273_v44 = vpop.f32.mrb[12].mxu1 }
 0x5c2   :  { %v1339_v45 = vpack.c.bf16 %v1273_v44, %v1268_v41  ;;  %v8656_v46 = vpop.f32.mrb[13].mxu1 }
 0x5c3   :  { %v1276_v47 = vpop.f32.mrb[14].mxu1 }
 0x5c4   :  { %v1340_v48 = vpack.c.bf16 %v1276_v47, %v1276_v47  ;;  %v8657_v49 = vpop.f32.mrb[15].mxu1  ;;  %8686 = vmatprep.mubr.msk.bf16.mxu0 %vm488_vm0, %v1339_v45 }
 0x5c6   :  { %8687 = vmatmul.mubr.msk.bf16.vlgmr.msra.gmra.mrb[28].mxu0 %vm488_vm0, %v1340_v48 }
 0x5c7   :  { %8691 = vmatpush3.bf16.msra.mxu0 %v9567_v33  ;;  %8694 = vmatprep.mubr.msk.bf16.mxu0 %vm488_vm0, %v1332_v37 }
 0x5c8   :  { %8692 = vmatprep.subr.bf16.mxu0 %v9568_v50 }
 0x5c9   :  { %v1281_v52 = vpop.f32.mrb[16].mxu1 }
 0x5ca   :  { %v8660_v53 = vpop.f32.mrb[17].mxu1 }
 0x5cb   :  { %v1284_v54 = vpop.f32.mrb[18].mxu1  ;;  %8693 = vmatpush3.bf16.msra.mxu0 %v9568_v50 }
 0x5cc   :  { %v1478_v56 = vpack.c.bf16 %v1284_v54, %v1281_v52  ;;  %v8661_v57 = vpop.f32.mrb[19].mxu1  ;;  %8698 = vmatprep.subr.bf16.mxu0 %v9569_v51 }
 0x5ce   :  { %8695 = vmatmul.mubr.msk.bf16.vlgmr.msra.gmra.mrb[32].mxu0 %vm488_vm0, %v1333_v55 }
 0x5cf   :  { %8699 = vmatpush3.bf16.msra.mxu0 %v9569_v51  ;;  %8702 = vmatprep.mubr.msk.bf16.mxu0 %vm488_vm0, %v1478_v56 }
 0x5d0   :  { %8700 = vmatprep.subr.bf16.mxu0 %v9570_v58 }
 0x5d1   :  { %v1289_v60 = vpop.f32.mrb[20].mxu1 }
 0x5d2   :  { %v8664_v61 = vpop.f32.mrb[21].mxu1  ;;  %v1479_v63 = vpack.c.bf16 %v1289_v60, %v1289_v60 }
 0x5d3   :  { %v1292_v62 = vpop.f32.mrb[22].mxu1  ;;  %8701 = vmatpush3.bf16.msra.mxu0 %v9570_v58 }
 0x5d4   :  { %v8665_v0 = vpop.f32.mrb[23].mxu1  ;;  %8706 = vmatprep.subr.bf16.mxu0 %v9571_v59 }
 0x5d5   :  { %v7813_v0 = vld [vmem:[%s11308_s28] ss:$0 sm:$0xff] }
 0x5d6   :  { %8703 = vmatmul.mubr.msk.bf16.vlgmr.msra.gmra.mrb[36].mxu0 %vm488_vm0, %v1479_v63 }
 0x5d7   :  { %8707 = vmatpush3.bf16.msra.mxu0 %v9571_v59 }
 0x5d8   :  { %8708 = vmatprep.subr.bf16.mxu0 %v9572_v1 }
 0x5d9   :  { %v1297_v3 = vpop.f32.mrb[24].mxu1 }
 0x5da   :  { %v1554_v4 = vpack.c.bf16 %v1297_v3, %v1292_v62  ;;  %v8668_v5 = vpop.f32.mrb[25].mxu1 }
 0x5db   :  { %v1300_v6 = vpop.f32.mrb[26].mxu1  ;;  %8709 = vmatpush3.bf16.msra.mxu0 %v9572_v1 }
 0x5dc   :  { %v1555_v7 = vpack.c.bf16 %v1300_v6, %v1300_v6  ;;  %v8669_v8 = vpop.f32.mrb[27].mxu1  ;;  %8710 = vmatprep.mubr.msk.bf16.mxu0 %vm488_vm0, %v1554_v4  ;;  %8714 = vmatprep.subr.bf16.mxu0 %v9573_v2 }
 0x5de   :  { %8711 = vmatmul.mubr.msk.bf16.vlgmr.msra.gmra.mrb[40].mxu0 %vm488_vm0, %v1555_v7 }
 0x5df   :  { %8715 = vmatpush3.bf16.msra.mxu0 %v9573_v2 }
 0x5e0   :  { %8716 = vmatprep.subr.bf16.mxu0 %v9574_v9 }
 0x5e1   :  { %v1305_v11 = vpop.f32.mrb[28].mxu1 }
 0x5e2   :  { %v8672_v12 = vpop.f32.mrb[29].mxu1 }
 0x5e3   :  { %v1308_v13 = vpop.f32.mrb[30].mxu1  ;;  %8717 = vmatpush3.bf16.msra.mxu0 %v9574_v9 }
 0x5e4   :  { %v1630_v14 = vpack.c.bf16 %v1308_v13, %v1305_v11  ;;  %v8673_v15 = vpop.f32.mrb[31].mxu1  ;;  %8722 = vmatprep.subr.bf16.mxu0 %v9575_v10 }
 0x5e6   :  { %8718 = vmatprep.mubr.msk.bf16.mxu0 %vm488_vm0, %v1630_v14 }
 0x5e9   :  { %v1313_v16 = vpop.f32.mrb[32].mxu1 }
 0x5ea   :  { %v1631_v17 = vpack.c.bf16 %v1313_v16, %v1313_v16  ;;  %v8676_v18 = vpop.f32.mrb[33].mxu1 }
 0x5eb   :  { %v1316_v20 = vpop.f32.mrb[34].mxu1 }
 0x5ec   :  { %v8677_v21 = vpop.f32.mrb[35].mxu1  ;;  %8719 = vmatmul.mubr.msk.bf16.vlgmr.msra.gmra.mrb[44].mxu0 %vm488_vm0, %v1631_v17 }
 0x5ed   :  { %8723 = vmatpush3.bf16.msra.mxu0 %v9575_v10 }
 0x5ee   :  { %8724 = vmatprep.subr.bf16.mxu0 %v9576_v19 }
 0x5f1   :  { %v1321_v22 = vpop.f32.mrb[36].mxu1  ;;  %8725 = vmatpush3.bf16.msra.mxu0 %v9576_v19 }
 0x5f2   :  { %v1706_v23 = vpack.c.bf16 %v1321_v22, %v1316_v20  ;;  %v8680_v24 = vpop.f32.mrb[37].mxu1 }
 0x5f3   :  { %v1324_v25 = vpop.f32.mrb[38].mxu1 }
 0x5f4   :  { %v1707_v26 = vpack.c.bf16 %v1324_v25, %v1324_v25  ;;  %v8681_v27 = vpop.f32.mrb[39].mxu1  ;;  %8726 = vmatprep.mubr.msk.bf16.mxu0 %vm488_vm0, %v1706_v23 }
 0x5f5   :  { %v9583_v27 = vld [vmem:[#allocation12 + $0x10] sm:$0xff]  }
 0x5f6   :  { %8727 = vmatmul.mubr.msk.bf16.vlgmr.msra.gmra.mrb[48].mxu0 %vm488_vm0, %v1707_v26  ;;  %v9577_v26 = vld [vmem:[#allocation6] sm:$0xff]   ;;  %8747 = vmatpush3.bf16.msra.mxu1 %v9583_v27 }
 0x5f7   :  { %8734 = vmatprep.mubr.msk.bf16.mxu0 %vm1888_vm8, %v9577_v26  ;;  %8748 = vmatprep.subr.bf16.mxu1 %v10365_v43 }
 0x699   :  { %v8688_v28 = vpop.f32.mrb[28].mxu0 }
 0x69a   :  { %v1393_v29 = vpop.f32.mrb[29].mxu0 }
 0x69b   :  { %v8689_v30 = vpop.f32.mrb[30].mxu0 }
 0x69c   :  { %v1396_v31 = vpop.f32.mrb[31].mxu0 }
 0x6a1   :  { %v8696_v32 = vpop.f32.mrb[32].mxu0 }
 0x6a2   :  { %v1468_v33 = vadd.f32 %v8696_v32, %v8688_v28  ;;  %v1459_v34 = vpop.f32.mrb[33].mxu0 }
 0x6a3   :  { %v1460_v35 = vadd.f32 %v1459_v34, %v1393_v29  ;;  %v8697_v36 = vpop.f32.mrb[34].mxu0 }
 0x6a4   :  { %v1462_v37 = vpop.f32.mrb[35].mxu0 }
 0x6a5   :  { %v1463_v38 = vadd.f32 %v1462_v37, %v1396_v31 }
 0x6a9   :  { %v8704_v39 = vpop.f32.mrb[36].mxu0 }
 0x6aa   :  { %v1548_v40 = vadd.f32 %v8704_v39, %v1468_v33  ;;  %v1532_v41 = vpop.f32.mrb[37].mxu0 }
 0x6ab   :  { %v1546_v42 = vadd.f32 %v1532_v41, %v1460_v35  ;;  %v8705_v44 = vpop.f32.mrb[38].mxu0 }
 0x6ac   :  { %v1535_v45 = vpop.f32.mrb[39].mxu0 }
 0x6ad   :  { %v1547_v46 = vadd.f32 %v1535_v45, %v1463_v38 }
 0x6b1   :  { %v8712_v47 = vpop.f32.mrb[40].mxu0 }
 0x6b2   :  { %v1624_v48 = vadd.f32 %v8712_v47, %v1548_v40  ;;  %v1608_v49 = vpop.f32.mrb[41].mxu0 }
 0x6b3   :  { %v1622_v50 = vadd.f32 %v1608_v49, %v1546_v42  ;;  %v8713_v51 = vpop.f32.mrb[42].mxu0 }
 0x6b4   :  { %v1611_v52 = vpop.f32.mrb[43].mxu0 }
 0x6b5   :  { %v1623_v53 = vadd.f32 %v1611_v52, %v1547_v46 }
 0x6bf   :  { %v8720_v54 = vpop.f32.mrb[44].mxu0 }
 0x6c0   :  { %v1700_v55 = vadd.f32 %v8720_v54, %v1624_v48  ;;  %v1684_v56 = vpop.f32.mrb[45].mxu0 }
 0x6c1   :  { %v1698_v57 = vadd.f32 %v1684_v56, %v1622_v50  ;;  %v8721_v58 = vpop.f32.mrb[46].mxu0 }
 0x6c2   :  { %v1687_v59 = vpop.f32.mrb[47].mxu0 }
 0x6c3   :  { %v1699_v60 = vadd.f32 %v1687_v59, %v1623_v53 }
 0x6c9   :  { %v8728_v61 = vpop.f32.mrb[48].mxu0 }
 0x6ca   :  { %v1776_v62 = vadd.f32 %v8728_v61, %v1700_v55  ;;  %v1760_v63 = vpop.f32.mrb[49].mxu0 }
 0x6cb   :  { %v1774_v1 = vadd.f32 %v1760_v63, %v1698_v57  ;;  %v8729_v2 = vpop.f32.mrb[50].mxu0  ;;  %v9579_v63 = vld [vmem:[#allocation6 + $0x10] sm:$0xff]  }
 0x6cc   :  { %v1763_v3 = vpop.f32.mrb[51].mxu0  ;;  %v1786_v8 = vadd.f32 %v7813_v0, %v1776_v62  ;;  %v9578_v62 = vld [vmem:[#allocation6 + $0x8] sm:$0xff]   ;;  %v9581_v2 = vld [vmem:[#allocation6 + $0x20] sm:$0xff]  }
 0x6cd   :  { %v1775_v4 = vadd.f32 %v1763_v3, %v1699_v60  ;;  %v1784_v5 = vadd.f32 %v7813_v0, %v1774_v1  ;;  %v9580_v1 = vld [vmem:[#allocation6 + $0x18] sm:$0xff]   ;;  %v9582_v3 = vld [vmem:[#allocation6 + $0x28] sm:$0xff]  }
 0x6ce   :  { %v1793_v10 = vsel %vm488_vm0, %v1786_v8, 0.0 }
 0x6cf   :  { %v1787_v6 = vsel %vm488_vm0, %v1784_v5, 0.0  ;;  %v1785_v7 = vadd.f32 %v7813_v0, %v1775_v4  ;;  %v9584_v0 = vld [vmem:[#allocation12] sm:$0xff]   ;;  %v9585_v4 = vld [vmem:[#allocation12 + $0x18] sm:$0xff]  }
 0x6d0   :  { %1788 = vadd.xlane.f32.xlu0 %v1787_v6  ;;  %8749 = vmatpush3.bf16.msra.mxu1 %v9585_v4 }
 0x6d1   :  { %v1790_v9 = vsel %vm488_vm0, %v1785_v7, 0.0  ;;  %8762 = vmatprep.subr.bf16.mxu1 %v10365_v43 }
 0x6d2   :  { %1791 = vadd.xlane.f32.xlu1 %v1790_v9  ;;  %v9587_v9 = vld [vmem:[#allocation12 + $0x20] sm:$0xff]  }
 0x6d4   :  { %1794 = vadd.xlane.f32.xlu0 %v1793_v10 }
 0x75d   :  { %v1789_v11 = vpop.xlane.xlu0 %1788 }
 0x75e   :  { %v1796_v12 = vmul.f32 0.03125, %v1789_v11 }
 0x75f   :  { %v1792_v13 = vpop.xlane.xlu1 %1791 }
 0x760   :  { %v1799_v14 = vsub.f32 %v1784_v5, %v1796_v12  ;;  %v1797_v15 = vmul.f32 0.03125, %v1792_v13  ;;  %v9586_v5 = vld [vmem:[#allocation12 + $0x8] sm:$0xff]   ;;  %v9588_v12 = vld [vmem:[#allocation12 + $0x30] sm:$0xff]  }
 0x761   :  { %v1795_v16 = vpop.xlane.xlu0 %1794 }
 0x762   :  { %v1800_v17 = vsub.f32 %v1785_v7, %v1797_v15  ;;  %v1798_v18 = vmul.f32 0.03125, %v1795_v16  ;;  %v1802_v19 = vmul.f32 %v1799_v14, %v1799_v14  ;;  %v9590_v15 = vld [vmem:[#allocation12 + $0x38] sm:$0xff]  }
 0x764   :  { %v1801_v20 = vsub.f32 %v1786_v8, %v1798_v18  ;;  %v1805_v21 = vsel %vm488_vm0, %v1802_v19, 0.0  ;;  %v1803_v22 = vmul.f32 %v1800_v17, %v1800_v17 }
 0x765   :  { %1806 = vadd.xlane.f32.xlu1 %v1805_v21  ;;  %v9591_v21 = vld [vmem:[#allocation12 + $0x40] sm:$0xff]  }
 0x766   :  { %v1808_v23 = vsel %vm488_vm0, %v1803_v22, 0.0  ;;  %v1804_v24 = vmul.f32 %v1801_v20, %v1801_v20  ;;  %v9592_v22 = vld [vmem:[#allocation12 + $0x50] sm:$0xff]  }
 0x767   :  { %1809 = vadd.xlane.f32.xlu0 %v1808_v23 }
 0x768   :  { %v1811_v25 = vsel %vm488_vm0, %v1804_v24, 0.0  ;;  %v9593_v24 = vld [vmem:[#allocation12 + $0x48] sm:$0xff]  }
 0x769   :  { %1812 = vadd.xlane.f32.xlu1 %v1811_v25  ;;  %v9594_v25 = vld [vmem:[#allocation12 + $0x58] sm:$0xff]  }
 0x7f2   :  { %v1807_v28 = vpop.xlane.xlu1 %1806 }
 0x7f3   :  { %v1814_v29 = vmul.f32 0.03125, %v1807_v28 }
 0x7f4   :  { %v1810_v30 = vpop.xlane.xlu0 %1809 }
 0x7f5   :  { %v1817_v31 = vadd.f32 1e-05, %v1814_v29  ;;  %v1815_v32 = vmul.f32 0.03125, %v1810_v30 }
 0x7f6   :  { %v1813_v33 = vpop.xlane.xlu1 %1812 }
 0x7f7   :  { %9798 = vrsqrt.f32 %v1817_v31  ;;  %v1818_v34 = vadd.f32 1e-05, %v1815_v32  ;;  %v1816_v35 = vmul.f32 0.03125, %v1813_v33 }
 0x7f9   :  { %9800 = vrsqrt.f32 %v1818_v34  ;;  %v1819_v36 = vadd.f32 1e-05, %v1816_v35 }
 0x7fb   :  { %9802 = vrsqrt.f32 %v1819_v36 }
 0x801   :  { %v9799_v37 = vpop.eup %9798 }
 0x802   :  { %v1823_v38 = vmul.f32 %v9799_v37, %v1799_v14  ;;  %v9589_v14 = vld [vmem:[#allocation12 + $0x28] sm:$0xff]  }
 0x803   :  { %v9801_v39 = vpop.eup %9800 }
 0x804   :  { %v1824_v40 = vmul.f32 %v9801_v39, %v1800_v17  ;;  %v1829_v41 = vmin.f32 %v1823_v38, 0.0  ;;  %vm1826_vm9 = vcmp.gt.f32.partialorder %v1823_v38, 0.0 }
 0x805   :  { %v9803_v42 = vpop.eup %9802 }
 0x806   :  { %v1830_v44 = vmin.f32 %v1824_v40, 0.0  ;;  %v1832_v45 = vmul.f32 1.442695, %v1829_v41  ;;  %v1825_v46 = vmul.f32 %v9803_v42, %v1801_v20  ;;  %vm1827_vm10 = vcmp.gt.f32.partialorder %v1824_v40, 0.0 }
 0x808   :  { %9804 = vpow2.f32 %v1832_v45  ;;  %v1834_v47 = vmul.f32 1.442695, %v1830_v44  ;;  %v1831_v48 = vmin.f32 %v1825_v46, 0.0  ;;  %vm1828_vm11 = vcmp.gt.f32.partialorder %v1825_v46, 0.0 }
 0x80a   :  { %9806 = vpow2.f32 %v1834_v47  ;;  %v1836_v49 = vmul.f32 1.442695, %v1831_v48 }
 0x80c   :  { %9808 = vpow2.f32 %v1836_v49 }
 0x812   :  { %v9805_v50 = vpop.eup %9804 }
 0x813   :  { %v7814_v51 = vadd.f32 -1.0, %v9805_v50 }
 0x814   :  { %v9807_v52 = vpop.eup %9806 }
 0x815   :  { %v7815_v53 = vadd.f32 -1.0, %v9807_v52  ;;  %v1841_v55 = vsel %vm1826_vm9, %v1823_v38, %v7814_v51  ;;  %vm4099_vm9 = vcmask 1040384  }
 0x816   :  { %v9809_v54 = vpop.eup %9808 }
 0x817   :  { %v1842_v56 = vsel %vm1827_vm10, %v1824_v40, %v7815_v53  ;;  %v7816_v57 = vadd.f32 -1.0, %v9809_v54  ;;  %vm4101_vm10 = vcmask 1041408  }
 0x818   :  { %v1856_v58 = vpack.c.bf16 %v1842_v56, %v1841_v55 }
 0x819   :  { %v1843_v59 = vsel %vm1828_vm11, %v1825_v46, %v7816_v57  ;;  %vm4105_vm11 = vcmask 1044480  }
 0x81a   :  { %8730 = vmatprep.subr.bf16.mxu0 %v1856_v58  ;;  %v1857_v60 = vpack.c.bf16 %v1843_v59, %v1843_v59 }
 0x81b   :  { %8731 = vmatpush3.bf16.msra.mxu0 %v1856_v58 }
 0x81c   :  { %9482 = vmatprep.subr.msk.bf16.mxu0 %vm1907_vm12, %v1857_v60  ;;  %v1909_v61 = vsel %vm1907_vm12, %v1857_v60, 0 }
 0x81f   :  { %8733 = vmatpush3.bf16.msra.mxu0 %v1909_v61 }
 0x820   :  { %8754 = vmatprep.subr.bf16.mxu0 %v10365_v43 }
 0x822   :  { %8735 = vmatmul.mubr.msk.bf16.vlgmr.msra.gmra.mrb[52].mxu0 %vm1888_vm8, %v9578_v62  ;;  %v7847_v62 = vld [vmem:[%s11309_s25] ss:$0 sm:$0xff] }
 0x823   :  { %8738 = vmatprep.mubr.msk.bf16.mxu0 %vm1888_vm8, %v9579_v63  ;;  %8755 = vmatpush3.bf16.msra.mxu0 %v9584_v0 }
 0x824   :  { %8756 = vmatprep.subr.bf16.mxu0 %v10365_v43 }
 0x827   :  { %8757 = vmatpush3.bf16.msra.mxu0 %v9586_v5 }
 0x828   :  { %8770 = vmatprep.subr.bf16.mxu0 %v10365_v43 }
 0x82a   :  { %8739 = vmatmul.mubr.msk.bf16.gmra.mrb[56].mxu0 %vm1888_vm8, %v9580_v1 }
 0x82b   :  { %8742 = vmatprep.mubr.msk.bf16.mxu0 %vm1888_vm8, %v9581_v2 }
 0x832   :  { %8743 = vmatmul.mubr.msk.bf16.gmra.mrb[60].mxu0 %vm1888_vm8, %v9582_v3 }
 0x833   :  { %8758 = vmatprep.mubr.msk.bf16.mxu0 %vm10366_vm3, %v10365_v43 }
 0x8f5   :  { %v8736_v6 = vpop.f32.mrb[52].mxu0 }
 0x8f6   :  { %v1945_v7 = vpop.f32.mrb[53].mxu0 }
 0x8f7   :  { %v8737_v8 = vpop.f32.mrb[54].mxu0 }
 0x8f8   :  { %v2002_v10 = vpack.c.bf16 %v8737_v8, %v8736_v6  ;;  %v1948_v11 = vpop.f32.mrb[55].mxu0 }
 0x8f9   :  { %v1996_v13 = vpack.c.bf16 %v1948_v11, %v1945_v7 }
 0x8fa   :  { %8751 = vmatmul.mubr.msk.bf16.vlgmr.msra.gmra.mrb[40].mxu1 %vm488_vm0, %v2002_v10 }
 0x8fb   :  { %8759 = vmatmul.mubr.msk.bf16.vlgmr.msra.gmra.mrb[64].mxu0 %vm488_vm0, %v1996_v13  ;;  %8763 = vmatpush3.bf16.msra.mxu1 %v9587_v9 }
 0x8fc   :  { %8771 = vmatpush3.bf16.msra.mxu0 %v9588_v12  ;;  %8764 = vmatprep.subr.bf16.mxu1 %v10365_v43 }
 0x8fd   :  { %v8740_v16 = vpop.f32.mrb[56].mxu0  ;;  %8772 = vmatprep.subr.bf16.mxu0 %v10365_v43  ;;  %8766 = vmatprep.mubr.msk.bf16.mxu1 %vm10366_vm3, %v10365_v43 }
 0x8fe   :  { %v1961_v17 = vpop.f32.mrb[57].mxu0  ;;  %8774 = vmatprep.mubr.msk.bf16.mxu0 %vm10366_vm3, %v10365_v43 }
 0x8ff   :  { %v8741_v18 = vpop.f32.mrb[58].mxu0  ;;  %8765 = vmatpush3.bf16.msra.mxu1 %v9589_v14 }
 0x900   :  { %v2184_v19 = vpack.c.bf16 %v8741_v18, %v8740_v16  ;;  %v1964_v20 = vpop.f32.mrb[59].mxu0  ;;  %8773 = vmatpush3.bf16.msra.mxu0 %v9590_v15  ;;  %8778 = vmatprep.subr.bf16.mxu1 %v10365_v43  ;;  %v9595_v18 = vld [vmem:[#allocation7] sm:$0xff]  }
 0x901   :  { %v2120_v23 = vpack.c.bf16 %v1964_v20, %v1961_v17  ;;  %8786 = vmatprep.subr.bf16.mxu0 %v10365_v43 }
 0x903   :  { %8767 = vmatmul.mubr.msk.bf16.vlgmr.msra.gmra.mrb[44].mxu1 %vm488_vm0, %v2120_v23  ;;  %8775 = vmatmul.mubr.msk.bf16.vlgmr.msra.gmra.mrb[68].mxu0 %vm488_vm0, %v2184_v19  ;;  %v9601_v19 = vld [vmem:[#allocation13 + $0x10] sm:$0xff]  }
 0x904   :  { %8779 = vmatpush3.bf16.msra.mxu1 %v9591_v21  ;;  %8787 = vmatpush3.bf16.msra.mxu0 %v9592_v22 }
 0x905   :  { %v8744_v26 = vpop.f32.mrb[60].mxu0  ;;  %8780 = vmatprep.subr.bf16.mxu1 %v10365_v43  ;;  %8788 = vmatprep.subr.bf16.mxu0 %v10365_v43 }
 0x906   :  { %v1977_v27 = vpop.f32.mrb[61].mxu0  ;;  %8782 = vmatprep.mubr.msk.bf16.mxu1 %vm10366_vm3, %v10365_v43  ;;  %8790 = vmatprep.mubr.msk.bf16.mxu0 %vm10366_vm3, %v10365_v43 }
 0x907   :  { %v8745_v28 = vpop.f32.mrb[62].mxu0 }
 0x908   :  { %v2312_v29 = vpack.c.bf16 %v8745_v28, %v8744_v26  ;;  %v1980_v30 = vpop.f32.mrb[63].mxu0  ;;  %8781 = vmatpush3.bf16.msra.mxu1 %v9593_v24  ;;  %8789 = vmatpush3.bf16.msra.mxu0 %v9594_v25 }
 0x909   :  { %v2248_v31 = vpack.c.bf16 %v1980_v30, %v1977_v27  ;;  %8808 = vmatprep.subr.bf16.mxu0 %v10365_v43 }
 0x90b   :  { %8783 = vmatmul.mubr.msk.bf16.vlgmr.msra.gmra.mrb[48].mxu1 %vm488_vm0, %v2248_v31  ;;  %8791 = vmatmul.mubr.msk.bf16.vlgmr.msra.gmra.mrb[72].mxu0 %vm488_vm0, %v2312_v29 }
 0x90c   :  { %8812 = vmatprep.mubr.msk.bf16.mxu0 %vm10366_vm3, %v10365_v43  ;;  %8796 = vmatprep.mubr.msk.bf16.mxu1 %vm2461_vm13, %v9595_v18 }
 0x90d   :  { %8809 = vmatpush3.bf16.msra.mxu0 %v9601_v19 }
 0x90e   :  { %8810 = vmatprep.subr.bf16.mxu0 %v10365_v43 }
 0x9cd   :  { %v2052_v32 = vpop.f32.mrb[40].mxu1 }
 0x9ce   :  { %v8752_v33 = vpop.f32.mrb[41].mxu1  ;;  %v2108_v34 = vpop.f32.mrb[64].mxu0 }
 0x9cf   :  { %v2109_v35 = vadd.f32 %v2108_v34, %v2052_v32  ;;  %v2055_v36 = vpop.f32.mrb[42].mxu1  ;;  %v8760_v37 = vpop.f32.mrb[65].mxu0 }
 0x9d0   :  { %v8753_v38 = vpop.f32.mrb[43].mxu1  ;;  %v2111_v39 = vpop.f32.mrb[66].mxu0 }
 0x9d1   :  { %v2112_v40 = vadd.f32 %v2111_v39, %v2055_v36  ;;  %v8761_v41 = vpop.f32.mrb[67].mxu0 }
 0x9d2   :  { %v9596_v41 = vld [vmem:[#allocation7 + $0x8] sm:$0xff]  }
 0x9d6   :  { %v2170_v42 = vpop.f32.mrb[44].mxu1  ;;  %v2234_v44 = vpop.f32.mrb[68].mxu0 }
 0x9d7   :  { %v2177_v45 = vadd.f32 %v2170_v42, %v2109_v35  ;;  %v8768_v46 = vpop.f32.mrb[45].mxu1  ;;  %v8776_v47 = vpop.f32.mrb[69].mxu0  ;;  %v9597_v42 = vld [vmem:[#allocation7 + $0x10] sm:$0xff]  }
 0x9d8   :  { %v2173_v48 = vpop.f32.mrb[46].mxu1  ;;  %v2237_v49 = vpop.f32.mrb[70].mxu0  ;;  %v9600_v46 = vld [vmem:[#allocation7 + $0x28] sm:$0xff]   ;;  %v9602_v47 = vld [vmem:[#allocation13 + $0x18] sm:$0xff]  }
 0x9d9   :  { %v2241_v50 = vadd.f32 %v2234_v44, %v2177_v45  ;;  %v2178_v51 = vadd.f32 %v2173_v48, %v2112_v40  ;;  %v8769_v52 = vpop.f32.mrb[47].mxu1  ;;  %v8777_v53 = vpop.f32.mrb[71].mxu0  ;;  %v9598_v44 = vld [vmem:[#allocation7 + $0x18] sm:$0xff]   ;;  %v9599_v45 = vld [vmem:[#allocation7 + $0x20] sm:$0xff]   ;;  %8811 = vmatpush3.bf16.msra.mxu0 %v9602_v47 }
 0x9da   :  { %8816 = vmatprep.subr.bf16.mxu0 %v10365_v43  ;;  %v9604_v48 = vld [vmem:[#allocation13 + $0x30] sm:$0xff]   ;;  %v9603_v53 = vld [vmem:[#allocation13] sm:$0xff]  }
 0x9db   :  { %v2242_v54 = vadd.f32 %v2237_v49, %v2178_v51  ;;  %v9606_v49 = vld [vmem:[#allocation13 + $0x38] sm:$0xff]  }
 0x9de   :  { %v2298_v55 = vpop.f32.mrb[48].mxu1  ;;  %v2362_v56 = vpop.f32.mrb[72].mxu0 }
 0x9df   :  { %v2305_v57 = vadd.f32 %v2298_v55, %v2241_v50  ;;  %v8784_v58 = vpop.f32.mrb[49].mxu1  ;;  %v8792_v59 = vpop.f32.mrb[73].mxu0 }
 0x9e0   :  { %v2301_v60 = vpop.f32.mrb[50].mxu1  ;;  %v2365_v61 = vpop.f32.mrb[74].mxu0 }
 0x9e1   :  { %v2369_v63 = vadd.f32 %v2362_v56, %v2305_v57  ;;  %v2306_v0 = vadd.f32 %v2301_v60, %v2242_v54  ;;  %v8785_v1 = vpop.f32.mrb[51].mxu1  ;;  %v8793_v2 = vpop.f32.mrb[75].mxu0  ;;  %v9605_v57 = vld [vmem:[#allocation13 + $0x8] sm:$0xff]  }
 0x9e2   :  { %v9609_v2 = vld [vmem:[#allocation13 + $0x28] sm:$0xff]  }
 0x9e3   :  { %v2370_v3 = vadd.f32 %v2365_v61, %v2306_v0  ;;  %v2378_v4 = vadd.f32 %v7847_v62, %v2369_v63  ;;  %v9607_v61 = vld [vmem:[#allocation13 + $0x20] sm:$0xff]  }
 0x9e5   :  { %v2380_v5 = vsel %vm488_vm0, %v2378_v4, 0.0  ;;  %v2379_v6 = vadd.f32 %v7847_v62, %v2370_v3  ;;  %v9608_v62 = vld [vmem:[#allocation13 + $0x50] sm:$0xff]   ;;  %v9610_v3 = vld [vmem:[#allocation13 + $0x58] sm:$0xff]  }
 0x9e6   :  { %2381 = vadd.xlane.f32.xlu0 %v2380_v5 }
 0x9e7   :  { %v2383_v7 = vsel %vm488_vm0, %v2379_v6, 0.0 }
 0x9e8   :  { %2384 = vadd.xlane.f32.xlu1 %v2383_v7  ;;  %v9611_v7 = vld [vmem:[#allocation13 + $0x40] sm:$0xff]  }
 0xa73   :  { %v2382_v8 = vpop.xlane.xlu0 %2381 }
 0xa74   :  { %v2386_v9 = vmul.f32 0.03125, %v2382_v8 }
 0xa75   :  { %v2385_v10 = vpop.xlane.xlu1 %2384 }
 0xa76   :  { %v2388_v11 = vsub.f32 %v2378_v4, %v2386_v9  ;;  %v2387_v12 = vmul.f32 0.03125, %v2385_v10 }
 0xa78   :  { %v2389_v13 = vsub.f32 %v2379_v6, %v2387_v12  ;;  %v2390_v14 = vmul.f32 %v2388_v11, %v2388_v11 }
 0xa7a   :  { %v2392_v15 = vsel %vm488_vm0, %v2390_v14, 0.0  ;;  %v2391_v16 = vmul.f32 %v2389_v13, %v2389_v13 }
 0xa7b   :  { %2393 = vadd.xlane.f32.xlu0 %v2392_v15 }
 0xa7c   :  { %v2395_v17 = vsel %vm488_vm0, %v2391_v16, 0.0 }
 0xa7d   :  { %2396 = vadd.xlane.f32.xlu1 %v2395_v17 }
 0xb08   :  { %v2394_v20 = vpop.xlane.xlu0 %2393 }
 0xb09   :  { %v2398_v21 = vmul.f32 0.03125, %v2394_v20 }
 0xb0a   :  { %v2397_v22 = vpop.xlane.xlu1 %2396 }
 0xb0b   :  { %v2400_v23 = vadd.f32 1e-05, %v2398_v21  ;;  %v2399_v24 = vmul.f32 0.03125, %v2397_v22 }
 0xb0d   :  { %9810 = vrsqrt.f32 %v2400_v23  ;;  %v2401_v25 = vadd.f32 1e-05, %v2399_v24 }
 0xb0f   :  { %9812 = vrsqrt.f32 %v2401_v25 }
 0xb17   :  { %v9811_v26 = vpop.eup %9810 }
 0xb18   :  { %v2404_v27 = vmul.f32 %v9811_v26, %v2388_v11  ;;  %v9612_v11 = vld [vmem:[#allocation13 + $0x48] sm:$0xff]  }
 0xb19   :  { %v9813_v28 = vpop.eup %9812 }
 0xb1a   :  { %v2405_v29 = vmul.f32 %v9813_v28, %v2389_v13  ;;  %v2408_v30 = vmin.f32 %v2404_v27, 0.0  ;;  %vm2406_vm14 = vcmp.gt.f32.partialorder %v2404_v27, 0.0 }
 0xb1c   :  { %v2409_v31 = vmin.f32 %v2405_v29, 0.0  ;;  %v2410_v32 = vmul.f32 1.442695, %v2408_v30  ;;  %vm2407_vm15 = vcmp.gt.f32.partialorder %v2405_v29, 0.0 }
 0xb1e   :  { %9814 = vpow2.f32 %v2410_v32  ;;  %v2412_v33 = vmul.f32 1.442695, %v2409_v31 }
 0xb20   :  { %9816 = vpow2.f32 %v2412_v33 }
 0xb28   :  { %v9815_v34 = vpop.eup %9814 }
 0xb29   :  { %v7848_v35 = vadd.f32 -1.0, %v9815_v34 }
 0xb2a   :  { %v9817_v36 = vpop.eup %9816 }
 0xb2b   :  { %v7849_v37 = vadd.f32 -1.0, %v9817_v36  ;;  %v2416_v38 = vsel %vm2406_vm14, %v2404_v27, %v7848_v35  ;;  %vm4107_vm14 = vcmask 1045504  }
 0xb2d   :  { %v2417_v39 = vsel %vm2407_vm15, %v2405_v29, %v7849_v37 }
 0xb2e   :  { %v2430_v40 = vpack.c.bf16 %v2417_v39, %v2416_v38 }
 0xb30   :  { %8794 = vmatprep.subr.bf16.mxu1 %v2430_v40 }
 0xb31   :  { %8795 = vmatpush3.bf16.msra.mxu1 %v2430_v40 }
 0xb32   :  { %8832 = vmatprep.subr.bf16.mxu1 %v10365_v43 }
 0xb34   :  { %8797 = vmatmul.mubr.msk.bf16.vlgmr.msra.gmra.mrb[52].mxu1 %vm2461_vm13, %v9596_v41 }
 0xb35   :  { %8800 = vmatprep.mubr.msk.bf16.mxu1 %vm2461_vm13, %v9597_v42  ;;  %8833 = vmatpush3.bf16.msra.mxu1 %v9604_v48  ;;  %v7880_v42 = vld [vmem:[%s11310_s29] ss:$0 sm:$0xff] }
 0xb36   :  { %8834 = vmatprep.subr.bf16.mxu1 %v10365_v43 }
 0xb39   :  { %8835 = vmatpush3.bf16.msra.mxu1 %v9606_v49 }
 0xb3a   :  { %8848 = vmatprep.subr.bf16.mxu1 %v10365_v43 }
 0xb3c   :  { %8801 = vmatmul.mubr.msk.bf16.gmra.mrb[56].mxu1 %vm2461_vm13, %v9598_v44 }
 0xb3d   :  { %8804 = vmatprep.mubr.msk.bf16.mxu1 %vm2461_vm13, %v9599_v45 }
 0xb44   :  { %8805 = vmatmul.mubr.msk.bf16.gmra.mrb[60].mxu1 %vm2461_vm13, %v9600_v46 }
 0xb45   :  { %8836 = vmatprep.mubr.msk.bf16.mxu1 %vm10366_vm3, %v10365_v43 }
 0xc07   :  { %v8798_v50 = vpop.f32.mrb[52].mxu1 }
 0xc08   :  { %v2514_v51 = vpop.f32.mrb[53].mxu1 }
 0xc09   :  { %v8799_v52 = vpop.f32.mrb[54].mxu1 }
 0xc0a   :  { %v2571_v54 = vpack.c.bf16 %v8799_v52, %v8798_v50  ;;  %v2517_v55 = vpop.f32.mrb[55].mxu1 }
 0xc0b   :  { %v2565_v56 = vpack.c.bf16 %v2517_v55, %v2514_v51 }
 0xc0c   :  { %8813 = vmatmul.mubr.msk.bf16.vlgmr.msra.gmra.mrb[76].mxu0 %vm488_vm0, %v2571_v54 }
 0xc0d   :  { %8817 = vmatpush3.bf16.msra.mxu0 %v9603_v53  ;;  %8820 = vmatprep.mubr.msk.bf16.mxu0 %vm10366_vm3, %v10365_v43 }
 0xc0e   :  { %8818 = vmatprep.subr.bf16.mxu0 %v10365_v43 }
 0xc0f   :  { %v8802_v58 = vpop.f32.mrb[56].mxu1 }
 0xc10   :  { %v2530_v59 = vpop.f32.mrb[57].mxu1 }
 0xc11   :  { %8819 = vmatpush3.bf16.msra.mxu0 %v9605_v57  ;;  %v8803_v60 = vpop.f32.mrb[58].mxu1 }
 0xc12   :  { %v2753_v63 = vpack.c.bf16 %v8803_v60, %v8802_v58  ;;  %8824 = vmatprep.subr.bf16.mxu0 %v10365_v43  ;;  %v2533_v0 = vpop.f32.mrb[59].mxu1 }
 0xc13   :  { %v2689_v1 = vpack.c.bf16 %v2533_v0, %v2530_v59  ;;  %v9618_v0 = vld [vmem:[#allocation16 + $0x30] sm:$0xff]  }
 0xc14   :  { %8821 = vmatmul.mubr.msk.bf16.vlgmr.msra.gmra.mrb[80].mxu0 %vm488_vm0, %v2565_v56  ;;  %8837 = vmatmul.mubr.msk.bf16.vlgmr.msra.gmra.mrb[64].mxu1 %vm488_vm0, %v2753_v63  ;;  %v9616_v63 = vld [vmem:[#allocation16 + $0x28] sm:$0xff]  }
 0xc15   :  { %8825 = vmatpush3.bf16.msra.mxu0 %v9607_v61  ;;  %8849 = vmatpush3.bf16.msra.mxu1 %v9608_v62  ;;  %v9614_v62 = vld [vmem:[#allocation16 + $0x20] sm:$0xff]  }
 0xc16   :  { %8826 = vmatprep.subr.bf16.mxu0 %v10365_v43  ;;  %8850 = vmatprep.subr.bf16.mxu1 %v10365_v43 }
 0xc17   :  { %v8806_v4 = vpop.f32.mrb[60].mxu1  ;;  %8828 = vmatprep.mubr.msk.bf16.mxu0 %vm10366_vm3, %v10365_v43  ;;  %8852 = vmatprep.mubr.msk.bf16.mxu1 %vm10366_vm3, %v10365_v43 }
 0xc18   :  { %v2546_v5 = vpop.f32.mrb[61].mxu1 }
 0xc19   :  { %8827 = vmatpush3.bf16.msra.mxu0 %v9609_v2  ;;  %v8807_v6 = vpop.f32.mrb[62].mxu1  ;;  %8851 = vmatpush3.bf16.msra.mxu1 %v9610_v3 }
 0xc1a   :  { %v2881_v8 = vpack.c.bf16 %v8807_v6, %v8806_v4  ;;  %8840 = vmatprep.subr.bf16.mxu0 %v10365_v43  ;;  %v2549_v9 = vpop.f32.mrb[63].mxu1  ;;  %8862 = vmatprep.subr.bf16.mxu1 %v10365_v43 }
 0xc1b   :  { %v2817_v10 = vpack.c.bf16 %v2549_v9, %v2546_v5 }
 0xc1c   :  { %8829 = vmatmul.mubr.msk.bf16.vlgmr.msra.gmra.mrb[84].mxu0 %vm488_vm0, %v2689_v1  ;;  %8853 = vmatmul.mubr.msk.bf16.vlgmr.msra.gmra.mrb[68].mxu1 %vm488_vm0, %v2881_v8 }
 0xc1d   :  { %8841 = vmatpush3.bf16.msra.mxu0 %v9611_v7  ;;  %8844 = vmatprep.mubr.msk.bf16.mxu0 %vm10366_vm3, %v10365_v43 }
 0xc1e   :  { %8842 = vmatprep.subr.bf16.mxu0 %v10365_v43  ;;  %8870 = vmatprep.mubr.msk.bf16.mxu1 %vm10366_vm3, %v10365_v43 }
 0xc1f   :  { %8863 = vmatpush3.bf16.msra.mxu1 %v9614_v62  ;;  %v9644_v62 = vld [vmem:[#allocation16 + $0xd8] sm:$0xff]  }
 0xc20   :  { %8864 = vmatprep.subr.bf16.mxu1 %v10365_v43 }
 0xc21   :  { %8843 = vmatpush3.bf16.msra.mxu0 %v9612_v11 }
 0xc22   :  { %8856 = vmatprep.subr.bf16.mxu0 %v10365_v43 }
 0xc23   :  { %8865 = vmatpush3.bf16.msra.mxu1 %v9616_v63 }
 0xc24   :  { %8845 = vmatmul.mubr.msk.bf16.vlgmr.msra.gmra.mrb[88].mxu0 %vm488_vm0, %v2817_v10  ;;  %8866 = vmatprep.subr.bf16.mxu1 %v10365_v43 }
 0xc25   :  { %8858 = vmatprep.mubr.msk.bf16.mxu0 %vm10366_vm3, %v10365_v43 }
 0xc27   :  { %8867 = vmatpush3.bf16.msra.mxu1 %v9618_v0 }
 0xc28   :  { %8868 = vmatprep.subr.bf16.mxu1 %v10365_v43 }
 0xcdf   :  { %v2621_v12 = vpop.f32.mrb[76].mxu0 }
 0xce0   :  { %v8814_v13 = vpop.f32.mrb[77].mxu0 }
 0xce1   :  { %v2624_v14 = vpop.f32.mrb[78].mxu0 }
 0xce2   :  { %v8815_v15 = vpop.f32.mrb[79].mxu0 }
 0xce7   :  { %v2677_v16 = vpop.f32.mrb[80].mxu0  ;;  %v2803_v17 = vpop.f32.mrb[64].mxu1 }
 0xce8   :  { %v2678_v18 = vadd.f32 %v2677_v16, %v2621_v12  ;;  %v8822_v19 = vpop.f32.mrb[81].mxu0  ;;  %v8838_v20 = vpop.f32.mrb[65].mxu1 }
 0xce9   :  { %v2680_v21 = vpop.f32.mrb[82].mxu0  ;;  %v2806_v22 = vpop.f32.mrb[66].mxu1 }
 0xcea   :  { %v2681_v23 = vadd.f32 %v2680_v21, %v2624_v14  ;;  %v8823_v24 = vpop.f32.mrb[83].mxu0  ;;  %v8839_v25 = vpop.f32.mrb[67].mxu1 }
 0xceb   :  { %v9615_v24 = vld [vmem:[#allocation16 + $0x8] sm:$0xff]   ;;  %v9617_v25 = vld [vmem:[#allocation16 + $0x10] sm:$0xff]  }
 0xcef   :  { %v2739_v26 = vpop.f32.mrb[84].mxu0  ;;  %v2931_v27 = vpop.f32.mrb[68].mxu1 }
 0xcf0   :  { %v2746_v28 = vadd.f32 %v2739_v26, %v2678_v18  ;;  %v8830_v29 = vpop.f32.mrb[85].mxu0  ;;  %v8854_v30 = vpop.f32.mrb[69].mxu1  ;;  %v9619_v26 = vld [vmem:[#allocation16 + $0x18] sm:$0xff]  }
 0xcf1   :  { %v2742_v31 = vpop.f32.mrb[86].mxu0  ;;  %v2934_v32 = vpop.f32.mrb[70].mxu1  ;;  %v9621_v29 = vld [vmem:[#allocation16 + $0x60] sm:$0xff]  }
 0xcf2   :  { %v2747_v33 = vadd.f32 %v2742_v31, %v2681_v23  ;;  %v8831_v34 = vpop.f32.mrb[87].mxu0  ;;  %v8855_v35 = vpop.f32.mrb[71].mxu1  ;;  %v2810_v36 = vadd.f32 %v2803_v17, %v2746_v28  ;;  %v9613_v23 = vld [vmem:[#allocation16] sm:$0xff]  }
 0xcf4   :  { %v2811_v37 = vadd.f32 %v2806_v22, %v2747_v33  ;;  %v2989_v22 = vld [vmem:[#allocation15] sm:$0xf]  ;;  %v9622_v33 = vld [vmem:[#allocation16 + $0x40] sm:$0xff]  }
 0xcf7   :  { %v2867_v38 = vpop.f32.mrb[88].mxu0 }
 0xcf8   :  { %v2874_v39 = vadd.f32 %v2867_v38, %v2810_v36  ;;  %v8846_v40 = vpop.f32.mrb[89].mxu0  ;;  %v9623_v36 = vld [vmem:[#allocation16 + $0x68] sm:$0xff]   ;;  %v9625_v38 = vld [vmem:[#allocation16 + $0x70] sm:$0xff]  }
 0xcf9   :  { %v2870_v41 = vpop.f32.mrb[90].mxu0  ;;  %v9627_v40 = vld [vmem:[#allocation16 + $0x78] sm:$0xff]  }
 0xcfa   :  { %v2938_v44 = vadd.f32 %v2931_v27, %v2874_v39  ;;  %v2875_v45 = vadd.f32 %v2870_v41, %v2811_v37  ;;  %v8847_v46 = vpop.f32.mrb[91].mxu0  ;;  %v9620_v27 = vld [vmem:[#allocation16 + $0x38] sm:$0xff]   ;;  %v9624_v37 = vld [vmem:[#allocation16 + $0x48] sm:$0xff]   ;;  %v9626_v39 = vld [vmem:[#allocation16 + $0x50] sm:$0xff]  }
 0xcfb   :  { %8869 = vmatpush3.bf16.msra.mxu1 %v9620_v27  ;;  %v9628_v41 = vld [vmem:[#allocation16 + $0x58] sm:$0xff]  }
 0xcfc   :  { %v2939_v47 = vadd.f32 %v2934_v32, %v2875_v45  ;;  %v2947_v48 = vadd.f32 %v7880_v42, %v2938_v44  ;;  %8886 = vmatprep.subr.bf16.mxu1 %v10365_v43  ;;  %v9630_v45 = vld [vmem:[#allocation16 + $0x80] sm:$0xff]  }
 0xcfe   :  { %v2950_v49 = vsel %vm2949_vm4, %v2947_v48, 0.0  ;;  %v2948_v50 = vadd.f32 %v7880_v42, %v2939_v47  ;;  %v9629_v42 = vld [vmem:[#allocation16 + $0xa0] sm:$0xff]   ;;  %v9631_v47 = vld [vmem:[#allocation16 + $0xa8] sm:$0xff]  }
 0xcff   :  { %2951 = vadd.xlane.f32.xlu0 %v2950_v49  ;;  %v9633_v49 = vld [vmem:[#allocation16 + $0xb0] sm:$0xff]  }
 0xd00   :  { %v2953_v51 = vsel %vm2949_vm4, %v2948_v50, 0.0 }
 0xd01   :  { %2954 = vadd.xlane.f32.xlu1 %v2953_v51  ;;  %v9635_v51 = vld [vmem:[#allocation16 + $0xb8] sm:$0xff]  }
 0xd8c   :  { %v2952_v52 = vpop.xlane.xlu0 %2951 }
 0xd8d   :  { %v2957_v53 = vmul.f32 0.015625, %v2952_v52  ;;  %v9636_v52 = vld [vmem:[#allocation16 + $0x98] sm:$0xff]  }
 0xd8e   :  { %v2955_v54 = vpop.xlane.xlu1 %2954 }
 0xd8f   :  { %v2959_v55 = vsub.f32 %v2947_v48, %v2957_v53  ;;  %v2958_v56 = vmul.f32 0.015625, %v2955_v54  ;;  %v9632_v48 = vld [vmem:[#allocation16 + $0x88] sm:$0xff]   ;;  %v9637_v53 = vld [vmem:[#allocation16 + $0xe0] sm:$0xff]  }
 0xd91   :  { %v2960_v57 = vsub.f32 %v2948_v50, %v2958_v56  ;;  %v2961_v58 = vmul.f32 %v2959_v55, %v2959_v55  ;;  %v9634_v50 = vld [vmem:[#allocation16 + $0x90] sm:$0xff]  }
 0xd93   :  { %v2963_v59 = vsel %vm2949_vm4, %v2961_v58, 0.0  ;;  %v2962_v60 = vmul.f32 %v2960_v57, %v2960_v57  ;;  %v9640_v58 = vld [vmem:[#allocation16 + $0xc8] sm:$0xff]  }
 0xd94   :  { %2964 = vadd.xlane.f32.xlu0 %v2963_v59  ;;  %v9641_v59 = vld [vmem:[#allocation16 + $0xf0] sm:$0xff]  }
 0xd95   :  { %v2966_v61 = vsel %vm2949_vm4, %v2962_v60, 0.0  ;;  %v9642_v60 = vld [vmem:[#allocation16 + $0xd0] sm:$0xff]  }
 0xd96   :  { %2967 = vadd.xlane.f32.xlu1 %v2966_v61  ;;  %v9643_v61 = vld [vmem:[#allocation16 + $0xf8] sm:$0xff]  }
 0xe21   :  { %v2965_v1 = vpop.xlane.xlu0 %2964 }
 0xe22   :  { %v2969_v2 = vmul.f32 0.015625, %v2965_v1 }
 0xe23   :  { %v2968_v3 = vpop.xlane.xlu1 %2967 }
 0xe24   :  { %v2971_v4 = vadd.f32 1e-05, %v2969_v2  ;;  %v2970_v5 = vmul.f32 0.015625, %v2968_v3 }
 0xe26   :  { %9818 = vrsqrt.f32 %v2971_v4  ;;  %v2972_v6 = vadd.f32 1e-05, %v2970_v5 }
 0xe28   :  { %9820 = vrsqrt.f32 %v2972_v6 }
 0xe30   :  { %v9819_v7 = vpop.eup %9818 }
 0xe31   :  { %v2975_v8 = vmul.f32 %v9819_v7, %v2959_v55  ;;  %v9638_v55 = vld [vmem:[#allocation16 + $0xc0] sm:$0xff]  }
 0xe32   :  { %v9821_v9 = vpop.eup %9820 }
 0xe33   :  { %v2976_v10 = vmul.f32 %v9821_v9, %v2960_v57  ;;  %v2979_v11 = vmin.f32 %v2975_v8, 0.0  ;;  %vm2977_vm5 = vcmp.gt.f32.partialorder %v2975_v8, 0.0  ;;  %v9639_v57 = vld [vmem:[#allocation16 + $0xe8] sm:$0xff]  }
 0xe35   :  { %v2980_v12 = vmin.f32 %v2976_v10, 0.0  ;;  %v2981_v13 = vmul.f32 1.442695, %v2979_v11  ;;  %vm2978_vm6 = vcmp.gt.f32.partialorder %v2976_v10, 0.0 }
 0xe37   :  { %9822 = vpow2.f32 %v2981_v13  ;;  %v2983_v14 = vmul.f32 1.442695, %v2980_v12 }
 0xe39   :  { %9824 = vpow2.f32 %v2983_v14 }
 0xe41   :  { %v9823_v15 = vpop.eup %9822 }
 0xe42   :  { %v7881_v16 = vadd.f32 -1.0, %v9823_v15 }
 0xe43   :  { %v9825_v17 = vpop.eup %9824 }
 0xe44   :  { %v7882_v18 = vadd.f32 -1.0, %v9825_v17  ;;  %v2987_v19 = vsel %vm2977_vm5, %v2975_v8, %v7881_v16 }
 0xe46   :  { %v2988_v20 = vsel %vm2978_vm6, %v2976_v10, %v7882_v18 }
 0xe47   :  { %v2990_v21 = vpack.c.bf16 %v2988_v20, %v2987_v19 }
 0xe49   :  { %8857 = vmatpush3.bf16.msra.mxu0 %v2990_v21 }
 0xe4a   :  { %8874 = vmatprep.subr.bf16.mxu0 %v10365_v43 }
 0xe4c   :  { %8859 = vmatmul.mubr.msk.bf16.vlgmr.msra.gmra.mrb[92].mxu0 %vm2461_vm13, %v2989_v22 }
 0xe4d   :  { %8875 = vmatpush3.bf16.msra.mxu0 %v9613_v23  ;;  %8882 = vmatprep.mubr.msk.bf16.mxu0 %vm10366_vm3, %v10365_v43 }
 0xe4e   :  { %8876 = vmatprep.subr.bf16.mxu0 %v10365_v43 }
 0xe51   :  { %8877 = vmatpush3.bf16.msra.mxu0 %v9615_v24 }
 0xe52   :  { %8878 = vmatprep.subr.bf16.mxu0 %v10365_v43 }
 0xe55   :  { %8879 = vmatpush3.bf16.msra.mxu0 %v9617_v25 }
 0xe56   :  { %8880 = vmatprep.subr.bf16.mxu0 %v10365_v43 }
 0xe59   :  { %8881 = vmatpush3.bf16.msra.mxu0 %v9619_v26 }
 0xe5a   :  { %8898 = vmatprep.subr.bf16.mxu0 %v10365_v43 }
 0xf1f   :  { %v3028_v28 = vpop.f32.mrb[92].mxu0 }
 0xf20   :  { %v10934_v30 = vpack.c.bf16 %v3028_v28, %v3028_v28  ;;  %v8860_v31 = vpop.f32.mrb[93].mxu0 }
 0xf21   :  { %v3031_v32 = vpop.f32.mrb[94].mxu0 }
 0xf22   :  { %v8861_v34 = vpop.f32.mrb[95].mxu0  ;;  %8883 = vmatmul.mubr.msk.bf16.vlgmr.msra.gmra.mrb[96].mxu0 %vm2949_vm4, %v10934_v30  ;;  %v10939_v35 = vshrl.u32 %v10934_v30, 16  ;;  %v3198_v46 = vrot.slane %v10934_v30, 1  ;;  %v3354_v56 = vrot.slane %v10934_v30, 2  ;;  %v3510_v0 = vrot.slane %v10934_v30, 3 }
 0xf23   :  { %8899 = vmatpush3.bf16.msra.mxu0 %v9621_v29  ;;  %8906 = vmatprep.mubr.msk.bf16.mxu0 %vm10366_vm3, %v10365_v43 }
 0xf24   :  { %8871 = vmatmul.mubr.msk.bf16.vlgmr.msra.gmra.mrb[72].mxu1 %vm2949_vm4, %v10939_v35  ;;  %8900 = vmatprep.subr.bf16.mxu0 %v10365_v43  ;;  %v3276_v44 = vrot.slane %v10939_v35, 1  ;;  %v3432_v54 = vrot.slane %v10939_v35, 2  ;;  %v3588_v63 = vrot.slane %v10939_v35, 3 }
 0xf25   :  { %8887 = vmatpush3.bf16.msra.mxu1 %v9622_v33  ;;  %8894 = vmatprep.mubr.msk.bf16.mxu1 %vm10366_vm3, %v10365_v43 }
 0xf26   :  { %8888 = vmatprep.subr.bf16.mxu1 %v10365_v43 }
 0xf27   :  { %8901 = vmatpush3.bf16.msra.mxu0 %v9623_v36 }
 0xf28   :  { %8902 = vmatprep.subr.bf16.mxu0 %v10365_v43 }
 0xf29   :  { %8889 = vmatpush3.bf16.msra.mxu1 %v9624_v37  ;;  %v3657_v37 = vld [vmem:[%s11311_s9] sm:$0x1] }
 0xf2a   :  { %8890 = vmatprep.subr.bf16.mxu1 %v10365_v43 }
 0xf2b   :  { %8903 = vmatpush3.bf16.msra.mxu0 %v9625_v38 }
 0xf2c   :  { %8904 = vmatprep.subr.bf16.mxu0 %v10365_v43 }
 0xf2d   :  { %8891 = vmatpush3.bf16.msra.mxu1 %v9626_v39 }
 0xf2e   :  { %8892 = vmatprep.subr.bf16.mxu1 %v10365_v43 }
 0xf2f   :  { %8905 = vmatpush3.bf16.msra.mxu0 %v9627_v40 }
 0xf30   :  { %8922 = vmatprep.subr.bf16.mxu0 %v10365_v43 }
 0xf31   :  { %8893 = vmatpush3.bf16.msra.mxu1 %v9628_v41 }
 0xf32   :  { %8907 = vmatmul.mubr.msk.bf16.vlgmr.msra.gmra.mrb[100].mxu0 %vm2949_vm4, %v3276_v44  ;;  %8910 = vmatprep.subr.bf16.mxu1 %v10365_v43 }
 0xf33   :  { %8923 = vmatpush3.bf16.msra.mxu0 %v9629_v42  ;;  %8930 = vmatprep.mubr.msk.bf16.mxu0 %vm10366_vm3, %v10365_v43 }
 0xf34   :  { %8895 = vmatmul.mubr.msk.bf16.vlgmr.msra.gmra.mrb[76].mxu1 %vm2949_vm4, %v3198_v46  ;;  %8924 = vmatprep.subr.bf16.mxu0 %v10365_v43 }
 0xf35   :  { %8911 = vmatpush3.bf16.msra.mxu1 %v9630_v45  ;;  %8918 = vmatprep.mubr.msk.bf16.mxu1 %vm10366_vm3, %v10365_v43  ;;  %v10367_v45 = vmov 1966171168  }
 0xf36   :  { %8912 = vmatprep.subr.bf16.mxu1 %v10365_v43  ;;  %v3665_v46 = vunpack.c.l.s4 %v10367_v45 }
 0xf37   :  { %8925 = vmatpush3.bf16.msra.mxu0 %v9631_v47  ;;  %v3667_v47 = vlaneseq }
 0xf38   :  { %8926 = vmatprep.subr.bf16.mxu0 %v10365_v43 }
 0xf39   :  { %8913 = vmatpush3.bf16.msra.mxu1 %v9632_v48  ;;  %v3666_v48 = vunpack.c.0.s8 %v3665_v46 }
 0xf3a   :  { %8914 = vmatprep.subr.bf16.mxu1 %v10365_v43 }
 0xf3b   :  { %8927 = vmatpush3.bf16.msra.mxu0 %v9633_v49  ;;  %v3668_v49 = vshrl.u32 %v3667_v47, 7 }
 0xf3c   :  { %8928 = vmatprep.subr.bf16.mxu0 %v10365_v43 }
 0xf3d   :  { %8915 = vmatpush3.bf16.msra.mxu1 %v9634_v50  ;;  %v9645_v50 = vld [vmem:[#allocation18] sm:$0xff]  }
 0xf3e   :  { %8916 = vmatprep.subr.bf16.mxu1 %v10365_v43 }
 0xf3f   :  { %8929 = vmatpush3.bf16.msra.mxu0 %v9635_v51  ;;  %v9646_v51 = vld [vmem:[#allocation18 + $0x8] sm:$0xff]  }
 0xf40   :  { %8946 = vmatprep.subr.bf16.mxu0 %v10365_v43 }
 0xf41   :  { %8917 = vmatpush3.bf16.msra.mxu1 %v9636_v52  ;;  %v3669_v52 = vsub.s32 %v3666_v48, %v3668_v49  ;;  %v4111_v48 = vld [vmem:[%s11313_s8] sm:$0xff] }
 0xf42   :  { %8931 = vmatmul.mubr.msk.bf16.vlgmr.msra.gmra.mrb[104].mxu0 %vm2949_vm4, %v3432_v54  ;;  %8934 = vmatprep.subr.bf16.mxu1 %v10365_v43 }
 0xf43   :  { %8947 = vmatpush3.bf16.msra.mxu0 %v9637_v53  ;;  %8954 = vmatprep.mubr.msk.bf16.mxu0 %vm10366_vm3, %v10365_v43 }
 0xf44   :  { %8919 = vmatmul.mubr.msk.bf16.vlgmr.msra.gmra.mrb[80].mxu1 %vm2949_vm4, %v3354_v56  ;;  %8948 = vmatprep.subr.bf16.mxu0 %v10365_v43  ;;  %v3659_v56 = vld [vmem:[%s11312_s18] sm:$0x1] }
 0xf45   :  { %8935 = vmatpush3.bf16.msra.mxu1 %v9638_v55  ;;  %8942 = vmatprep.mubr.msk.bf16.mxu1 %vm10366_vm3, %v10365_v43 }
 0xf46   :  { %8936 = vmatprep.subr.bf16.mxu1 %v10365_v43 }
 0xf47   :  { %8949 = vmatpush3.bf16.msra.mxu0 %v9639_v57 }
 0xf48   :  { %8950 = vmatprep.subr.bf16.mxu0 %v10365_v43 }
 0xf49   :  { %8937 = vmatpush3.bf16.msra.mxu1 %v9640_v58 }
 0xf4a   :  { %8938 = vmatprep.subr.bf16.mxu1 %v10365_v43 }
 0xf4b   :  { %8951 = vmatpush3.bf16.msra.mxu0 %v9641_v59 }
 0xf4c   :  { %8952 = vmatprep.subr.bf16.mxu0 %v10365_v43 }
 0xf4d   :  { %8939 = vmatpush3.bf16.msra.mxu1 %v9642_v60  ;;  %v9647_v60 = vld [vmem:[#allocation18 + $0x10] sm:$0xff]  }
 0xf4e   :  { %8940 = vmatprep.subr.bf16.mxu1 %v10365_v43 }
 0xf4f   :  { %8953 = vmatpush3.bf16.msra.mxu0 %v9643_v61  ;;  %v9648_v61 = vld [vmem:[#allocation18 + $0x18] sm:$0xff]  }
 0xf50   :  { %8964 = vmatprep.subr.bf16.mxu0 %v10365_v43 }
 0xf51   :  { %8941 = vmatpush3.bf16.msra.mxu1 %v9644_v62 }
 0xf52   :  { %8955 = vmatmul.mubr.msk.bf16.vlgmr.msra.gmra.mrb[108].mxu0 %vm2949_vm4, %v3588_v63  ;;  %8958 = vmatprep.subr.bf16.mxu1 %v10365_v43  ;;  %v9649_v63 = vld [vmem:[#allocation18 + $0x20] sm:$0xff]  }
 0xf53   :  { %8966 = vmatprep.mubr.msk.bf16.mxu0 %vm10366_vm3, %v10365_v43  ;;  %8965 = vmatpush3.bf16.msra.mxu0 %v9646_v51 }
 0xf54   :  { %8943 = vmatmul.mubr.msk.bf16.vlgmr.msra.gmra.mrb[84].mxu1 %vm2949_vm4, %v3510_v0  ;;  %8976 = vmatprep.subr.bf16.mxu0 %v10365_v43  ;;  %v9650_v0 = vld [vmem:[#allocation18 + $0x28] sm:$0xff]  }
 0xf55   :  { %8960 = vmatprep.mubr.msk.bf16.mxu1 %vm10366_vm3, %v10365_v43  ;;  %8959 = vmatpush3.bf16.msra.mxu1 %v9645_v50 }
 0xf56   :  { %8970 = vmatprep.subr.bf16.mxu1 %v10365_v43 }
 0xff5   :  { %v3182_v1 = vpop.f32.mrb[96].mxu0 }
 0xff6   :  { %v8884_v2 = vpop.f32.mrb[97].mxu0 }
 0xff7   :  { %v3116_v3 = vpop.f32.mrb[72].mxu1  ;;  %v3185_v4 = vpop.f32.mrb[98].mxu0  ;;  %v9652_v2 = vld [vmem:[#allocation18 + $0x38] sm:$0xff]  }
 0xff8   :  { %v3183_v5 = vadd.f32 %v3182_v1, %v3116_v3  ;;  %v8872_v6 = vpop.f32.mrb[73].mxu1  ;;  %v8885_v7 = vpop.f32.mrb[99].mxu0  ;;  %v9651_v1 = vld [vmem:[#allocation18 + $0x30] sm:$0xff]   ;;  %v9653_v3 = vld [vmem:[#allocation19] sm:$0xff]   ;;  %v9659_v4 = vld [vmem:[#allocation24 + $0x20] sm:$0xff]  }
 0xff9   :  { %v3119_v8 = vpop.f32.mrb[74].mxu1  ;;  %v9663_v6 = vld [vmem:[#allocation24 + $0x30] sm:$0xff]  }
 0xffa   :  { %v8873_v9 = vpop.f32.mrb[75].mxu1 }
0x1005   :  { %v3338_v10 = vpop.f32.mrb[100].mxu0 }
0x1006   :  { %v8908_v11 = vpop.f32.mrb[101].mxu0 }
0x1007   :  { %v3260_v12 = vpop.f32.mrb[76].mxu1  ;;  %v3341_v13 = vpop.f32.mrb[102].mxu0 }
0x1008   :  { %v3266_v14 = vadd.f32 %v3260_v12, %v3183_v5  ;;  %v8896_v15 = vpop.f32.mrb[77].mxu1  ;;  %v8909_v16 = vpop.f32.mrb[103].mxu0  ;;  %v9661_v5 = vld [vmem:[#allocation24 + $0x28] sm:$0xff]  }
0x1009   :  { %v3263_v17 = vpop.f32.mrb[78].mxu1 }
0x100a   :  { %v8897_v18 = vpop.f32.mrb[79].mxu1  ;;  %v3344_v19 = vadd.f32 %v3338_v10, %v3266_v14 }
0x1015   :  { %v3494_v20 = vpop.f32.mrb[104].mxu0 }
0x1016   :  { %v8932_v21 = vpop.f32.mrb[105].mxu0 }
0x1017   :  { %v3416_v22 = vpop.f32.mrb[80].mxu1  ;;  %v3497_v23 = vpop.f32.mrb[106].mxu0 }
0x1018   :  { %v3422_v24 = vadd.f32 %v3416_v22, %v3344_v19  ;;  %v8920_v25 = vpop.f32.mrb[81].mxu1  ;;  %v8933_v26 = vpop.f32.mrb[107].mxu0 }
0x1019   :  { %v3419_v27 = vpop.f32.mrb[82].mxu1 }
0x101a   :  { %v8921_v28 = vpop.f32.mrb[83].mxu1  ;;  %v3500_v29 = vadd.f32 %v3494_v20, %v3422_v24 }
0x1025   :  { %v3650_v30 = vpop.f32.mrb[108].mxu0 }
0x1026   :  { %v8956_v31 = vpop.f32.mrb[109].mxu0 }
0x1027   :  { %v3572_v32 = vpop.f32.mrb[84].mxu1  ;;  %v3653_v33 = vpop.f32.mrb[110].mxu0 }
0x1028   :  { %v3578_v34 = vadd.f32 %v3572_v32, %v3500_v29  ;;  %v8944_v35 = vpop.f32.mrb[85].mxu1  ;;  %v8957_v36 = vpop.f32.mrb[111].mxu0 }
0x1029   :  { %v3575_v38 = vpop.f32.mrb[86].mxu1 }
0x102a   :  { %v3656_v39 = vadd.f32 %v3650_v30, %v3578_v34  ;;  %v8945_v40 = vpop.f32.mrb[87].mxu1 }
0x102c   :  { %v3658_v41 = vadd.f32 %v3657_v37, %v3656_v39 }
0x102e   :  { %v3660_v42 = vmul.f32 0.5, %v3658_v41 }
0x1030   :  { %v3661_v44 = vmul.f32 1.442695, %v3660_v42 }
0x1032   :  { %9826 = vpow2.f32 %v3661_v44 }
0x103c   :  { %v9827_v53 = vpop.eup %9826 }
0x103d   :  { %v3670_v54 = vrot.slane %v9827_v53, %v3669_v52 }
0x103f   :  { %v3677_v55 = vrot.slane %v3670_v54, %v3669_v52 }
0x1041   :  { %3678 = vrot.lane.b32.xlu0 %v3677_v55, %s10368_s3 }
0x10b3   :  { %v3679_v57 = vpop.permute.xlu0 %3678 }
0x10b4   :  { %v3681_v58 = vmul.f32 %v3679_v57, %v3659_v56 }
0x10b6   :  { %v3682_v59 = vadd.f32 %v3681_v58, %v3658_v41  ;;  %v9654_v58 = vld [vmem:[#allocation19 + $0x8] sm:$0xff]  }
0x10b8   :  { %v3685_v62 = vpack.c.bf16 %v3682_v59, %v3682_v59  ;;  %v9655_v59 = vld [vmem:[#allocation19 + $0x10] sm:$0xff]  }
0x10ba   :  { %8961 = vmatmul.mubr.msk.bf16.vlgmr.msra.gmra.mrb[88].mxu1 %vm2461_vm13, %v3685_v62  ;;  %8967 = vmatmul.mubr.msk.bf16.vlgmr.msra.gmra.mrb[112].mxu0 %vm2461_vm13, %v3685_v62 }
0x10bb   :  { %8971 = vmatpush3.bf16.msra.mxu1 %v9647_v60  ;;  %8977 = vmatpush3.bf16.msra.mxu0 %v9648_v61  ;;  %v9660_v60 = vld [vmem:[#allocation24] sm:$0xff]   ;;  %v9662_v61 = vld [vmem:[#allocation24 + $0x8] sm:$0xff]  }
0x10bc   :  { %8972 = vmatprep.mubr.msk.bf16.mxu1 %vm10366_vm3, %v10365_v43  ;;  %8978 = vmatprep.mubr.msk.bf16.mxu0 %vm10366_vm3, %v10365_v43 }
0x10bd   :  { %8982 = vmatprep.subr.bf16.mxu1 %v10365_v43  ;;  %8988 = vmatprep.subr.bf16.mxu0 %v10365_v43 }
0x10c2   :  { %8973 = vmatmul.mubr.msk.bf16.vlgmr.msra.gmra.mrb[92].mxu1 %vm2461_vm13, %v3685_v62  ;;  %8979 = vmatmul.mubr.msk.bf16.vlgmr.msra.gmra.mrb[116].mxu0 %vm2461_vm13, %v3685_v62 }
0x10c3   :  { %8983 = vmatpush3.bf16.msra.mxu1 %v9649_v63  ;;  %8989 = vmatpush3.bf16.msra.mxu0 %v9650_v0  ;;  %v9657_v63 = vld [vmem:[#allocation19 + $0x20] sm:$0xff]   ;;  %v9664_v0 = vld [vmem:[#allocation24 + $0x10] sm:$0xff]  }
0x10c4   :  { %8984 = vmatprep.mubr.msk.bf16.mxu1 %vm10366_vm3, %v10365_v43  ;;  %8990 = vmatprep.mubr.msk.bf16.mxu0 %vm10366_vm3, %v10365_v43 }
0x10c5   :  { %8994 = vmatprep.subr.bf16.mxu1 %v10365_v43  ;;  %9000 = vmatprep.subr.bf16.mxu0 %v10365_v43 }
0x10ca   :  { %8985 = vmatmul.mubr.msk.bf16.vlgmr.msra.gmra.mrb[96].mxu1 %vm2461_vm13, %v3685_v62  ;;  %8991 = vmatmul.mubr.msk.bf16.vlgmr.msra.gmra.mrb[120].mxu0 %vm2461_vm13, %v3685_v62 }
0x10cb   :  { %8995 = vmatpush3.bf16.msra.mxu1 %v9651_v1  ;;  %9001 = vmatpush3.bf16.msra.mxu0 %v9652_v2  ;;  %v9658_v1 = vld [vmem:[#allocation19 + $0x28] sm:$0xff]   ;;  %v9665_v2 = vld [vmem:[#allocation24 + $0x38] sm:$0xff]  }
0x10cc   :  { %8996 = vmatprep.mubr.msk.bf16.mxu1 %vm10366_vm3, %v10365_v43  ;;  %9002 = vmatprep.mubr.msk.bf16.mxu0 %vm10366_vm3, %v10365_v43 }
0x10cd   :  { %9020 = vmatprep.subr.bf16.mxu0 %v10365_v43 }
0x10d2   :  { %8997 = vmatmul.mubr.msk.bf16.vlgmr.msra.gmra.mrb[100].mxu1 %vm2461_vm13, %v3685_v62  ;;  %9003 = vmatmul.mubr.msk.bf16.vlgmr.msra.gmra.mrb[124].mxu0 %vm2461_vm13, %v3685_v62  ;;  %v9656_v62 = vld [vmem:[#allocation19 + $0x18] sm:$0xff]  }
0x10d3   :  { %9028 = vmatprep.mubr.msk.bf16.mxu0 %vm10366_vm3, %v10365_v43  ;;  %9008 = vmatprep.mubr.msk.bf16.mxu1 %vm4156_vm7, %v9653_v3  ;;  %v9666_v3 = vld [vmem:[#allocation24 + $0x18] sm:$0xff]  }
0x10d4   :  { %9021 = vmatpush3.bf16.msra.mxu0 %v9659_v4 }
0x10d5   :  { %9022 = vmatprep.subr.bf16.mxu0 %v10365_v43 }
0x10d8   :  { %9023 = vmatpush3.bf16.msra.mxu0 %v9661_v5 }
0x10d9   :  { %9024 = vmatprep.subr.bf16.mxu0 %v10365_v43 }
0x10dc   :  { %9025 = vmatpush3.bf16.msra.mxu0 %v9663_v6 }
0x10dd   :  { %9026 = vmatprep.subr.bf16.mxu0 %v10365_v43 }
0x10e0   :  { %9027 = vmatpush3.bf16.msra.mxu0 %v9665_v2 }
0x10e1   :  { %9044 = vmatprep.subr.bf16.mxu0 %v10365_v43 }
0x118d   :  { %v3729_v7 = vpop.f32.mrb[88].mxu1  ;;  %v3778_v8 = vpop.f32.mrb[112].mxu0 }
0x118e   :  { %v4079_v9 = vrot.slane %v3778_v8, 7  ;;  %v8962_v10 = vpop.f32.mrb[89].mxu1  ;;  %v8968_v11 = vpop.f32.mrb[113].mxu0 }
0x118f   :  { %v3732_v12 = vpop.f32.mrb[90].mxu1  ;;  %v3781_v13 = vpop.f32.mrb[114].mxu0  ;;  %v9668_v10 = vld [vmem:[#allocation24 + $0x60] sm:$0xff]  }
0x1190   :  { %v4100_v14 = vsel %vm4099_vm9, %v3729_v7, %v4079_v9  ;;  %v8963_v15 = vpop.f32.mrb[91].mxu1  ;;  %v8969_v16 = vpop.f32.mrb[115].mxu0  ;;  %v9667_v7 = vld [vmem:[#allocation24 + $0x40] sm:$0xff]   ;;  %v9669_v12 = vld [vmem:[#allocation24 + $0x48] sm:$0xff]  }
0x1191   :  { %v9670_v13 = vld [vmem:[#allocation24 + $0x68] sm:$0xff]   ;;  %v9671_v16 = vld [vmem:[#allocation24 + $0x50] sm:$0xff]  }
0x1195   :  { %v3827_v17 = vpop.f32.mrb[92].mxu1  ;;  %v3876_v18 = vpop.f32.mrb[116].mxu0 }
0x1196   :  { %v4082_v19 = vrot.slane %v3827_v17, 6  ;;  %v4085_v20 = vrot.slane %v3876_v18, 5  ;;  %v8974_v21 = vpop.f32.mrb[93].mxu1  ;;  %v8980_v22 = vpop.f32.mrb[117].mxu0 }
0x1197   :  { %v3830_v23 = vpop.f32.mrb[94].mxu1  ;;  %v3879_v24 = vpop.f32.mrb[118].mxu0  ;;  %v9673_v22 = vld [vmem:[#allocation24 + $0x58] sm:$0xff]  }
0x1198   :  { %v4102_v25 = vsel %vm4101_vm10, %v4100_v14, %v4082_v19  ;;  %v8975_v26 = vpop.f32.mrb[95].mxu1  ;;  %v8981_v27 = vpop.f32.mrb[119].mxu0  ;;  %v9672_v19 = vld [vmem:[#allocation24 + $0x70] sm:$0xff]   ;;  %v9674_v23 = vld [vmem:[#allocation24 + $0x78] sm:$0xff]  }
0x1199   :  { %v4103_v28 = vsel %vm668_vm1, %v4102_v25, %v4085_v20  ;;  %vm4109_vm1 = vcmask 1046528   ;;  %v9675_v26 = vld [vmem:[#allocation24 + $0x80] sm:$0xff]  }
0x119d   :  { %v3925_v29 = vpop.f32.mrb[96].mxu1  ;;  %v3974_v30 = vpop.f32.mrb[120].mxu0 }
0x119e   :  { %v4088_v31 = vrot.slane %v3925_v29, 4  ;;  %v4091_v32 = vrot.slane %v3974_v30, 3  ;;  %v8986_v33 = vpop.f32.mrb[97].mxu1  ;;  %v8992_v34 = vpop.f32.mrb[121].mxu0 }
0x119f   :  { %v3928_v35 = vpop.f32.mrb[98].mxu1  ;;  %v3977_v36 = vpop.f32.mrb[122].mxu0  ;;  %v9678_v33 = vld [vmem:[#allocation24 + $0xa8] sm:$0xff]   ;;  %v9679_v34 = vld [vmem:[#allocation24 + $0x90] sm:$0xff]  }
0x11a0   :  { %v4104_v37 = vsel %vm1907_vm12, %v4103_v28, %v4088_v31  ;;  %v8987_v38 = vpop.f32.mrb[99].mxu1  ;;  %v8993_v39 = vpop.f32.mrb[123].mxu0  ;;  %v9676_v28 = vld [vmem:[#allocation24 + $0xa0] sm:$0xff]   ;;  %v9680_v35 = vld [vmem:[#allocation24 + $0xb0] sm:$0xff]   ;;  %v9681_v36 = vld [vmem:[#allocation24 + $0x98] sm:$0xff]  }
0x11a1   :  { %v4106_v40 = vsel %vm4105_vm11, %v4104_v37, %v4091_v32  ;;  %v9677_v32 = vld [vmem:[#allocation24 + $0x88] sm:$0xff]   ;;  %v9682_v37 = vld [vmem:[#allocation24 + $0xb8] sm:$0xff]  }
0x11a5   :  { %v4023_v41 = vpop.f32.mrb[100].mxu1  ;;  %v4072_v42 = vpop.f32.mrb[124].mxu0 }
0x11a6   :  { %v4094_v44 = vrot.slane %v4023_v41, 2  ;;  %v4097_v45 = vrot.slane %v4072_v42, 1  ;;  %v8998_v46 = vpop.f32.mrb[101].mxu1  ;;  %v9004_v47 = vpop.f32.mrb[125].mxu0 }
0x11a7   :  { %v4026_v49 = vpop.f32.mrb[102].mxu1  ;;  %v4075_v50 = vpop.f32.mrb[126].mxu0 }
0x11a8   :  { %v4108_v51 = vsel %vm4107_vm14, %v4106_v40, %v4094_v44  ;;  %v8999_v52 = vpop.f32.mrb[103].mxu1  ;;  %v9005_v53 = vpop.f32.mrb[127].mxu0 }
0x11a9   :  { %v4110_v54 = vsel %vm4109_vm1, %v4108_v51, %v4097_v45 }
0x11aa   :  { %v4112_v55 = vadd.f32 %v4111_v48, %v4110_v54 }
0x11ac   :  { %v4125_v56 = vpack.c.bf16 %v4112_v55, %v4112_v55 }
0x11ae   :  { %9483 = vmatprep.subr.msk.bf16.mxu1 %vm1907_vm12, %v4125_v56  ;;  %v4176_v57 = vsel %vm1907_vm12, %v4125_v56, 0 }
0x11af   :  { %9007 = vmatpush3.bf16.msra.mxu1 %v4176_v57 }
0x11b0   :  { %9032 = vmatprep.subr.bf16.mxu1 %v10365_v43 }
0x11b2   :  { %9009 = vmatmul.mubr.msk.bf16.vlgmr.msra.gmra.mrb[104].mxu1 %vm4156_vm7, %v9654_v58 }
0x11b3   :  { %9012 = vmatprep.mubr.msk.bf16.mxu1 %vm4156_vm7, %v9655_v59  ;;  %9033 = vmatpush3.bf16.msra.mxu1 %v9660_v60 }
0x11b4   :  { %9034 = vmatprep.subr.bf16.mxu1 %v10365_v43 }
0x11b7   :  { %9035 = vmatpush3.bf16.msra.mxu1 %v9662_v61 }
0x11b8   :  { %9036 = vmatprep.subr.bf16.mxu1 %v10365_v43 }
0x11ba   :  { %9013 = vmatmul.mubr.msk.bf16.gmra.mrb[108].mxu1 %vm4156_vm7, %v9656_v62 }
0x11bb   :  { %9016 = vmatprep.mubr.msk.bf16.mxu1 %vm4156_vm7, %v9657_v63  ;;  %9037 = vmatpush3.bf16.msra.mxu1 %v9664_v0 }
0x11bc   :  { %9038 = vmatprep.subr.bf16.mxu1 %v10365_v43 }
0x11bf   :  { %9039 = vmatpush3.bf16.msra.mxu1 %v9666_v3  ;;  %v7982_v3 = vld [vmem:[%s11314_s22] ss:$0 sm:$0xff] }
0x11c0   :  { %9056 = vmatprep.subr.bf16.mxu1 %v10365_v43 }
0x11c2   :  { %9017 = vmatmul.mubr.msk.bf16.gmra.mrb[112].mxu1 %vm4156_vm7, %v9658_v1 }
0x11c3   :  { %9040 = vmatprep.mubr.msk.bf16.mxu1 %vm10366_vm3, %v10365_v43 }
0x1285   :  { %v9010_v4 = vpop.f32.mrb[104].mxu1 }
0x1286   :  { %v4212_v5 = vpop.f32.mrb[105].mxu1 }
0x1287   :  { %v9011_v6 = vpop.f32.mrb[106].mxu1 }
0x1288   :  { %v4277_v8 = vpack.c.bf16 %v9011_v6, %v9010_v4  ;;  %v4215_v9 = vpop.f32.mrb[107].mxu1 }
0x1289   :  { %v4267_v11 = vpack.c.bf16 %v4215_v9, %v4212_v5 }
0x128a   :  { %9029 = vmatmul.mubr.msk.bf16.vlgmr.msra.gmra.mrb[128].mxu0 %vm2949_vm4, %v4277_v8 }
0x128b   :  { %9045 = vmatpush3.bf16.msra.mxu0 %v9667_v7  ;;  %9041 = vmatmul.mubr.msk.bf16.vlgmr.msra.gmra.mrb[116].mxu1 %vm2949_vm4, %v4267_v11 }
0x128c   :  { %9057 = vmatpush3.bf16.msra.mxu1 %v9668_v10  ;;  %9046 = vmatprep.subr.bf16.mxu0 %v10365_v43 }
0x128d   :  { %9058 = vmatprep.subr.bf16.mxu1 %v10365_v43  ;;  %v9014_v14 = vpop.f32.mrb[108].mxu1  ;;  %9052 = vmatprep.mubr.msk.bf16.mxu0 %vm10366_vm3, %v10365_v43 }
0x128e   :  { %v4228_v15 = vpop.f32.mrb[109].mxu1  ;;  %9064 = vmatprep.mubr.msk.bf16.mxu1 %vm10366_vm3, %v10365_v43 }
0x128f   :  { %9047 = vmatpush3.bf16.msra.mxu0 %v9669_v12  ;;  %v9015_v17 = vpop.f32.mrb[110].mxu1 }
0x1290   :  { %9059 = vmatpush3.bf16.msra.mxu1 %v9670_v13  ;;  %9048 = vmatprep.subr.bf16.mxu0 %v10365_v43  ;;  %v4503_v18 = vpack.c.bf16 %v9015_v17, %v9014_v14  ;;  %v4231_v20 = vpop.f32.mrb[111].mxu1 }
0x1291   :  { %9060 = vmatprep.subr.bf16.mxu1 %v10365_v43  ;;  %v4423_v21 = vpack.c.bf16 %v4231_v20, %v4228_v15 }
0x1293   :  { %9049 = vmatpush3.bf16.msra.mxu0 %v9671_v16 }
0x1294   :  { %9061 = vmatpush3.bf16.msra.mxu1 %v9672_v19  ;;  %9050 = vmatprep.subr.bf16.mxu0 %v10365_v43 }
0x1295   :  { %9062 = vmatprep.subr.bf16.mxu1 %v10365_v43  ;;  %v9018_v24 = vpop.f32.mrb[112].mxu1 }
0x1296   :  { %v4244_v25 = vpop.f32.mrb[113].mxu1 }
0x1297   :  { %9051 = vmatpush3.bf16.msra.mxu0 %v9673_v22  ;;  %v9019_v27 = vpop.f32.mrb[114].mxu1 }
0x1298   :  { %9063 = vmatpush3.bf16.msra.mxu1 %v9674_v23  ;;  %9068 = vmatprep.subr.bf16.mxu0 %v10365_v43  ;;  %v4663_v29 = vpack.c.bf16 %v9019_v27, %v9018_v24  ;;  %v4247_v30 = vpop.f32.mrb[115].mxu1  ;;  %v9683_v24 = vld [vmem:[%s11315_s0] sm:$0xff]   ;;  %v9693_v27 = vld [vmem:[%s11316_s23 + $0x30] sm:$0xff]  }
0x1299   :  { %9080 = vmatprep.subr.bf16.mxu1 %v10365_v43  ;;  %v4583_v31 = vpack.c.bf16 %v4247_v30, %v4244_v25  ;;  %v9689_v25 = vld [vmem:[%s11316_s23 + $0x20] sm:$0xff]  }
0x129a   :  { %9053 = vmatmul.mubr.msk.bf16.vlgmr.msra.gmra.mrb[132].mxu0 %vm2949_vm4, %v4423_v21 }
0x129b   :  { %9065 = vmatmul.mubr.msk.bf16.vlgmr.msra.gmra.mrb[120].mxu1 %vm2949_vm4, %v4503_v18  ;;  %9069 = vmatpush3.bf16.msra.mxu0 %v9675_v26  ;;  %v9691_v26 = vld [vmem:[%s11316_s23 + $0x28] sm:$0xff]  }
0x129c   :  { %9081 = vmatpush3.bf16.msra.mxu1 %v9676_v28  ;;  %9070 = vmatprep.subr.bf16.mxu0 %v10365_v43 }
0x129d   :  { %9082 = vmatprep.subr.bf16.mxu1 %v10365_v43  ;;  %9076 = vmatprep.mubr.msk.bf16.mxu0 %vm10366_vm3, %v10365_v43 }
0x129e   :  { %9088 = vmatprep.mubr.msk.bf16.mxu1 %vm10366_vm3, %v10365_v43 }
0x129f   :  { %9071 = vmatpush3.bf16.msra.mxu0 %v9677_v32 }
0x12a0   :  { %9083 = vmatpush3.bf16.msra.mxu1 %v9678_v33  ;;  %9072 = vmatprep.subr.bf16.mxu0 %v10365_v43 }
0x12a1   :  { %9084 = vmatprep.subr.bf16.mxu1 %v10365_v43 }
0x12a3   :  { %9073 = vmatpush3.bf16.msra.mxu0 %v9679_v34 }
0x12a4   :  { %9085 = vmatpush3.bf16.msra.mxu1 %v9680_v35  ;;  %9074 = vmatprep.subr.bf16.mxu0 %v10365_v43 }
0x12a5   :  { %9086 = vmatprep.subr.bf16.mxu1 %v10365_v43 }
0x12a7   :  { %9075 = vmatpush3.bf16.msra.mxu0 %v9681_v36 }
0x12a8   :  { %9087 = vmatpush3.bf16.msra.mxu1 %v9682_v37 }
0x12a9   :  { %9106 = vmatprep.subr.bf16.mxu1 %v10365_v43 }
0x12aa   :  { %9077 = vmatmul.mubr.msk.bf16.vlgmr.msra.gmra.mrb[136].mxu0 %vm2949_vm4, %v4583_v31 }
0x12ab   :  { %9089 = vmatmul.mubr.msk.bf16.vlgmr.msra.gmra.mrb[124].mxu1 %vm2949_vm4, %v4663_v29  ;;  %9094 = vmatprep.mubr.msk.bf16.mxu0 %vm2461_vm13, %v9683_v24  ;;  %v9707_v24 = vld [vmem:[%s11316_s23 + $0x88] sm:$0xff]  }
0x12ac   :  { %9114 = vmatprep.mubr.msk.bf16.mxu1 %vm10366_vm3, %v10365_v43  ;;  %9107 = vmatpush3.bf16.msra.mxu1 %v9689_v25  ;;  %v9708_v25 = vld [vmem:[%s11316_s23 + $0xa8] sm:$0xff]  }
0x12ad   :  { %9108 = vmatprep.subr.bf16.mxu1 %v10365_v43 }
0x12b0   :  { %9109 = vmatpush3.bf16.msra.mxu1 %v9691_v26  ;;  %v9709_v26 = vld [vmem:[%s11316_s23 + $0x90] sm:$0xff]  }
0x12b1   :  { %9110 = vmatprep.subr.bf16.mxu1 %v10365_v43 }
0x12b4   :  { %9111 = vmatpush3.bf16.msra.mxu1 %v9693_v27  ;;  %v9710_v27 = vld [vmem:[%s11316_s23 + $0xb0] sm:$0xff]  }
0x12b5   :  { %9112 = vmatprep.subr.bf16.mxu1 %v10365_v43 }
0x135d   :  { %v4339_v38 = vpop.f32.mrb[128].mxu0 }
0x135e   :  { %v9030_v39 = vpop.f32.mrb[129].mxu0  ;;  %v4407_v40 = vpop.f32.mrb[116].mxu1 }
0x135f   :  { %v4408_v41 = vadd.f32 %v4407_v40, %v4339_v38  ;;  %v4342_v42 = vpop.f32.mrb[130].mxu0  ;;  %v9042_v44 = vpop.f32.mrb[117].mxu1 }
0x1360   :  { %v9031_v45 = vpop.f32.mrb[131].mxu0  ;;  %v4410_v46 = vpop.f32.mrb[118].mxu1 }
0x1361   :  { %v4411_v47 = vadd.f32 %v4410_v46, %v4342_v42  ;;  %v9043_v48 = vpop.f32.mrb[119].mxu1 }
0x136d   :  { %v4485_v49 = vpop.f32.mrb[132].mxu0 }
0x136e   :  { %v4492_v50 = vadd.f32 %v4485_v49, %v4408_v41  ;;  %v9054_v51 = vpop.f32.mrb[133].mxu0  ;;  %v4565_v52 = vpop.f32.mrb[120].mxu1 }
0x136f   :  { %v4488_v53 = vpop.f32.mrb[134].mxu0  ;;  %v9066_v54 = vpop.f32.mrb[121].mxu1  ;;  %v9685_v51 = vld [vmem:[%s11315_s0 + $0x10] sm:$0xff]  }
0x1370   :  { %v4572_v55 = vadd.f32 %v4565_v52, %v4492_v50  ;;  %v4493_v56 = vadd.f32 %v4488_v53, %v4411_v47  ;;  %v9055_v57 = vpop.f32.mrb[135].mxu0  ;;  %v4568_v58 = vpop.f32.mrb[122].mxu1  ;;  %v9684_v50 = vld [vmem:[%s11315_s0 + $0x8] sm:$0xff]   ;;  %v9690_v52 = vld [vmem:[%s11316_s23] sm:$0xff]   ;;  %v9686_v54 = vld [vmem:[%s11315_s0 + $0x18] sm:$0xff]  }
0x1371   :  { %v9067_v59 = vpop.f32.mrb[123].mxu1  ;;  %v9692_v53 = vld [vmem:[%s11316_s23 + $0x8] sm:$0xff]  }
0x1372   :  { %v4573_v60 = vadd.f32 %v4568_v58, %v4493_v56  ;;  %v9694_v56 = vld [vmem:[%s11316_s23 + $0x10] sm:$0xff]   ;;  %v9688_v57 = vld [vmem:[%s11315_s0 + $0x28] sm:$0xff]   ;;  %v9695_v58 = vld [vmem:[%s11316_s23 + $0x38] sm:$0xff]  }
0x1373   :  { %v9696_v59 = vld [vmem:[%s11316_s23 + $0x18] sm:$0xff]   ;;  %9113 = vmatpush3.bf16.msra.mxu1 %v9695_v58 }
0x1374   :  { %9130 = vmatprep.subr.bf16.mxu1 %v10365_v43 }
0x137d   :  { %v4645_v61 = vpop.f32.mrb[136].mxu0 }
0x137e   :  { %v4652_v62 = vadd.f32 %v4645_v61, %v4572_v55  ;;  %v9078_v63 = vpop.f32.mrb[137].mxu0  ;;  %v4725_v0 = vpop.f32.mrb[124].mxu1  ;;  %v9687_v55 = vld [vmem:[%s11315_s0 + $0x20] sm:$0xff]  }
0x137f   :  { %v4648_v1 = vpop.f32.mrb[138].mxu0  ;;  %v9090_v2 = vpop.f32.mrb[125].mxu1  ;;  %v9697_v63 = vld [vmem:[%s11316_s23 + $0x40] sm:$0xff]  }
0x1380   :  { %v4732_v4 = vadd.f32 %v4725_v0, %v4652_v62  ;;  %v4653_v5 = vadd.f32 %v4648_v1, %v4573_v60  ;;  %v9079_v6 = vpop.f32.mrb[139].mxu0  ;;  %v4728_v7 = vpop.f32.mrb[126].mxu1  ;;  %v9698_v2 = vld [vmem:[%s11316_s23 + $0x60] sm:$0xff]  }
0x1381   :  { %v9091_v8 = vpop.f32.mrb[127].mxu1 }
0x1382   :  { %v4733_v9 = vadd.f32 %v4728_v7, %v4653_v5  ;;  %v4741_v10 = vadd.f32 %v7982_v3, %v4732_v4  ;;  %v9699_v4 = vld [vmem:[%s11316_s23 + $0x48] sm:$0xff]   ;;  %v9701_v8 = vld [vmem:[%s11316_s23 + $0x50] sm:$0xff]  }
0x1383   :  { %v9700_v5 = vld [vmem:[%s11316_s23 + $0x68] sm:$0xff]  }
0x1384   :  { %v4743_v11 = vsel %vm2949_vm4, %v4741_v10, 0.0  ;;  %v4742_v12 = vadd.f32 %v7982_v3, %v4733_v9 }
0x1385   :  { %4744 = vadd.xlane.f32.xlu1 %v4743_v11  ;;  %v9702_v11 = vld [vmem:[%s11316_s23 + $0x70] sm:$0xff]  }
0x1386   :  { %v4746_v13 = vsel %vm2949_vm4, %v4742_v12, 0.0 }
0x1389   :  { %4747 = vadd.xlane.f32.xlu1 %v4746_v13 }
0x1412   :  { %v4745_v14 = vpop.xlane.xlu1 %4744 }
0x1413   :  { %v4749_v15 = vmul.f32 0.015625, %v4745_v14  ;;  %v9703_v14 = vld [vmem:[%s11316_s23 + $0x58] sm:$0xff]  }
0x1415   :  { %v4751_v16 = vsub.f32 %v4741_v10, %v4749_v15  ;;  %v9704_v15 = vld [vmem:[%s11316_s23 + $0x78] sm:$0xff]  }
0x1416   :  { %v4748_v17 = vpop.xlane.xlu1 %4747 }
0x1417   :  { %v4750_v18 = vmul.f32 0.015625, %v4748_v17  ;;  %v4753_v19 = vmul.f32 %v4751_v16, %v4751_v16 }
0x1419   :  { %v4752_v20 = vsub.f32 %v4742_v12, %v4750_v18  ;;  %v4755_v21 = vsel %vm2949_vm4, %v4753_v19, 0.0  ;;  %v9705_v18 = vld [vmem:[%s11316_s23 + $0x80] sm:$0xff]  }
0x141a   :  { %4756 = vadd.xlane.f32.xlu1 %v4755_v21 }
0x141b   :  { %v4754_v22 = vmul.f32 %v4752_v20, %v4752_v20 }
0x141d   :  { %v4758_v23 = vsel %vm2949_vm4, %v4754_v22, 0.0 }
0x141e   :  { %4759 = vadd.xlane.f32.xlu1 %v4758_v23 }
0x14a7   :  { %v4757_v28 = vpop.xlane.xlu1 %4756 }
0x14a8   :  { %v4761_v29 = vmul.f32 0.015625, %v4757_v28  ;;  %v9711_v28 = vld [vmem:[%s11316_s23 + $0x98] sm:$0xff]  }
0x14aa   :  { %v4763_v30 = vadd.f32 1e-05, %v4761_v29  ;;  %v9712_v29 = vld [vmem:[%s11316_s23 + $0xb8] sm:$0xff]  }
0x14ab   :  { %v4760_v31 = vpop.xlane.xlu1 %4759 }
0x14ac   :  { %9828 = vrsqrt.f32 %v4763_v30  ;;  %v4762_v32 = vmul.f32 0.015625, %v4760_v31 }
0x14ae   :  { %v4764_v33 = vadd.f32 1e-05, %v4762_v32 }
0x14b0   :  { %9830 = vrsqrt.f32 %v4764_v33 }
0x14b6   :  { %v9829_v34 = vpop.eup %9828 }
0x14b7   :  { %v4767_v35 = vmul.f32 %v9829_v34, %v4751_v16 }
0x14b9   :  { %v4771_v36 = vmin.f32 %v4767_v35, 0.0  ;;  %vm4769_vm15 = vcmp.gt.f32.partialorder %v4767_v35, 0.0 }
0x14ba   :  { %v9831_v37 = vpop.eup %9830 }
0x14bb   :  { %v4768_v38 = vmul.f32 %v9831_v37, %v4752_v20  ;;  %v4773_v39 = vmul.f32 1.442695, %v4771_v36  ;;  %v9706_v20 = vld [vmem:[%s11316_s23 + $0xa0] sm:$0xff]  }
0x14bd   :  { %v4772_v40 = vmin.f32 %v4768_v38, 0.0  ;;  %9832 = vpow2.f32 %v4773_v39  ;;  %vm4770_vm5 = vcmp.gt.f32.partialorder %v4768_v38, 0.0 }
0x14bf   :  { %v4775_v41 = vmul.f32 1.442695, %v4772_v40 }
0x14c1   :  { %9834 = vpow2.f32 %v4775_v41 }
0x14c7   :  { %v9833_v42 = vpop.eup %9832 }
0x14c8   :  { %v7983_v44 = vadd.f32 -1.0, %v9833_v42 }
0x14ca   :  { %v4779_v47 = vsel %vm4769_vm15, %v4767_v35, %v7983_v44 }
0x14cb   :  { %v9835_v45 = vpop.eup %9834 }
0x14cc   :  { %v7984_v46 = vadd.f32 -1.0, %v9835_v45 }
0x14ce   :  { %v4780_v48 = vsel %vm4770_vm5, %v4768_v38, %v7984_v46 }
0x14cf   :  { %v4793_v49 = vpack.c.bf16 %v4780_v48, %v4779_v47 }
0x14d1   :  { %9092 = vmatprep.subr.bf16.mxu0 %v4793_v49 }
0x14d2   :  { %9093 = vmatpush3.bf16.msra.mxu0 %v4793_v49 }
0x14d3   :  { %9118 = vmatprep.subr.bf16.mxu0 %v10365_v43 }
0x14d5   :  { %9095 = vmatmul.mubr.msk.bf16.vlgmr.msra.gmra.mrb[140].mxu0 %vm2461_vm13, %v9684_v50 }
0x14d6   :  { %9098 = vmatprep.mubr.msk.bf16.mxu0 %vm2461_vm13, %v9685_v51  ;;  %9119 = vmatpush3.bf16.msra.mxu0 %v9690_v52 }
0x14d7   :  { %9120 = vmatprep.subr.bf16.mxu0 %v10365_v43 }
0x14da   :  { %9121 = vmatpush3.bf16.msra.mxu0 %v9692_v53 }
0x14db   :  { %9122 = vmatprep.subr.bf16.mxu0 %v10365_v43 }
0x14dd   :  { %9099 = vmatmul.mubr.msk.bf16.gmra.mrb[144].mxu0 %vm2461_vm13, %v9686_v54 }
0x14de   :  { %9102 = vmatprep.mubr.msk.bf16.mxu0 %vm2461_vm13, %v9687_v55  ;;  %9123 = vmatpush3.bf16.msra.mxu0 %v9694_v56 }
0x14df   :  { %9124 = vmatprep.subr.bf16.mxu0 %v10365_v43 }
0x14e2   :  { %9125 = vmatpush3.bf16.msra.mxu0 %v9696_v59  ;;  %v8067_v59 = vld [vmem:[%s11317_s12] ss:$0 sm:$0xff] }
0x14e3   :  { %9142 = vmatprep.subr.bf16.mxu0 %v10365_v43 }
0x14e5   :  { %9103 = vmatmul.mubr.msk.bf16.gmra.mrb[148].mxu0 %vm2461_vm13, %v9688_v57 }
0x14e6   :  { %9126 = vmatprep.mubr.msk.bf16.mxu0 %vm10366_vm3, %v10365_v43 }
0x15a8   :  { %v9096_v60 = vpop.f32.mrb[140].mxu0 }
0x15a9   :  { %v4876_v61 = vpop.f32.mrb[141].mxu0 }
0x15aa   :  { %v9097_v62 = vpop.f32.mrb[142].mxu0 }
0x15ab   :  { %v4941_v0 = vpack.c.bf16 %v9097_v62, %v9096_v60  ;;  %v4879_v1 = vpop.f32.mrb[143].mxu0 }
0x15ac   :  { %v4931_v3 = vpack.c.bf16 %v4879_v1, %v4876_v61 }
0x15ad   :  { %9115 = vmatmul.mubr.msk.bf16.vlgmr.msra.gmra.mrb[128].mxu1 %vm2949_vm4, %v4941_v0 }
0x15ae   :  { %9131 = vmatpush3.bf16.msra.mxu1 %v9697_v63  ;;  %9127 = vmatmul.mubr.msk.bf16.vlgmr.msra.gmra.mrb[152].mxu0 %vm2949_vm4, %v4931_v3 }
0x15af   :  { %9143 = vmatpush3.bf16.msra.mxu0 %v9698_v2  ;;  %9132 = vmatprep.subr.bf16.mxu1 %v10365_v43 }
0x15b0   :  { %9144 = vmatprep.subr.bf16.mxu0 %v10365_v43  ;;  %v9100_v6 = vpop.f32.mrb[144].mxu0  ;;  %9138 = vmatprep.mubr.msk.bf16.mxu1 %vm10366_vm3, %v10365_v43 }
0x15b1   :  { %v4892_v7 = vpop.f32.mrb[145].mxu0  ;;  %9150 = vmatprep.mubr.msk.bf16.mxu0 %vm10366_vm3, %v10365_v43 }
0x15b2   :  { %9133 = vmatpush3.bf16.msra.mxu1 %v9699_v4  ;;  %v9101_v9 = vpop.f32.mrb[146].mxu0 }
0x15b3   :  { %9145 = vmatpush3.bf16.msra.mxu0 %v9700_v5  ;;  %9134 = vmatprep.subr.bf16.mxu1 %v10365_v43  ;;  %v5167_v10 = vpack.c.bf16 %v9101_v9, %v9100_v6  ;;  %v4895_v12 = vpop.f32.mrb[147].mxu0 }
0x15b4   :  { %9146 = vmatprep.subr.bf16.mxu0 %v10365_v43  ;;  %v5087_v13 = vpack.c.bf16 %v4895_v12, %v4892_v7 }
0x15b6   :  { %9135 = vmatpush3.bf16.msra.mxu1 %v9701_v8 }
0x15b7   :  { %9147 = vmatpush3.bf16.msra.mxu0 %v9702_v11  ;;  %9136 = vmatprep.subr.bf16.mxu1 %v10365_v43 }
0x15b8   :  { %9148 = vmatprep.subr.bf16.mxu0 %v10365_v43  ;;  %v9104_v16 = vpop.f32.mrb[148].mxu0 }
0x15b9   :  { %v4908_v17 = vpop.f32.mrb[149].mxu0 }
0x15ba   :  { %9137 = vmatpush3.bf16.msra.mxu1 %v9703_v14  ;;  %v9105_v19 = vpop.f32.mrb[150].mxu0 }
0x15bb   :  { %9149 = vmatpush3.bf16.msra.mxu0 %v9704_v15  ;;  %9154 = vmatprep.subr.bf16.mxu1 %v10365_v43  ;;  %v5327_v21 = vpack.c.bf16 %v9105_v19, %v9104_v16  ;;  %v4911_v22 = vpop.f32.mrb[151].mxu0 }
0x15bc   :  { %9166 = vmatprep.subr.bf16.mxu0 %v10365_v43  ;;  %v5247_v23 = vpack.c.bf16 %v4911_v22, %v4908_v17 }
0x15bd   :  { %9139 = vmatmul.mubr.msk.bf16.vlgmr.msra.gmra.mrb[132].mxu1 %vm2949_vm4, %v5087_v13 }
0x15be   :  { %9151 = vmatmul.mubr.msk.bf16.vlgmr.msra.gmra.mrb[156].mxu0 %vm2949_vm4, %v5167_v10  ;;  %9155 = vmatpush3.bf16.msra.mxu1 %v9705_v18 }
0x15bf   :  { %9167 = vmatpush3.bf16.msra.mxu0 %v9706_v20  ;;  %9156 = vmatprep.subr.bf16.mxu1 %v10365_v43 }
0x15c0   :  { %9168 = vmatprep.subr.bf16.mxu0 %v10365_v43  ;;  %9162 = vmatprep.mubr.msk.bf16.mxu1 %vm10366_vm3, %v10365_v43 }
0x15c1   :  { %9174 = vmatprep.mubr.msk.bf16.mxu0 %vm10366_vm3, %v10365_v43 }
0x15c2   :  { %9157 = vmatpush3.bf16.msra.mxu1 %v9707_v24 }
0x15c3   :  { %9169 = vmatpush3.bf16.msra.mxu0 %v9708_v25  ;;  %9158 = vmatprep.subr.bf16.mxu1 %v10365_v43 }
0x15c4   :  { %9170 = vmatprep.subr.bf16.mxu0 %v10365_v43 }
0x15c6   :  { %9159 = vmatpush3.bf16.msra.mxu1 %v9709_v26 }
0x15c7   :  { %9171 = vmatpush3.bf16.msra.mxu0 %v9710_v27  ;;  %9160 = vmatprep.subr.bf16.mxu1 %v10365_v43 }
0x15c8   :  { %9172 = vmatprep.subr.bf16.mxu0 %v10365_v43 }
0x15ca   :  { %9161 = vmatpush3.bf16.msra.mxu1 %v9711_v28 }
0x15cb   :  { %9173 = vmatpush3.bf16.msra.mxu0 %v9712_v29  ;;  %9178 = vmatprep.subr.bf16.mxu1 %v10365_v43 }
0x15cd   :  { %9163 = vmatmul.mubr.msk.bf16.vlgmr.msra.gmra.mrb[136].mxu1 %vm2949_vm4, %v5247_v23 }
0x15ce   :  { %9175 = vmatmul.mubr.msk.bf16.vlgmr.msra.gmra.mrb[160].mxu0 %vm2949_vm4, %v5327_v21  ;;  %9180 = vmatprep.mubr.msk.bf16.mxu1 %vm10366_vm3, %v10365_v43 }
0x1680   :  { %v5003_v30 = vpop.f32.mrb[128].mxu1 }
0x1681   :  { %v9116_v31 = vpop.f32.mrb[129].mxu1  ;;  %v5071_v32 = vpop.f32.mrb[152].mxu0 }
0x1682   :  { %v5072_v33 = vadd.f32 %v5071_v32, %v5003_v30  ;;  %v5006_v34 = vpop.f32.mrb[130].mxu1  ;;  %v9128_v35 = vpop.f32.mrb[153].mxu0 }
0x1683   :  { %v9117_v36 = vpop.f32.mrb[131].mxu1  ;;  %v5074_v37 = vpop.f32.mrb[154].mxu0 }
0x1684   :  { %v5075_v38 = vadd.f32 %v5074_v37, %v5006_v34  ;;  %v9129_v39 = vpop.f32.mrb[155].mxu0  ;;  %v9713_v37 = vld [vmem:[#allocation21] sm:$0xff]  }
0x1685   :  { %v9715_v39 = vld [vmem:[#allocation21 + $0x10] sm:$0xff]  }
0x1690   :  { %v5149_v40 = vpop.f32.mrb[132].mxu1 }
0x1691   :  { %v5156_v41 = vadd.f32 %v5149_v40, %v5072_v33  ;;  %v9140_v42 = vpop.f32.mrb[133].mxu1  ;;  %v5229_v44 = vpop.f32.mrb[156].mxu0  ;;  %v9716_v40 = vld [vmem:[#allocation21 + $0x18] sm:$0xff]  }
0x1692   :  { %v5152_v45 = vpop.f32.mrb[134].mxu1  ;;  %v9152_v46 = vpop.f32.mrb[157].mxu0  ;;  %v9718_v42 = vld [vmem:[#allocation21 + $0x28] sm:$0xff]  }
0x1693   :  { %v5236_v47 = vadd.f32 %v5229_v44, %v5156_v41  ;;  %v5157_v48 = vadd.f32 %v5152_v45, %v5075_v38  ;;  %v9141_v49 = vpop.f32.mrb[135].mxu1  ;;  %v5232_v50 = vpop.f32.mrb[158].mxu0  ;;  %v9714_v38 = vld [vmem:[#allocation21 + $0x8] sm:$0xff]   ;;  %v9717_v41 = vld [vmem:[#allocation21 + $0x20] sm:$0xff]   ;;  %v9719_v44 = vld [vmem:[#allocation21 + $0x30] sm:$0xff]  }
0x1694   :  { %v9153_v51 = vpop.f32.mrb[159].mxu0  ;;  %v9720_v45 = vld [vmem:[#allocation21 + $0x38] sm:$0xff]   ;;  %v9721_v46 = vld [vmem:[#allocation21 + $0x40] sm:$0xff]   ;;  %v9724_v49 = vld [vmem:[#allocation25] sm:$0xff]  }
0x1695   :  { %v5237_v52 = vadd.f32 %v5232_v50, %v5157_v48  ;;  %v9723_v48 = vld [vmem:[#allocation25 + $0x18] sm:$0xff]  }
0x16a0   :  { %v5309_v53 = vpop.f32.mrb[136].mxu1 }
0x16a1   :  { %v5316_v54 = vadd.f32 %v5309_v53, %v5236_v47  ;;  %v9164_v55 = vpop.f32.mrb[137].mxu1  ;;  %v5389_v56 = vpop.f32.mrb[160].mxu0  ;;  %v9722_v47 = vld [vmem:[#allocation25 + $0x10] sm:$0xff]  }
0x16a2   :  { %v5312_v57 = vpop.f32.mrb[138].mxu1  ;;  %v9176_v58 = vpop.f32.mrb[161].mxu0  ;;  %9216 = vmatprep.subr.bf16.mxu0 %v9722_v47 }
0x16a3   :  { %v5396_v60 = vadd.f32 %v5389_v56, %v5316_v54  ;;  %v5317_v61 = vadd.f32 %v5312_v57, %v5237_v52  ;;  %v9165_v62 = vpop.f32.mrb[139].mxu1  ;;  %v5392_v63 = vpop.f32.mrb[162].mxu0  ;;  %9217 = vmatpush3.bf16.msra.mxu0 %v9722_v47 }
0x16a4   :  { %v9177_v0 = vpop.f32.mrb[163].mxu0  ;;  %9218 = vmatprep.subr.bf16.mxu0 %v9723_v48 }
0x16a5   :  { %v5397_v1 = vadd.f32 %v5392_v63, %v5317_v61  ;;  %v5405_v2 = vadd.f32 %v8067_v59, %v5396_v60  ;;  %v9725_v0 = vld [vmem:[#allocation25 + $0x8] sm:$0xff]  }
0x16a7   :  { %v5407_v3 = vsel %vm488_vm0, %v5405_v2, 0.0  ;;  %v5406_v4 = vadd.f32 %v8067_v59, %v5397_v1  ;;  %9219 = vmatpush3.bf16.msra.mxu0 %v9723_v48  ;;  %v9726_v1 = vld [vmem:[#allocation25 + $0x20] sm:$0xff]  }
0x16a8   :  { %5408 = vadd.xlane.f32.xlu1 %v5407_v3  ;;  %9224 = vmatprep.subr.bf16.mxu0 %v9724_v49 }
0x16a9   :  { %v5410_v5 = vsel %vm488_vm0, %v5406_v4, 0.0 }
0x16ac   :  { %5411 = vadd.xlane.f32.xlu1 %v5410_v5 }
0x1735   :  { %v5409_v6 = vpop.xlane.xlu1 %5408 }
0x1736   :  { %v5413_v7 = vmul.f32 0.03125, %v5409_v6 }
0x1738   :  { %v5415_v8 = vsub.f32 %v5405_v2, %v5413_v7 }
0x1739   :  { %v5412_v9 = vpop.xlane.xlu1 %5411 }
0x173a   :  { %v5414_v10 = vmul.f32 0.03125, %v5412_v9  ;;  %v5417_v11 = vmul.f32 %v5415_v8, %v5415_v8  ;;  %v9728_v9 = vld [vmem:[#allocation25 + $0x30] sm:$0xff]  }
0x173c   :  { %v5416_v12 = vsub.f32 %v5406_v4, %v5414_v10  ;;  %v5419_v13 = vsel %vm488_vm0, %v5417_v11, 0.0 }
0x173d   :  { %5420 = vadd.xlane.f32.xlu0 %v5419_v13 }
0x173e   :  { %v5418_v14 = vmul.f32 %v5416_v12, %v5416_v12 }
0x1740   :  { %v5422_v15 = vsel %vm488_vm0, %v5418_v14, 0.0 }
0x1741   :  { %5423 = vadd.xlane.f32.xlu1 %v5422_v15  ;;  %v9729_v15 = vld [vmem:[#allocation25 + $0x38] sm:$0xff]  }
0x17ca   :  { %v5421_v16 = vpop.xlane.xlu0 %5420 }
0x17cb   :  { %v5425_v17 = vmul.f32 0.03125, %v5421_v16  ;;  %v9730_v16 = vld [vmem:[#allocation25 + $0x40] sm:$0xff]  }
0x17cd   :  { %v5427_v18 = vadd.f32 1e-05, %v5425_v17 }
0x17ce   :  { %v5424_v19 = vpop.xlane.xlu1 %5423 }
0x17cf   :  { %9836 = vrsqrt.f32 %v5427_v18  ;;  %v5426_v20 = vmul.f32 0.03125, %v5424_v19 }
0x17d1   :  { %v5428_v21 = vadd.f32 1e-05, %v5426_v20 }
0x17d3   :  { %9838 = vrsqrt.f32 %v5428_v21 }
0x17d9   :  { %v9837_v22 = vpop.eup %9836 }
0x17da   :  { %v5431_v23 = vmul.f32 %v9837_v22, %v5415_v8  ;;  %v9727_v8 = vld [vmem:[#allocation25 + $0x28] sm:$0xff]  }
0x17dc   :  { %v5435_v24 = vmin.f32 %v5431_v23, 0.0  ;;  %vm5433_vm4 = vcmp.gt.f32.partialorder %v5431_v23, 0.0 }
0x17dd   :  { %v9839_v25 = vpop.eup %9838 }
0x17de   :  { %v5432_v26 = vmul.f32 %v9839_v25, %v5416_v12  ;;  %v5437_v27 = vmul.f32 1.442695, %v5435_v24  ;;  %v9732_v24 = vld [vmem:[#allocation25 + $0x50] sm:$0xff]  }
0x17e0   :  { %v5436_v28 = vmin.f32 %v5432_v26, 0.0  ;;  %9840 = vpow2.f32 %v5437_v27  ;;  %vm5434_vm6 = vcmp.gt.f32.partialorder %v5432_v26, 0.0 }
0x17e2   :  { %v5439_v29 = vmul.f32 1.442695, %v5436_v28 }
0x17e4   :  { %9842 = vpow2.f32 %v5439_v29 }
0x17ea   :  { %v9841_v30 = vpop.eup %9840 }
0x17eb   :  { %v8068_v31 = vadd.f32 -1.0, %v9841_v30 }
0x17ed   :  { %v5443_v34 = vsel %vm5433_vm4, %v5431_v23, %v8068_v31  ;;  %v9731_v23 = vld [vmem:[#allocation25 + $0x48] sm:$0xff]  }
0x17ee   :  { %v9843_v32 = vpop.eup %9842 }
0x17ef   :  { %v8069_v33 = vadd.f32 -1.0, %v9843_v32 }
0x17f1   :  { %v5444_v35 = vsel %vm5434_vm6, %v5432_v26, %v8069_v33  ;;  %v9733_v33 = vld [vmem:[#allocation25 + $0x58] sm:$0xff]  }
0x17f2   :  { %v5463_v36 = vpack.c.bf16 %v5444_v35, %v5443_v34 }
0x17f4   :  { %9179 = vmatpush3.bf16.msra.mxu1 %v5463_v36 }
0x17f7   :  { %9181 = vmatmul.mubr.msk.bf16.vlgmr.msra.gmra.mrb[140].mxu1 %vm2461_vm13, %v9713_v37 }
0x17f8   :  { %9184 = vmatprep.mubr.msk.bf16.mxu1 %vm10366_vm3, %v10365_v43 }
0x17ff   :  { %9185 = vmatmul.mubr.msk.bf16.gmra.mrb[144].mxu1 %vm2461_vm13, %v9714_v38 }
0x1800   :  { %9188 = vmatprep.mubr.msk.bf16.mxu1 %vm10366_vm3, %v10365_v43 }
0x1807   :  { %9189 = vmatmul.mubr.msk.bf16.gmra.mrb[148].mxu1 %vm2461_vm13, %v9715_v39 }
0x1808   :  { %9192 = vmatprep.mubr.msk.bf16.mxu1 %vm10366_vm3, %v10365_v43 }
0x180f   :  { %9193 = vmatmul.mubr.msk.bf16.gmra.mrb[152].mxu1 %vm2461_vm13, %v9716_v40 }
0x1810   :  { %9196 = vmatprep.mubr.msk.bf16.mxu1 %vm10366_vm3, %v10365_v43 }
0x1817   :  { %9197 = vmatmul.mubr.msk.bf16.gmra.mrb[156].mxu1 %vm2461_vm13, %v9717_v41 }
0x1818   :  { %9200 = vmatprep.mubr.msk.bf16.mxu1 %vm10366_vm3, %v10365_v43 }
0x181f   :  { %9201 = vmatmul.mubr.msk.bf16.gmra.mrb[160].mxu1 %vm2461_vm13, %v9718_v42 }
0x1820   :  { %9204 = vmatprep.mubr.msk.bf16.mxu1 %vm10366_vm3, %v10365_v43 }
0x1827   :  { %9205 = vmatmul.mubr.msk.bf16.gmra.mrb[164].mxu1 %vm2461_vm13, %v9719_v44 }
0x1828   :  { %9208 = vmatprep.mubr.msk.bf16.mxu1 %vm10366_vm3, %v10365_v43 }
0x182f   :  { %9209 = vmatmul.mubr.msk.bf16.gmra.mrb[168].mxu1 %vm2461_vm13, %v9720_v45 }
0x1830   :  { %9212 = vmatprep.mubr.msk.bf16.mxu1 %vm10366_vm3, %v10365_v43 }
0x1837   :  { %9213 = vmatmul.mubr.msk.bf16.gmra.mrb[172].mxu1 %vm2461_vm13, %v9721_v46 }
0x18ca   :  { %v5570_v50 = vpop.f32.mrb[140].mxu1 }
0x18cb   :  { %v9182_v51 = vpop.f32.mrb[141].mxu1 }
0x18cc   :  { %v5573_v52 = vpop.f32.mrb[142].mxu1 }
0x18cd   :  { %v5645_v53 = vpack.c.bf16 %v5573_v52, %v5570_v50  ;;  %v9183_v54 = vpop.f32.mrb[143].mxu1 }
0x18d2   :  { %v5578_v55 = vpop.f32.mrb[144].mxu1 }
0x18d3   :  { %v9186_v56 = vpop.f32.mrb[145].mxu1  ;;  %v5646_v5 = vpack.c.bf16 %v5578_v55, %v5578_v55 }
0x18d4   :  { %v5581_v57 = vpop.f32.mrb[146].mxu1 }
0x18d5   :  { %v9187_v43 = vpop.f32.mrb[147].mxu1 }
0x18da   :  { %v5586_v58 = vpop.f32.mrb[148].mxu1 }
0x18db   :  { %v5652_v59 = vpack.c.bf16 %v5586_v58, %v5581_v57  ;;  %v9190_v60 = vpop.f32.mrb[149].mxu1 }
0x18dc   :  { %v5589_v61 = vpop.f32.mrb[150].mxu1 }
0x18dd   :  { %v5653_v62 = vpack.c.bf16 %v5589_v61, %v5589_v61  ;;  %v9191_v63 = vpop.f32.mrb[151].mxu1  ;;  %9220 = vmatprep.mubr.msk.bf16.mxu0 %vm488_vm0, %v5652_v59 }
0x18df   :  { %9221 = vmatmul.mubr.msk.bf16.vlgmr.msra.gmra.mrb[164].mxu0 %vm488_vm0, %v5653_v62 }
0x18e0   :  { %9225 = vmatpush3.bf16.msra.mxu0 %v9724_v49  ;;  %9228 = vmatprep.mubr.msk.bf16.mxu0 %vm488_vm0, %v5645_v53 }
0x18e1   :  { %9226 = vmatprep.subr.bf16.mxu0 %v9725_v0 }
0x18e2   :  { %v5594_v2 = vpop.f32.mrb[152].mxu1 }
0x18e3   :  { %v9194_v3 = vpop.f32.mrb[153].mxu1 }
0x18e4   :  { %v5597_v4 = vpop.f32.mrb[154].mxu1  ;;  %9227 = vmatpush3.bf16.msra.mxu0 %v9725_v0 }
0x18e5   :  { %v5791_v6 = vpack.c.bf16 %v5597_v4, %v5594_v2  ;;  %v9195_v7 = vpop.f32.mrb[155].mxu1  ;;  %9232 = vmatprep.subr.bf16.mxu0 %v9726_v1 }
0x18e7   :  { %9229 = vmatmul.mubr.msk.bf16.vlgmr.msra.gmra.mrb[168].mxu0 %vm488_vm0, %v5646_v5 }
0x18e8   :  { %9233 = vmatpush3.bf16.msra.mxu0 %v9726_v1  ;;  %9236 = vmatprep.mubr.msk.bf16.mxu0 %vm488_vm0, %v5791_v6 }
0x18e9   :  { %9234 = vmatprep.subr.bf16.mxu0 %v9727_v8 }
0x18ea   :  { %v5602_v10 = vpop.f32.mrb[156].mxu1 }
0x18eb   :  { %v9198_v11 = vpop.f32.mrb[157].mxu1  ;;  %v5792_v13 = vpack.c.bf16 %v5602_v10, %v5602_v10 }
0x18ec   :  { %v5605_v12 = vpop.f32.mrb[158].mxu1  ;;  %9235 = vmatpush3.bf16.msra.mxu0 %v9727_v8 }
0x18ed   :  { %v9199_v14 = vpop.f32.mrb[159].mxu1  ;;  %9240 = vmatprep.subr.bf16.mxu0 %v9728_v9 }
0x18ef   :  { %9237 = vmatmul.mubr.msk.bf16.vlgmr.msra.gmra.mrb[172].mxu0 %vm488_vm0, %v5792_v13  ;;  %v8112_v13 = vld [vmem:[%s11318_s19] ss:$0 sm:$0xff] }
0x18f0   :  { %9241 = vmatpush3.bf16.msra.mxu0 %v9728_v9 }
0x18f1   :  { %9242 = vmatprep.subr.bf16.mxu0 %v9729_v15 }
0x18f2   :  { %v5610_v17 = vpop.f32.mrb[160].mxu1 }
0x18f3   :  { %v5867_v18 = vpack.c.bf16 %v5610_v17, %v5605_v12  ;;  %v9202_v19 = vpop.f32.mrb[161].mxu1 }
0x18f4   :  { %v5613_v20 = vpop.f32.mrb[162].mxu1  ;;  %9243 = vmatpush3.bf16.msra.mxu0 %v9729_v15 }
0x18f5   :  { %v5868_v21 = vpack.c.bf16 %v5613_v20, %v5613_v20  ;;  %v9203_v22 = vpop.f32.mrb[163].mxu1  ;;  %9244 = vmatprep.mubr.msk.bf16.mxu0 %vm488_vm0, %v5867_v18  ;;  %9248 = vmatprep.subr.bf16.mxu0 %v9730_v16 }
0x18f7   :  { %9245 = vmatmul.mubr.msk.bf16.vlgmr.msra.gmra.mrb[176].mxu0 %vm488_vm0, %v5868_v21 }
0x18f8   :  { %9249 = vmatpush3.bf16.msra.mxu0 %v9730_v16 }
0x18f9   :  { %9250 = vmatprep.subr.bf16.mxu0 %v9731_v23 }
0x18fa   :  { %v5618_v25 = vpop.f32.mrb[164].mxu1 }
0x18fb   :  { %v9206_v26 = vpop.f32.mrb[165].mxu1 }
0x18fc   :  { %v5621_v27 = vpop.f32.mrb[166].mxu1  ;;  %9251 = vmatpush3.bf16.msra.mxu0 %v9731_v23 }
0x18fd   :  { %v5943_v28 = vpack.c.bf16 %v5621_v27, %v5618_v25  ;;  %v9207_v29 = vpop.f32.mrb[167].mxu1  ;;  %9256 = vmatprep.subr.bf16.mxu0 %v9732_v24 }
0x18ff   :  { %9252 = vmatprep.mubr.msk.bf16.mxu0 %vm488_vm0, %v5943_v28 }
0x1902   :  { %v5626_v30 = vpop.f32.mrb[168].mxu1 }
0x1903   :  { %v5944_v31 = vpack.c.bf16 %v5626_v30, %v5626_v30  ;;  %v9210_v32 = vpop.f32.mrb[169].mxu1 }
0x1904   :  { %v5629_v34 = vpop.f32.mrb[170].mxu1 }
0x1905   :  { %v9211_v35 = vpop.f32.mrb[171].mxu1  ;;  %9253 = vmatmul.mubr.msk.bf16.vlgmr.msra.gmra.mrb[180].mxu0 %vm488_vm0, %v5944_v31 }
0x1906   :  { %9257 = vmatpush3.bf16.msra.mxu0 %v9732_v24 }
0x1907   :  { %9258 = vmatprep.subr.bf16.mxu0 %v9733_v33 }
0x190a   :  { %v5634_v36 = vpop.f32.mrb[172].mxu1  ;;  %9259 = vmatpush3.bf16.msra.mxu0 %v9733_v33 }
0x190b   :  { %v6019_v37 = vpack.c.bf16 %v5634_v36, %v5629_v34  ;;  %v9214_v38 = vpop.f32.mrb[173].mxu1 }
0x190c   :  { %v5637_v39 = vpop.f32.mrb[174].mxu1 }
0x190d   :  { %v6020_v40 = vpack.c.bf16 %v5637_v39, %v5637_v39  ;;  %v9215_v41 = vpop.f32.mrb[175].mxu1  ;;  %9260 = vmatprep.mubr.msk.bf16.mxu0 %vm488_vm0, %v6019_v37  ;;  %v9734_v39 = vld [vmem:[#allocation22] sm:$0xff]  }
0x190f   :  { %9261 = vmatmul.mubr.msk.bf16.vlgmr.msra.gmra.mrb[184].mxu0 %vm488_vm0, %v6020_v40  ;;  %v9746_v40 = vld [vmem:[#allocation27 + $0x10] sm:$0xff]  }
0x1910   :  { %9268 = vmatprep.mubr.msk.bf16.mxu0 %vm1888_vm8, %v9734_v39  ;;  %9292 = vmatprep.subr.bf16.mxu1 %v9746_v40 }
0x1911   :  { %9293 = vmatpush3.bf16.msra.mxu1 %v9746_v40 }
0x19b2   :  { %v9222_v42 = vpop.f32.mrb[164].mxu0 }
0x19b3   :  { %v5706_v44 = vpop.f32.mrb[165].mxu0 }
0x19b4   :  { %v9223_v45 = vpop.f32.mrb[166].mxu0 }
0x19b5   :  { %v5709_v46 = vpop.f32.mrb[167].mxu0 }
0x19ba   :  { %v9230_v47 = vpop.f32.mrb[168].mxu0 }
0x19bb   :  { %v5781_v48 = vadd.f32 %v9230_v47, %v9222_v42  ;;  %v5772_v49 = vpop.f32.mrb[169].mxu0 }
0x19bc   :  { %v5773_v50 = vadd.f32 %v5772_v49, %v5706_v44  ;;  %v9231_v51 = vpop.f32.mrb[170].mxu0 }
0x19bd   :  { %v5775_v52 = vpop.f32.mrb[171].mxu0 }
0x19be   :  { %v5776_v53 = vadd.f32 %v5775_v52, %v5709_v46 }
0x19c2   :  { %v9238_v54 = vpop.f32.mrb[172].mxu0 }
0x19c3   :  { %v5861_v55 = vadd.f32 %v9238_v54, %v5781_v48  ;;  %v5845_v56 = vpop.f32.mrb[173].mxu0 }
0x19c4   :  { %v5859_v57 = vadd.f32 %v5845_v56, %v5773_v50  ;;  %v9239_v43 = vpop.f32.mrb[174].mxu0 }
0x19c5   :  { %v5848_v58 = vpop.f32.mrb[175].mxu0 }
0x19c6   :  { %v5860_v59 = vadd.f32 %v5848_v58, %v5776_v53 }
0x19ca   :  { %v9246_v60 = vpop.f32.mrb[176].mxu0 }
0x19cb   :  { %v5937_v61 = vadd.f32 %v9246_v60, %v5861_v55  ;;  %v5921_v62 = vpop.f32.mrb[177].mxu0 }
0x19cc   :  { %v5935_v63 = vadd.f32 %v5921_v62, %v5859_v57  ;;  %v9247_v0 = vpop.f32.mrb[178].mxu0 }
0x19cd   :  { %v5924_v1 = vpop.f32.mrb[179].mxu0 }
0x19ce   :  { %v5936_v2 = vadd.f32 %v5924_v1, %v5860_v59 }
0x19d8   :  { %v9254_v3 = vpop.f32.mrb[180].mxu0 }
0x19d9   :  { %v6013_v4 = vadd.f32 %v9254_v3, %v5937_v61  ;;  %v5997_v5 = vpop.f32.mrb[181].mxu0 }
0x19da   :  { %v6011_v6 = vadd.f32 %v5997_v5, %v5935_v63  ;;  %v9255_v7 = vpop.f32.mrb[182].mxu0 }
0x19db   :  { %v6000_v8 = vpop.f32.mrb[183].mxu0 }
0x19dc   :  { %v6012_v9 = vadd.f32 %v6000_v8, %v5936_v2 }
0x19e2   :  { %v9262_v10 = vpop.f32.mrb[184].mxu0 }
0x19e3   :  { %v6089_v11 = vadd.f32 %v9262_v10, %v6013_v4  ;;  %v6073_v12 = vpop.f32.mrb[185].mxu0  ;;  %v9735_v10 = vld [vmem:[#allocation22 + $0x8] sm:$0xff]  }
0x19e4   :  { %v6087_v14 = vadd.f32 %v6073_v12, %v6011_v6  ;;  %v9263_v15 = vpop.f32.mrb[186].mxu0  ;;  %v9737_v12 = vld [vmem:[#allocation22 + $0x18] sm:$0xff]  }
0x19e5   :  { %v6076_v16 = vpop.f32.mrb[187].mxu0  ;;  %v6099_v22 = vadd.f32 %v8112_v13, %v6089_v11  ;;  %v9736_v11 = vld [vmem:[#allocation22 + $0x10] sm:$0xff]  }
0x19e6   :  { %v6088_v17 = vadd.f32 %v6076_v16, %v6012_v9  ;;  %v6097_v18 = vadd.f32 %v8112_v13, %v6087_v14  ;;  %v9739_v14 = vld [vmem:[#allocation22 + $0x28] sm:$0xff]   ;;  %v9740_v15 = vld [vmem:[#allocation22 + $0x30] sm:$0xff]   ;;  %v9741_v16 = vld [vmem:[#allocation22 + $0x38] sm:$0xff]  }
0x19e7   :  { %v6106_v23 = vsel %vm488_vm0, %v6099_v22, 0.0 }
0x19e8   :  { %v6100_v19 = vsel %vm488_vm0, %v6097_v18, 0.0  ;;  %v6098_v20 = vadd.f32 %v8112_v13, %v6088_v17  ;;  %v9738_v13 = vld [vmem:[#allocation22 + $0x20] sm:$0xff]  }
0x19e9   :  { %6101 = vadd.xlane.f32.xlu1 %v6100_v19  ;;  %v9742_v17 = vld [vmem:[#allocation22 + $0x40] sm:$0xff]   ;;  %v9744_v19 = vld [vmem:[#allocation22 + $0x50] sm:$0xff]  }
0x19ea   :  { %v6103_v21 = vsel %vm488_vm0, %v6098_v20, 0.0 }
0x19ed   :  { %6104 = vadd.xlane.f32.xlu1 %v6103_v21  ;;  %v9747_v21 = vld [vmem:[#allocation27 + $0x18] sm:$0xff]  }
0x19ee   :  { %9294 = vmatprep.subr.bf16.mxu1 %v9747_v21 }
0x19ef   :  { %9295 = vmatpush3.bf16.msra.mxu1 %v9747_v21 }
0x19f1   :  { %6107 = vadd.xlane.f32.xlu1 %v6106_v23 }
0x1a76   :  { %v6102_v24 = vpop.xlane.xlu1 %6101 }
0x1a77   :  { %v6109_v25 = vmul.f32 0.03125, %v6102_v24 }
0x1a79   :  { %v6112_v26 = vsub.f32 %v6097_v18, %v6109_v25  ;;  %v9743_v18 = vld [vmem:[#allocation22 + $0x48] sm:$0xff]  }
0x1a7a   :  { %v6105_v27 = vpop.xlane.xlu1 %6104 }
0x1a7b   :  { %v6110_v28 = vmul.f32 0.03125, %v6105_v27  ;;  %v6115_v29 = vmul.f32 %v6112_v26, %v6112_v26 }
0x1a7d   :  { %v6113_v30 = vsub.f32 %v6098_v20, %v6110_v28  ;;  %v6118_v31 = vsel %vm488_vm0, %v6115_v29, 0.0  ;;  %v9745_v20 = vld [vmem:[#allocation22 + $0x58] sm:$0xff]  }
0x1a7e   :  { %6119 = vadd.xlane.f32.xlu1 %v6118_v31  ;;  %v6108_v32 = vpop.xlane.xlu1 %6107 }
0x1a7f   :  { %v6111_v33 = vmul.f32 0.03125, %v6108_v32  ;;  %v6116_v34 = vmul.f32 %v6113_v30, %v6113_v30 }
0x1a81   :  { %v6114_v35 = vsub.f32 %v6099_v22, %v6111_v33  ;;  %v6121_v36 = vsel %vm488_vm0, %v6116_v34, 0.0  ;;  %v9748_v22 = vld [vmem:[#allocation27] sm:$0xff]  }
0x1a82   :  { %6122 = vadd.xlane.f32.xlu1 %v6121_v36  ;;  %9300 = vmatprep.subr.bf16.mxu1 %v9748_v22 }
0x1a83   :  { %v6117_v37 = vmul.f32 %v6114_v35, %v6114_v35 }
0x1a85   :  { %v6124_v38 = vsel %vm488_vm0, %v6117_v37, 0.0 }
0x1a86   :  { %6125 = vadd.xlane.f32.xlu1 %v6124_v38  ;;  %v9750_v38 = vld [vmem:[#allocation27 + $0x20] sm:$0xff]  }
0x1b0b   :  { %v6120_v41 = vpop.xlane.xlu1 %6119 }
0x1b0c   :  { %v6127_v42 = vmul.f32 0.03125, %v6120_v41 }
0x1b0e   :  { %v6130_v44 = vadd.f32 1e-05, %v6127_v42 }
0x1b0f   :  { %v6123_v45 = vpop.xlane.xlu1 %6122 }
0x1b10   :  { %9844 = vrsqrt.f32 %v6130_v44  ;;  %v6128_v46 = vmul.f32 0.03125, %v6123_v45  ;;  %v9751_v45 = vld [vmem:[#allocation27 + $0x28] sm:$0xff]  }
0x1b12   :  { %v6131_v47 = vadd.f32 1e-05, %v6128_v46 }
0x1b13   :  { %v6126_v48 = vpop.xlane.xlu1 %6125 }
0x1b14   :  { %9846 = vrsqrt.f32 %v6131_v47  ;;  %v6129_v49 = vmul.f32 0.03125, %v6126_v48 }
0x1b16   :  { %v6132_v50 = vadd.f32 1e-05, %v6129_v49 }
0x1b18   :  { %9848 = vrsqrt.f32 %v6132_v50 }
0x1b1a   :  { %v9845_v51 = vpop.eup %9844 }
0x1b1b   :  { %v6136_v52 = vmul.f32 %v9845_v51, %v6112_v26  ;;  %v9752_v51 = vld [vmem:[#allocation27 + $0x30] sm:$0xff]  }
0x1b1d   :  { %v6142_v53 = vmin.f32 %v6136_v52, 0.0  ;;  %vm6139_vm3 = vcmp.gt.f32.partialorder %v6136_v52, 0.0 }
0x1b1e   :  { %v9847_v54 = vpop.eup %9846 }
0x1b1f   :  { %v6137_v55 = vmul.f32 %v9847_v54, %v6113_v30  ;;  %v6145_v56 = vmul.f32 1.442695, %v6142_v53 }
0x1b21   :  { %v6143_v57 = vmin.f32 %v6137_v55, 0.0  ;;  %9850 = vpow2.f32 %v6145_v56  ;;  %vm6140_vm13 = vcmp.gt.f32.partialorder %v6137_v55, 0.0 }
0x1b22   :  { %v9849_v43 = vpop.eup %9848 }
0x1b23   :  { %v6147_v58 = vmul.f32 1.442695, %v6143_v57  ;;  %v6138_v59 = vmul.f32 %v9849_v43, %v6114_v35  ;;  %v9749_v35 = vld [vmem:[#allocation27 + $0x8] sm:$0xff]   ;;  %v9753_v43 = vld [vmem:[#allocation27 + $0x38] sm:$0xff]  }
0x1b25   :  { %9852 = vpow2.f32 %v6147_v58  ;;  %v6144_v60 = vmin.f32 %v6138_v59, 0.0  ;;  %vm6141_vm7 = vcmp.gt.f32.partialorder %v6138_v59, 0.0 }
0x1b27   :  { %v6149_v61 = vmul.f32 1.442695, %v6144_v60 }
0x1b29   :  { %9854 = vpow2.f32 %v6149_v61 }
0x1b2b   :  { %v9851_v62 = vpop.eup %9850 }
0x1b2c   :  { %v8113_v63 = vadd.f32 -1.0, %v9851_v62 }
0x1b2e   :  { %v6154_v2 = vsel %vm6139_vm3, %v6136_v52, %v8113_v63 }
0x1b2f   :  { %v9853_v0 = vpop.eup %9852 }
0x1b30   :  { %v8114_v1 = vadd.f32 -1.0, %v9853_v0 }
0x1b32   :  { %v6155_v3 = vsel %vm6140_vm13, %v6137_v55, %v8114_v1  ;;  %v9755_v1 = vld [vmem:[#allocation27 + $0x48] sm:$0xff]  }
0x1b33   :  { %v9855_v4 = vpop.eup %9854  ;;  %v6181_v5 = vpack.c.bf16 %v6155_v3, %v6154_v2  ;;  %v9756_v2 = vld [vmem:[#allocation27 + $0x50] sm:$0xff]   ;;  %v9757_v3 = vld [vmem:[#allocation27 + $0x58] sm:$0xff]  }
0x1b34   :  { %v8115_v6 = vadd.f32 -1.0, %v9855_v4  ;;  %v8164_v4 = vld [vmem:[%s11319_s1] ss:$0 sm:$0xff] }
0x1b35   :  { %9264 = vmatprep.subr.bf16.mxu0 %v6181_v5 }
0x1b36   :  { %9265 = vmatpush3.bf16.msra.mxu0 %v6181_v5  ;;  %v6156_v7 = vsel %vm6141_vm7, %v6138_v59, %v8115_v6  ;;  %v9754_v59 = vld [vmem:[#allocation27 + $0x40] sm:$0xff]  }
0x1b37   :  { %v6182_v8 = vpack.c.bf16 %v6156_v7, %v6156_v7 }
0x1b39   :  { %9484 = vmatprep.subr.msk.bf16.mxu0 %vm1907_vm12, %v6182_v8  ;;  %v6280_v9 = vsel %vm1907_vm12, %v6182_v8, 0 }
0x1b3a   :  { %9267 = vmatpush3.bf16.msra.mxu0 %v6280_v9 }
0x1b3d   :  { %9269 = vmatmul.mubr.msk.bf16.vlgmr.msra.gmra.mrb[188].mxu0 %vm1888_vm8, %v9735_v10 }
0x1b3e   :  { %9272 = vmatprep.mubr.msk.bf16.mxu0 %vm1888_vm8, %v9736_v11 }
0x1b45   :  { %9273 = vmatmul.mubr.msk.bf16.gmra.mrb[192].mxu0 %vm1888_vm8, %v9737_v12 }
0x1b46   :  { %9276 = vmatprep.mubr.msk.bf16.mxu0 %vm1888_vm8, %v9738_v13 }
0x1b4d   :  { %9277 = vmatmul.mubr.msk.bf16.gmra.mrb[196].mxu0 %vm1888_vm8, %v9739_v14 }
0x1b4e   :  { %9280 = vmatprep.mubr.msk.bf16.mxu0 %vm1888_vm8, %v9740_v15 }
0x1b55   :  { %9281 = vmatmul.mubr.msk.bf16.gmra.mrb[200].mxu0 %vm1888_vm8, %v9741_v16 }
0x1b56   :  { %9284 = vmatprep.mubr.msk.bf16.mxu0 %vm1888_vm8, %v9742_v17 }
0x1b5d   :  { %9285 = vmatmul.mubr.msk.bf16.gmra.mrb[204].mxu0 %vm1888_vm8, %v9743_v18 }
0x1b5e   :  { %9288 = vmatprep.mubr.msk.bf16.mxu0 %vm1888_vm8, %v9744_v19 }
0x1b65   :  { %9289 = vmatmul.mubr.msk.bf16.gmra.mrb[208].mxu0 %vm1888_vm8, %v9745_v20 }
0x1c10   :  { %v9270_v23 = vpop.f32.mrb[188].mxu0 }
0x1c11   :  { %v6316_v24 = vpop.f32.mrb[189].mxu0 }
0x1c12   :  { %v9271_v25 = vpop.f32.mrb[190].mxu0 }
0x1c13   :  { %v6416_v26 = vpack.c.bf16 %v9271_v25, %v9270_v23  ;;  %v6319_v27 = vpop.f32.mrb[191].mxu0 }
0x1c14   :  { %v6415_v28 = vpack.c.bf16 %v6319_v27, %v6316_v24 }
0x1c18   :  { %v9274_v29 = vpop.f32.mrb[192].mxu0 }
0x1c19   :  { %v6332_v30 = vpop.f32.mrb[193].mxu0 }
0x1c1a   :  { %v9275_v31 = vpop.f32.mrb[194].mxu0 }
0x1c1b   :  { %v6423_v32 = vpack.c.bf16 %v9275_v31, %v9274_v29  ;;  %v6335_v33 = vpop.f32.mrb[195].mxu0 }
0x1c1c   :  { %v6422_v34 = vpack.c.bf16 %v6335_v33, %v6332_v30 }
0x1c1e   :  { %9296 = vmatprep.mubr.msk.bf16.mxu1 %vm488_vm0, %v6422_v34 }
0x1c1f   :  { %9297 = vmatmul.mubr.msk.bf16.vlgmr.msra.gmra.mrb[176].mxu1 %vm488_vm0, %v6423_v32 }
0x1c20   :  { %9304 = vmatprep.mubr.msk.bf16.mxu1 %vm488_vm0, %v6415_v28  ;;  %9301 = vmatpush3.bf16.msra.mxu1 %v9748_v22  ;;  %v9278_v36 = vpop.f32.mrb[196].mxu0 }
0x1c21   :  { %9302 = vmatprep.subr.bf16.mxu1 %v9749_v35  ;;  %v6348_v37 = vpop.f32.mrb[197].mxu0 }
0x1c22   :  { %v9279_v39 = vpop.f32.mrb[198].mxu0 }
0x1c23   :  { %v6564_v40 = vpack.c.bf16 %v9279_v39, %v9278_v36  ;;  %v6351_v41 = vpop.f32.mrb[199].mxu0 }
0x1c24   :  { %9303 = vmatpush3.bf16.msra.mxu1 %v9749_v35  ;;  %v6563_v42 = vpack.c.bf16 %v6351_v41, %v6348_v37  ;;  %v9758_v37 = vld [vmem:[#allocation28] sm:$0xff]  }
0x1c25   :  { %9308 = vmatprep.subr.bf16.mxu1 %v9750_v38  ;;  %9344 = vmatprep.mubr.msk.bf16.mxu0 %vm488_vm0, %v9758_v37 }
0x1c28   :  { %v9282_v44 = vpop.f32.mrb[200].mxu0 }
0x1c29   :  { %v6364_v46 = vpop.f32.mrb[201].mxu0 }
0x1c2a   :  { %v9283_v47 = vpop.f32.mrb[202].mxu0 }
0x1c2b   :  { %9305 = vmatmul.mubr.msk.bf16.vlgmr.msra.gmra.mrb[176].mxu1 %vm488_vm0, %v6416_v26  ;;  %v6642_v48 = vpack.c.bf16 %v9283_v47, %v9282_v44  ;;  %v6367_v49 = vpop.f32.mrb[203].mxu0 }
0x1c2c   :  { %9309 = vmatpush3.bf16.msra.mxu1 %v9750_v38  ;;  %9312 = vmatprep.mubr.msk.bf16.mxu1 %vm488_vm0, %v6563_v42  ;;  %v6641_v50 = vpack.c.bf16 %v6367_v49, %v6364_v46 }
0x1c2d   :  { %9310 = vmatprep.subr.bf16.mxu1 %v9751_v45 }
0x1c30   :  { %9311 = vmatpush3.bf16.msra.mxu1 %v9751_v45  ;;  %v9286_v52 = vpop.f32.mrb[204].mxu0 }
0x1c31   :  { %9316 = vmatprep.subr.bf16.mxu1 %v9752_v51  ;;  %v6380_v53 = vpop.f32.mrb[205].mxu0 }
0x1c32   :  { %v9287_v54 = vpop.f32.mrb[206].mxu0 }
0x1c33   :  { %v6720_v55 = vpack.c.bf16 %v9287_v54, %v9286_v52  ;;  %v6383_v56 = vpop.f32.mrb[207].mxu0 }
0x1c34   :  { %v6719_v57 = vpack.c.bf16 %v6383_v56, %v6380_v53 }
0x1c37   :  { %9313 = vmatmul.mubr.msk.bf16.vlgmr.msra.gmra.mrb[176].mxu1 %vm488_vm0, %v6564_v40 }
0x1c38   :  { %9317 = vmatpush3.bf16.msra.mxu1 %v9752_v51  ;;  %9320 = vmatprep.mubr.msk.bf16.mxu1 %vm488_vm0, %v6641_v50  ;;  %v9290_v58 = vpop.f32.mrb[208].mxu0 }
0x1c39   :  { %9318 = vmatprep.subr.bf16.mxu1 %v9753_v43  ;;  %v6396_v60 = vpop.f32.mrb[209].mxu0 }
0x1c3a   :  { %v9291_v61 = vpop.f32.mrb[210].mxu0 }
0x1c3b   :  { %v6798_v62 = vpack.c.bf16 %v9291_v61, %v9290_v58  ;;  %v6399_v63 = vpop.f32.mrb[211].mxu0 }
0x1c3c   :  { %9319 = vmatpush3.bf16.msra.mxu1 %v9753_v43  ;;  %v6797_v0 = vpack.c.bf16 %v6399_v63, %v6396_v60 }
0x1c3d   :  { %9324 = vmatprep.subr.bf16.mxu1 %v9754_v59 }
0x1c43   :  { %9321 = vmatmul.mubr.msk.bf16.vlgmr.msra.gmra.mrb[176].mxu1 %vm488_vm0, %v6642_v48 }
0x1c44   :  { %9325 = vmatpush3.bf16.msra.mxu1 %v9754_v59  ;;  %9328 = vmatprep.mubr.msk.bf16.mxu1 %vm488_vm0, %v6719_v57 }
0x1c45   :  { %9326 = vmatprep.subr.bf16.mxu1 %v9755_v1 }
0x1c48   :  { %9327 = vmatpush3.bf16.msra.mxu1 %v9755_v1 }
0x1c49   :  { %9332 = vmatprep.subr.bf16.mxu1 %v9756_v2 }
0x1c4f   :  { %9329 = vmatmul.mubr.msk.bf16.vlgmr.msra.gmra.mrb[176].mxu1 %vm488_vm0, %v6720_v55 }
0x1c50   :  { %9333 = vmatpush3.bf16.msra.mxu1 %v9756_v2  ;;  %9336 = vmatprep.mubr.msk.bf16.mxu1 %vm488_vm0, %v6797_v0 }
0x1c51   :  { %9334 = vmatprep.subr.bf16.mxu1 %v9757_v3 }
0x1c54   :  { %9335 = vmatpush3.bf16.msra.mxu1 %v9757_v3 }
0x1c5b   :  { %9337 = vmatmul.mubr.msk.bf16.vlgmr.msra.gmra.mrb[176].mxu1 %vm488_vm0, %v6798_v62 }
0x1d2e   :  { %v9338_v5 = vpop.f32.mrb[176].mxu1 }
0x1d2f   :  { %v6851_v6 = vpop.f32.mrb[177].mxu1  ;;  %v6879_v10 = vadd.f32 %v9338_v5, %v8164_v4 }
0x1d30   :  { %v6877_v7 = vadd.f32 %v8164_v4, %v6851_v6  ;;  %v9339_v8 = vpop.f32.mrb[178].mxu1 }
0x1d31   :  { %v6854_v9 = vpop.f32.mrb[179].mxu1  ;;  %v6880_v13 = vadd.f32 %v9339_v8, %v8164_v4  ;;  %v6887_v15 = vsel %vm488_vm0, %v6879_v10, 0.0 }
0x1d32   :  { %v6878_v11 = vadd.f32 %v8164_v4, %v6854_v9  ;;  %v6881_v12 = vsel %vm488_vm0, %v6877_v7, 0.0 }
0x1d33   :  { %6882 = vadd.xlane.f32.xlu1 %v6881_v12  ;;  %v6890_v16 = vsel %vm488_vm0, %v6880_v13, 0.0 }
0x1d34   :  { %v6884_v14 = vsel %vm488_vm0, %v6878_v11, 0.0 }
0x1d35   :  { %6885 = vadd.xlane.f32.xlu0 %v6884_v14 }
0x1d37   :  { %6888 = vadd.xlane.f32.xlu1 %v6887_v15 }
0x1d39   :  { %6891 = vadd.xlane.f32.xlu0 %v6890_v16  ;;  %v9759_v16 = vld [vmem:[#allocation28 + $0x8] sm:$0xff]  }
0x1dc0   :  { %v6883_v17 = vpop.xlane.xlu1 %6882 }
0x1dc1   :  { %v6893_v18 = vmul.f32 0.03125, %v6883_v17  ;;  %v9760_v17 = vld [vmem:[#allocation28 + $0x10] sm:$0xff]  }
0x1dc2   :  { %v6886_v19 = vpop.xlane.xlu0 %6885 }
0x1dc3   :  { %v6897_v20 = vsub.f32 %v6877_v7, %v6893_v18  ;;  %v6894_v21 = vmul.f32 0.03125, %v6886_v19  ;;  %v9761_v18 = vld [vmem:[#allocation28 + $0x18] sm:$0xff]   ;;  %v9762_v19 = vld [vmem:[#allocation28 + $0x20] sm:$0xff]  }
0x1dc4   :  { %v6889_v22 = vpop.xlane.xlu1 %6888 }
0x1dc5   :  { %v6898_v23 = vsub.f32 %v6878_v11, %v6894_v21  ;;  %v6895_v24 = vmul.f32 0.03125, %v6889_v22  ;;  %v6901_v25 = vmul.f32 %v6897_v20, %v6897_v20  ;;  %v9764_v21 = vld [vmem:[#allocation28 + $0x30] sm:$0xff]   ;;  %v9765_v22 = vld [vmem:[#allocation28 + $0x38] sm:$0xff]  }
0x1dc6   :  { %v6892_v26 = vpop.xlane.xlu0 %6891 }
0x1dc7   :  { %v6899_v27 = vsub.f32 %v6879_v10, %v6895_v24  ;;  %v6896_v28 = vmul.f32 0.03125, %v6892_v26  ;;  %v6905_v29 = vsel %vm488_vm0, %v6901_v25, 0.0  ;;  %v6902_v30 = vmul.f32 %v6898_v23, %v6898_v23  ;;  %v9767_v24 = vld [vmem:[#allocation28 + $0x48] sm:$0xff]   ;;  %v9768_v25 = vld [vmem:[#allocation28 + $0x50] sm:$0xff]   ;;  %v9769_v26 = vld [vmem:[#allocation28 + $0x58] sm:$0xff]  }
0x1dc8   :  { %6906 = vadd.xlane.f32.xlu1 %v6905_v29  ;;  %v9772_v29 = vld [vmem:[#allocation30] sm:$0xff]  }
0x1dc9   :  { %v6900_v31 = vsub.f32 %v6880_v13, %v6896_v28  ;;  %v6908_v32 = vsel %vm488_vm0, %v6902_v30, 0.0  ;;  %v6903_v33 = vmul.f32 %v6899_v27, %v6899_v27  ;;  %v9771_v28 = vld [vmem:[#allocation30 + $0x18] sm:$0xff]  }
0x1dca   :  { %6909 = vadd.xlane.f32.xlu0 %v6908_v32 }
0x1dcb   :  { %v6911_v34 = vsel %vm488_vm0, %v6903_v33, 0.0  ;;  %v6904_v35 = vmul.f32 %v6900_v31, %v6900_v31 }
0x1dcc   :  { %6912 = vadd.xlane.f32.xlu1 %v6911_v34 }
0x1dcd   :  { %v6914_v36 = vsel %vm488_vm0, %v6904_v35, 0.0 }
0x1dce   :  { %6915 = vadd.xlane.f32.xlu0 %v6914_v36 }
0x1e55   :  { %v6907_v38 = vpop.xlane.xlu1 %6906 }
0x1e56   :  { %v6917_v39 = vmul.f32 0.03125, %v6907_v38 }
0x1e57   :  { %v6910_v40 = vpop.xlane.xlu0 %6909 }
0x1e58   :  { %v6921_v41 = vadd.f32 1e-05, %v6917_v39  ;;  %v6918_v42 = vmul.f32 0.03125, %v6910_v40 }
0x1e59   :  { %v6913_v44 = vpop.xlane.xlu1 %6912 }
0x1e5a   :  { %9856 = vrsqrt.f32 %v6921_v41  ;;  %v6922_v45 = vadd.f32 1e-05, %v6918_v42  ;;  %v6919_v46 = vmul.f32 0.03125, %v6913_v44  ;;  %v9773_v42 = vld [vmem:[#allocation30 + $0x8] sm:$0xff]  }
0x1e5b   :  { %v6916_v47 = vpop.xlane.xlu0 %6915 }
0x1e5c   :  { %9858 = vrsqrt.f32 %v6922_v45  ;;  %v6923_v48 = vadd.f32 1e-05, %v6919_v46  ;;  %v6920_v49 = vmul.f32 0.03125, %v6916_v47  ;;  %v9774_v45 = vld [vmem:[#allocation30 + $0x20] sm:$0xff]  }
0x1e5e   :  { %9860 = vrsqrt.f32 %v6923_v48  ;;  %v6924_v50 = vadd.f32 1e-05, %v6920_v49 }
0x1e60   :  { %9862 = vrsqrt.f32 %v6924_v50 }
0x1e64   :  { %v9857_v51 = vpop.eup %9856 }
0x1e65   :  { %v6929_v52 = vmul.f32 %v9857_v51, %v6897_v20  ;;  %v9763_v20 = vld [vmem:[#allocation28 + $0x28] sm:$0xff]  }
0x1e66   :  { %v9859_v53 = vpop.eup %9858 }
0x1e67   :  { %v6930_v54 = vmul.f32 %v9859_v53, %v6898_v23  ;;  %v6937_v55 = vmin.f32 %v6929_v52, 0.0  ;;  %vm6933_vm8 = vcmp.gt.f32.partialorder %v6929_v52, 0.0  ;;  %v9766_v23 = vld [vmem:[#allocation28 + $0x40] sm:$0xff]  }
0x1e68   :  { %v9861_v56 = vpop.eup %9860 }
0x1e69   :  { %v6938_v57 = vmin.f32 %v6930_v54, 0.0  ;;  %v6941_v43 = vmul.f32 1.442695, %v6937_v55  ;;  %v6931_v58 = vmul.f32 %v9861_v56, %v6899_v27  ;;  %vm6934_vm12 = vcmp.gt.f32.partialorder %v6930_v54, 0.0  ;;  %v9770_v27 = vld [vmem:[#allocation30 + $0x10] sm:$0xff]  }
0x1e6a   :  { %v9863_v59 = vpop.eup %9862  ;;  %9368 = vmatprep.subr.bf16.mxu1 %v9770_v27 }
0x1e6b   :  { %9864 = vpow2.f32 %v6941_v43  ;;  %v6943_v60 = vmul.f32 1.442695, %v6938_v57  ;;  %v6932_v61 = vmul.f32 %v9863_v59, %v6900_v31  ;;  %v6939_v62 = vmin.f32 %v6931_v58, 0.0  ;;  %9369 = vmatpush3.bf16.msra.mxu1 %v9770_v27  ;;  %v9776_v43 = vld [vmem:[#allocation30 + $0x30] sm:$0xff]  }
0x1e6c   :  { %vm6935_vm9 = vcmp.gt.f32.partialorder %v6931_v58, 0.0  ;;  %9370 = vmatprep.subr.bf16.mxu1 %v9771_v28 }
0x1e6d   :  { %9866 = vpow2.f32 %v6943_v60  ;;  %v6940_v63 = vmin.f32 %v6932_v61, 0.0  ;;  %v6945_v0 = vmul.f32 1.442695, %v6939_v62  ;;  %vm6936_vm10 = vcmp.gt.f32.partialorder %v6932_v61, 0.0 }
0x1e6f   :  { %v6947_v1 = vmul.f32 1.442695, %v6940_v63  ;;  %9868 = vpow2.f32 %v6945_v0  ;;  %9371 = vmatpush3.bf16.msra.mxu1 %v9771_v28  ;;  %v9777_v0 = vld [vmem:[#allocation30 + $0x38] sm:$0xff]  }
0x1e70   :  { %9376 = vmatprep.subr.bf16.mxu1 %v9772_v29 }
0x1e71   :  { %9870 = vpow2.f32 %v6947_v1 }
0x1e75   :  { %v9865_v2 = vpop.eup %9864 }
0x1e76   :  { %v8165_v3 = vadd.f32 -1.0, %v9865_v2  ;;  %v9778_v2 = vld [vmem:[#allocation30 + $0x40] sm:$0xff]  }
0x1e77   :  { %v9867_v4 = vpop.eup %9866 }
0x1e78   :  { %v8166_v5 = vadd.f32 -1.0, %v9867_v4  ;;  %v6953_v7 = vsel %vm6933_vm8, %v6929_v52, %v8165_v3  ;;  %v9775_v52 = vld [vmem:[#allocation30 + $0x28] sm:$0xff]  }
0x1e79   :  { %v9869_v6 = vpop.eup %9868 }
0x1e7a   :  { %v6954_v8 = vsel %vm6934_vm12, %v6930_v54, %v8166_v5  ;;  %v8167_v11 = vadd.f32 -1.0, %v9869_v6 }
0x1e7b   :  { %v9871_v9 = vpop.eup %9870  ;;  %v6981_v10 = vpack.c.bf16 %v6954_v8, %v6953_v7  ;;  %v9779_v8 = vld [vmem:[#allocation30 + $0x48] sm:$0xff]  }
0x1e7c   :  { %v8168_v12 = vadd.f32 -1.0, %v9871_v9  ;;  %v6955_v13 = vsel %vm6935_vm9, %v6931_v58, %v8167_v11  ;;  %v9780_v9 = vld [vmem:[#allocation30 + $0x50] sm:$0xff]   ;;  %v8217_v11 = vld [vmem:[%s10542_s30] ss:$0 sm:$0xff] }
0x1e7d   :  { %9340 = vmatprep.subr.bf16.mxu0 %v6981_v10 }
0x1e7e   :  { %9341 = vmatpush3.bf16.msra.mxu0 %v6981_v10  ;;  %v6956_v14 = vsel %vm6936_vm10, %v6932_v61, %v8168_v12  ;;  %v9781_v10 = vld [vmem:[#allocation30 + $0x58] sm:$0xff]  }
0x1e7f   :  { %v6982_v15 = vpack.c.bf16 %v6956_v14, %v6955_v13 }
0x1e81   :  { %9342 = vmatprep.subr.bf16.mxu0 %v6982_v15 }
0x1e82   :  { %9343 = vmatpush3.bf16.msra.mxu0 %v6982_v15 }
0x1e85   :  { %9345 = vmatmul.mubr.msk.bf16.vlgmr.msra.gmra.mrb[212].mxu0 %vm488_vm0, %v9759_v16 }
0x1e86   :  { %9348 = vmatprep.mubr.msk.bf16.mxu0 %vm488_vm0, %v9760_v17 }
0x1e8d   :  { %9349 = vmatmul.mubr.msk.bf16.gmra.mrb[216].mxu0 %vm488_vm0, %v9761_v18 }
0x1e8e   :  { %9352 = vmatprep.mubr.msk.bf16.mxu0 %vm488_vm0, %v9762_v19 }
0x1e95   :  { %9353 = vmatmul.mubr.msk.bf16.gmra.mrb[220].mxu0 %vm488_vm0, %v9763_v20 }
0x1e96   :  { %9356 = vmatprep.mubr.msk.bf16.mxu0 %vm488_vm0, %v9764_v21 }
0x1e9d   :  { %9357 = vmatmul.mubr.msk.bf16.gmra.mrb[224].mxu0 %vm488_vm0, %v9765_v22 }
0x1e9e   :  { %9360 = vmatprep.mubr.msk.bf16.mxu0 %vm488_vm0, %v9766_v23 }
0x1ea5   :  { %9361 = vmatmul.mubr.msk.bf16.gmra.mrb[228].mxu0 %vm488_vm0, %v9767_v24 }
0x1ea6   :  { %9364 = vmatprep.mubr.msk.bf16.mxu0 %vm488_vm0, %v9768_v25 }
0x1ead   :  { %9365 = vmatmul.mubr.msk.bf16.gmra.mrb[232].mxu0 %vm488_vm0, %v9769_v26 }
0x1f58   :  { %v9346_v30 = vpop.f32.mrb[212].mxu0 }
0x1f59   :  { %v7113_v31 = vpop.f32.mrb[213].mxu0 }
0x1f5a   :  { %v9347_v32 = vpop.f32.mrb[214].mxu0 }
0x1f5b   :  { %v7213_v33 = vpack.c.bf16 %v9347_v32, %v9346_v30  ;;  %v7116_v34 = vpop.f32.mrb[215].mxu0 }
0x1f5c   :  { %v7212_v35 = vpack.c.bf16 %v7116_v34, %v7113_v31 }
0x1f60   :  { %v9350_v36 = vpop.f32.mrb[216].mxu0 }
0x1f61   :  { %v7129_v37 = vpop.f32.mrb[217].mxu0 }
0x1f62   :  { %v9351_v38 = vpop.f32.mrb[218].mxu0 }
0x1f63   :  { %v7220_v39 = vpack.c.bf16 %v9351_v38, %v9350_v36  ;;  %v7132_v40 = vpop.f32.mrb[219].mxu0 }
0x1f64   :  { %v7219_v41 = vpack.c.bf16 %v7132_v40, %v7129_v37 }
0x1f66   :  { %9372 = vmatprep.mubr.msk.bf16.mxu1 %vm488_vm0, %v7219_v41 }
0x1f67   :  { %9373 = vmatmul.mubr.msk.bf16.vlgmr.msra.gmra.mrb[180].mxu1 %vm488_vm0, %v7220_v39 }
0x1f68   :  { %9377 = vmatpush3.bf16.msra.mxu1 %v9772_v29  ;;  %9380 = vmatprep.mubr.msk.bf16.mxu1 %vm488_vm0, %v7212_v35  ;;  %v9354_v44 = vpop.f32.mrb[220].mxu0 }
0x1f69   :  { %9378 = vmatprep.subr.bf16.mxu1 %v9773_v42  ;;  %v7145_v46 = vpop.f32.mrb[221].mxu0 }
0x1f6a   :  { %v9355_v47 = vpop.f32.mrb[222].mxu0 }
0x1f6b   :  { %v7361_v48 = vpack.c.bf16 %v9355_v47, %v9354_v44  ;;  %v7148_v49 = vpop.f32.mrb[223].mxu0 }
0x1f6c   :  { %9379 = vmatpush3.bf16.msra.mxu1 %v9773_v42  ;;  %v7360_v50 = vpack.c.bf16 %v7148_v49, %v7145_v46 }
0x1f6d   :  { %9384 = vmatprep.subr.bf16.mxu1 %v9774_v45 }
0x1f70   :  { %v9358_v51 = vpop.f32.mrb[224].mxu0 }
0x1f71   :  { %v7161_v53 = vpop.f32.mrb[225].mxu0 }
0x1f72   :  { %v9359_v54 = vpop.f32.mrb[226].mxu0 }
0x1f73   :  { %9381 = vmatmul.mubr.msk.bf16.vlgmr.msra.gmra.mrb[180].mxu1 %vm488_vm0, %v7213_v33  ;;  %v7439_v55 = vpack.c.bf16 %v9359_v54, %v9358_v51  ;;  %v7164_v56 = vpop.f32.mrb[227].mxu0 }
0x1f74   :  { %9385 = vmatpush3.bf16.msra.mxu1 %v9774_v45  ;;  %9388 = vmatprep.mubr.msk.bf16.mxu1 %vm488_vm0, %v7360_v50  ;;  %v7438_v57 = vpack.c.bf16 %v7164_v56, %v7161_v53 }
0x1f75   :  { %9386 = vmatprep.subr.bf16.mxu1 %v9775_v52 }
0x1f78   :  { %9387 = vmatpush3.bf16.msra.mxu1 %v9775_v52  ;;  %v9362_v58 = vpop.f32.mrb[228].mxu0 }
0x1f79   :  { %9392 = vmatprep.subr.bf16.mxu1 %v9776_v43  ;;  %v7177_v59 = vpop.f32.mrb[229].mxu0 }
0x1f7a   :  { %v9363_v60 = vpop.f32.mrb[230].mxu0 }
0x1f7b   :  { %v7517_v61 = vpack.c.bf16 %v9363_v60, %v9362_v58  ;;  %v7180_v62 = vpop.f32.mrb[231].mxu0 }
0x1f7c   :  { %v7516_v63 = vpack.c.bf16 %v7180_v62, %v7177_v59 }
0x1f7f   :  { %9389 = vmatmul.mubr.msk.bf16.vlgmr.msra.gmra.mrb[180].mxu1 %vm488_vm0, %v7361_v48 }
0x1f80   :  { %9393 = vmatpush3.bf16.msra.mxu1 %v9776_v43  ;;  %9396 = vmatprep.mubr.msk.bf16.mxu1 %vm488_vm0, %v7438_v57  ;;  %v9366_v1 = vpop.f32.mrb[232].mxu0 }
0x1f81   :  { %9394 = vmatprep.subr.bf16.mxu1 %v9777_v0  ;;  %v7193_v3 = vpop.f32.mrb[233].mxu0 }
0x1f82   :  { %v9367_v4 = vpop.f32.mrb[234].mxu0 }
0x1f83   :  { %v7595_v5 = vpack.c.bf16 %v9367_v4, %v9366_v1  ;;  %v7196_v6 = vpop.f32.mrb[235].mxu0 }
0x1f84   :  { %9395 = vmatpush3.bf16.msra.mxu1 %v9777_v0  ;;  %v7594_v7 = vpack.c.bf16 %v7196_v6, %v7193_v3 }
0x1f85   :  { %9400 = vmatprep.subr.bf16.mxu1 %v9778_v2 }
0x1f8b   :  { %9397 = vmatmul.mubr.msk.bf16.vlgmr.msra.gmra.mrb[180].mxu1 %vm488_vm0, %v7439_v55 }
0x1f8c   :  { %9401 = vmatpush3.bf16.msra.mxu1 %v9778_v2  ;;  %9404 = vmatprep.mubr.msk.bf16.mxu1 %vm488_vm0, %v7516_v63 }
0x1f8d   :  { %9402 = vmatprep.subr.bf16.mxu1 %v9779_v8 }
0x1f90   :  { %9403 = vmatpush3.bf16.msra.mxu1 %v9779_v8 }
0x1f91   :  { %9408 = vmatprep.subr.bf16.mxu1 %v9780_v9 }
0x1f97   :  { %9405 = vmatmul.mubr.msk.bf16.vlgmr.msra.gmra.mrb[180].mxu1 %vm488_vm0, %v7517_v61 }
0x1f98   :  { %9409 = vmatpush3.bf16.msra.mxu1 %v9780_v9  ;;  %9412 = vmatprep.mubr.msk.bf16.mxu1 %vm488_vm0, %v7594_v7 }
0x1f99   :  { %9410 = vmatprep.subr.bf16.mxu1 %v9781_v10 }
0x1f9c   :  { %9411 = vmatpush3.bf16.msra.mxu1 %v9781_v10 }
0x1fa3   :  { %9413 = vmatmul.mubr.msk.bf16.vlgmr.msra.gmra.mrb[180].mxu1 %vm488_vm0, %v7595_v5 }
0x2076   :  { %v9414_v12 = vpop.f32.mrb[180].mxu1 }
0x2077   :  { %v7676_v13 = vadd.f32 %v9414_v12, %v8217_v11  ;;  %v7648_v14 = vpop.f32.mrb[181].mxu1 }
0x2078   :  { %v7674_v15 = vadd.f32 %v8217_v11, %v7648_v14  ;;  %v9415_v16 = vpop.f32.mrb[182].mxu1 }
0x2079   :  { %7680 = vst.msk [vmem:[%s10547_s5 + $0x10] sm:$0xff] %vm661_vm2, %v7676_v13  ;;  %v7677_v17 = vadd.f32 %v9415_v16, %v8217_v11  ;;  %v7651_v18 = vpop.f32.mrb[183].mxu1 }
0x207a   :  { %7678 = vst.msk [vmem:[%s10547_s5] sm:$0xff] %vm661_vm2, %v7674_v15  ;;  %v7675_v19 = vadd.f32 %v8217_v11, %v7651_v18 }
0x207b   :  { %7681 = vst.msk [vmem:[%s10547_s5 + $0x18] sm:$0xff] %vm661_vm2, %v7677_v17 }
0x207c   :  { %7679 = vst.msk [vmem:[%s10547_s5 + $0x8] sm:$0xff] %vm661_vm2, %v7675_v19 }
0x207d   :  { %7686 = vsyncpa [#allocation3], 1 }
0x207e   :  { %7687 = vsyncpa [#allocation5], 1 }
0x207f   :  { %7688 = vsyncpa [#allocation8], 1 }
0x2080   :  { %7689 = vsyncpa [#allocation11], 1 }
0x2081   :  { %7690 = vsyncpa [#allocation14], 1 }
0x2082   :  { %7691 = vsyncpa [#allocation17], 1 }
0x2083   :  { %7692 = vsyncpa [#allocation20], 1 }
0x2084   :  { %7693 = vsyncpa [#allocation23], 1 }
0x2085   :  { %7694 = vsyncpa [#allocation26], 1 }
0x2086   :  { %7695 = vsyncpa [#allocation29], 1 }

</bundles_post_ra>
